<compile_context>
chip_gen: v6e
topology: v6e:2x2x1
jax: 0.10.0
libtpu: 0.0.40
codegen_flags: <defaults>
</compile_context>

<pallas_src>
import functools

import jax
import jax.numpy as jnp
from jax.experimental import pallas as pl
from jax.experimental.pallas import tpu as pltpu


DIMS = [12, 128, 256, 1024, 256, 128, 64, 2]   # layer widths
OUT_PAD = 128                                  # lane-dense padded output width


def _round_up(x, m):
    return ((x + m - 1) // m) * m


def _mlp_kernel(x_ref,
                w1, b1, w2, b2, w3, b3, w4, b4, w5, b5, w6, b6, w7, b7,
                o_ref):
    """Fused 7-layer MLP; bf16 MXU matmuls, f32 accumulate / bias / ReLU."""
    h = x_ref[...]  # (block_b, 12), f32

    def dense(h, w_ref, b_ref, relu=True):
        # bf16 operands hit the native MXU path on all generations; f32 acc.
        y = jnp.dot(h.astype(jnp.bfloat16), w_ref[...],
                    preferred_element_type=jnp.float32)
        y = y + b_ref[...]            # (1, out) f32 bias broadcasts over rows
        return jnp.maximum(y, 0.0) if relu else y

    h = dense(h, w1, b1)              # 12   -> 128, relu
    h = dense(h, w2, b2)              # 128  -> 256, relu
    # Dropout(0.3): identity in eval mode.
    h = dense(h, w3, b3)              # 256  -> 1024, relu
    h = dense(h, w4, b4)              # 1024 -> 256, relu
    # Dropout(0.3): identity in eval mode.
    h = dense(h, w5, b5)              # 256  -> 128, relu
    h = dense(h, w6, b6)              # 128  -> 64, relu
    # Dropout(0.3): identity in eval mode.
    y = dense(h, w7, b7, relu=False)  # 64 -> 128 (only first 2 cols are real)
    o_ref[...] = y.astype(o_ref.dtype)


@functools.partial(jax.jit, static_argnames=("block_b",))
def _ccv1_forward_padded(x_pad, flat_params, block_b):
    """x_pad: [B_pad, 12] f32 with B_pad % block_b == 0. Returns [B_pad, 128]."""
    B_pad = x_pad.shape[0]
    grid_b = B_pad // block_b

    in_specs = [pl.BlockSpec((block_b, DIMS[0]), lambda i: (i, 0))]
    for p in flat_params:
        # Constant index_map: Pallas fetches each weight/bias once and keeps
        # it resident in VMEM across all batch tiles (no per-step re-DMA).
        in_specs.append(pl.BlockSpec(p.shape, lambda i: (0, 0)))

    out_specs = pl.BlockSpec((block_b, OUT_PAD), lambda i: (i, 0))

    # VMEM budget: bf16 weights (+f32 biases) + f32 activation chain per tile
    # + margin; capped well under v7x's 64 MiB physical VMEM.
    weight_bytes = sum(int(p.size) * jnp.dtype(p.dtype).itemsize
                       for p in flat_params)
    act_bytes = block_b * sum(DIMS[:-1] + [OUT_PAD]) * 4
    vmem_limit = int(max(24 << 20,
                         min(56 << 20,
                             2 * weight_bytes + 3 * act_bytes + (4 << 20))))

    # Advisory cost hint for XLA's scheduler around the custom call.
    padded_dims = DIMS[:-1] + [OUT_PAD]
    flops = 2 * B_pad * sum(padded_dims[i] * padded_dims[i + 1]
                            for i in range(len(padded_dims) - 1))
    bytes_accessed = (x_pad.size * 4 + B_pad * OUT_PAD * 4 + weight_bytes)
    cost = pl.CostEstimate(flops=int(flops), transcendentals=0,
                           bytes_accessed=int(bytes_accessed))

    return pl.pallas_call(
        _mlp_kernel,
        out_shape=jax.ShapeDtypeStruct((B_pad, OUT_PAD), jnp.float32),
        grid_spec=pltpu.PrefetchScalarGridSpec(
            num_scalar_prefetch=0,
            grid=(grid_b,),
            in_specs=in_specs,
            out_specs=out_specs,
        ),
        compiler_params=pltpu.CompilerParams(
            dimension_semantics=("parallel",),
            vmem_limit_bytes=vmem_limit,
        ),
        cost_estimate=cost,
    )(x_pad, *flat_params)


def ccv1_forward(x, params, block_b=512):
    """x: [B, 12] float32; params: list of (W:[in,out] f32, b:[out]/[1,out] f32).

    block_b is a per-generation tunable (512-2048 recommended; multiple of 256
    for v6e/v7x, 128 for v5e). It auto-shrinks for small batches.
    """
    B = x.shape[0]
    assert x.shape[1] == DIMS[0]

    # Effective tile: never bigger than the (8-rounded) batch; multiple of 8.
    block_b_eff = _round_up(min(block_b, _round_up(B, 8)), 8)
    B_pad = _round_up(B, block_b_eff)

    # Zero-pad the batch tail (padded rows produce harmless values, sliced off).
    x_pad = x
    if B_pad != B:
        x_pad = jnp.pad(x, ((0, B_pad - B), (0, 0)))

    # Prepare parameters: bf16 weights, f32 (1, out) biases; pad the last layer
    # from 2 to OUT_PAD output columns with zeros for a lane-dense store.
    flat_params = []
    n_layers = len(params)
    for idx, (w, b) in enumerate(params):
        w = jnp.asarray(w, jnp.float32)
        b = jnp.asarray(b, jnp.float32).reshape(1, -1)
        if idx == n_layers - 1:
            pad_cols = OUT_PAD - w.shape[1]
            w = jnp.pad(w, ((0, 0), (0, pad_cols)))
            b = jnp.pad(b, ((0, 0), (0, pad_cols)))
        flat_params.append(w.astype(jnp.bfloat16))
        flat_params.append(b)

    out_pad = _ccv1_forward_padded(x_pad, tuple(flat_params), block_b_eff)
    return out_pad[:B, :DIMS[-1]]


def init_params(key):
    """Deterministic init mirroring nn.Linear default: U(-1/sqrt(in), 1/sqrt(in))."""
    params = []
    for idx in range(len(DIMS) - 1):
        fan_in, fan_out = DIMS[idx], DIMS[idx + 1]
        key, kw, kb = jax.random.split(key, 3)
        bound = 1.0 / jnp.sqrt(jnp.float32(fan_in))
        # Stored as [in, out] so the kernel computes x @ W (== x @ W_pt.T).
        w = jax.random.uniform(kw, (fan_in, fan_out), jnp.float32,
                               minval=-bound, maxval=bound)
        b = jax.random.uniform(kb, (1, fan_out), jnp.float32,
                               minval=-bound, maxval=bound)
        params.append((w, b))
    return params


def _reference_forward_bf16(x, params):
    """Pure-JAX reference mirroring the kernel's bf16-matmul / f32-accumulate path."""
    h = x
    for i, (w, b) in enumerate(params):
        y = jnp.dot(h.astype(jnp.bfloat16), w.astype(jnp.bfloat16),
                    preferred_element_type=jnp.float32) + b
        h = jnp.maximum(y, 0.0) if i < len(params) - 1 else y
    return h


if __name__ == "__main__":
    key = jax.random.PRNGKey(0)
    key, kx = jax.random.split(key)

    B = 100                                   # small + ragged vs. the 8-row rounding
    x = jax.random.normal(kx, (B, DIMS[0]), jnp.float32)
    params = init_params(key)

    out = ccv1_forward(x, params, block_b=512)
    out = jax.block_until_ready(out)

    ref = _reference_forward_bf16(x, params)
    assert out.shape == (B, DIMS[-1]), out.shape
    assert bool(jnp.all(jnp.isfinite(out))), "non-finite output"
    assert jnp.allclose(out, ref, atol=1e-2, rtol=1e-2), "mismatch vs reference"

    print("KERNEL_OK")
</pallas_src>

<mosaic_0001>
module attributes {stable_mosaic.version = 11 : i64} {
  func.func @_mlp_kernel(%arg0: i32, %arg1: memref<104x12xf32, #tpu.memory_space<vmem>>, %arg2: memref<12x128xbf16, #tpu.memory_space<vmem>>, %arg3: memref<1x128xf32, #tpu.memory_space<vmem>>, %arg4: memref<128x256xbf16, #tpu.memory_space<vmem>>, %arg5: memref<1x256xf32, #tpu.memory_space<vmem>>, %arg6: memref<256x1024xbf16, #tpu.memory_space<vmem>>, %arg7: memref<1x1024xf32, #tpu.memory_space<vmem>>, %arg8: memref<1024x256xbf16, #tpu.memory_space<vmem>>, %arg9: memref<1x256xf32, #tpu.memory_space<vmem>>, %arg10: memref<256x128xbf16, #tpu.memory_space<vmem>>, %arg11: memref<1x128xf32, #tpu.memory_space<vmem>>, %arg12: memref<128x64xbf16, #tpu.memory_space<vmem>>, %arg13: memref<1x64xf32, #tpu.memory_space<vmem>>, %arg14: memref<64x128xbf16, #tpu.memory_space<vmem>>, %arg15: memref<1x128xf32, #tpu.memory_space<vmem>>, %arg16: memref<104x128xf32, #tpu.memory_space<vmem>>) attributes {dimension_semantics = [#tpu.dimension_semantics<parallel>], iteration_bounds = array<i64: 1>, scalar_prefetch = 0 : i64, scratch_operands = 0 : i64, tpu.core_type = #tpu.core_type<tc>, window_params = [{transform_indices = @transform_0, window_bounds = array<i64: 104, 12>}, {pipeline_mode = #tpu.pipeline_mode<synchronous>, transform_indices = @transform_1, window_bounds = array<i64: 12, 128>}, {pipeline_mode = #tpu.pipeline_mode<synchronous>, transform_indices = @transform_2, window_bounds = array<i64: 1, 128>}, {pipeline_mode = #tpu.pipeline_mode<synchronous>, transform_indices = @transform_3, window_bounds = array<i64: 128, 256>}, {pipeline_mode = #tpu.pipeline_mode<synchronous>, transform_indices = @transform_4, window_bounds = array<i64: 1, 256>}, {pipeline_mode = #tpu.pipeline_mode<synchronous>, transform_indices = @transform_5, window_bounds = array<i64: 256, 1024>}, {pipeline_mode = #tpu.pipeline_mode<synchronous>, transform_indices = @transform_6, window_bounds = array<i64: 1, 1024>}, {pipeline_mode = #tpu.pipeline_mode<synchronous>, transform_indices = @transform_7, window_bounds = array<i64: 1024, 256>}, {pipeline_mode = #tpu.pipeline_mode<synchronous>, transform_indices = @transform_8, window_bounds = array<i64: 1, 256>}, {pipeline_mode = #tpu.pipeline_mode<synchronous>, transform_indices = @transform_9, window_bounds = array<i64: 256, 128>}, {pipeline_mode = #tpu.pipeline_mode<synchronous>, transform_indices = @transform_10, window_bounds = array<i64: 1, 128>}, {pipeline_mode = #tpu.pipeline_mode<synchronous>, transform_indices = @transform_11, window_bounds = array<i64: 128, 64>}, {pipeline_mode = #tpu.pipeline_mode<synchronous>, transform_indices = @transform_12, window_bounds = array<i64: 1, 64>}, {pipeline_mode = #tpu.pipeline_mode<synchronous>, transform_indices = @transform_13, window_bounds = array<i64: 64, 128>}, {pipeline_mode = #tpu.pipeline_mode<synchronous>, transform_indices = @transform_14, window_bounds = array<i64: 1, 128>}, {transform_indices = @transform_15, window_bounds = array<i64: 104, 128>}]} {
    %c0 = arith.constant 0 : index
    %c0_0 = arith.constant 0 : index
    %0 = vector.load %arg1[%c0, %c0_0] : memref<104x12xf32, #tpu.memory_space<vmem>>, vector<104x12xf32>
    %1 = arith.truncf %0 : vector<104x12xf32> to vector<104x12xbf16>
    %c0_1 = arith.constant 0 : index
    %c0_2 = arith.constant 0 : index
    %2 = vector.load %arg2[%c0_1, %c0_2] : memref<12x128xbf16, #tpu.memory_space<vmem>>, vector<12x128xbf16>
    %cst = arith.constant dense<0.000000e+00> : vector<104x128xf32>
    %3 = tpu.matmul %1, %2, %cst {dimension_numbers = #tpu.dot_dimension_numbers<[1], [0], [0], [1], [0, 0, 1, 1], [], []>} : vector<104x12xbf16>, vector<12x128xbf16>, vector<104x128xf32> -> vector<104x128xf32>
    %c0_3 = arith.constant 0 : index
    %c0_4 = arith.constant 0 : index
    %4 = vector.load %arg3[%c0_3, %c0_4] : memref<1x128xf32, #tpu.memory_space<vmem>>, vector<1x128xf32>
    %5 = vector.broadcast %4 : vector<1x128xf32> to vector<104x128xf32>
    %6 = arith.addf %3, %5 : vector<104x128xf32>
    %cst_5 = arith.constant 0.000000e+00 : f32
    %7 = vector.broadcast %cst_5 : f32 to vector<104x128xf32>
    %8 = arith.maximumf %6, %7 : vector<104x128xf32>
    %9 = arith.truncf %8 : vector<104x128xf32> to vector<104x128xbf16>
    %c0_6 = arith.constant 0 : index
    %c0_7 = arith.constant 0 : index
    %10 = vector.load %arg4[%c0_6, %c0_7] : memref<128x256xbf16, #tpu.memory_space<vmem>>, vector<128x256xbf16>
    %cst_8 = arith.constant dense<0.000000e+00> : vector<104x256xf32>
    %11 = tpu.matmul %9, %10, %cst_8 {dimension_numbers = #tpu.dot_dimension_numbers<[1], [0], [0], [1], [0, 0, 1, 1], [], []>} : vector<104x128xbf16>, vector<128x256xbf16>, vector<104x256xf32> -> vector<104x256xf32>
    %c0_9 = arith.constant 0 : index
    %c0_10 = arith.constant 0 : index
    %12 = vector.load %arg5[%c0_9, %c0_10] : memref<1x256xf32, #tpu.memory_space<vmem>>, vector<1x256xf32>
    %13 = vector.broadcast %12 : vector<1x256xf32> to vector<104x256xf32>
    %14 = arith.addf %11, %13 : vector<104x256xf32>
    %cst_11 = arith.constant 0.000000e+00 : f32
    %15 = vector.broadcast %cst_11 : f32 to vector<104x256xf32>
    %16 = arith.maximumf %14, %15 : vector<104x256xf32>
    %17 = arith.truncf %16 : vector<104x256xf32> to vector<104x256xbf16>
    %c0_12 = arith.constant 0 : index
    %c0_13 = arith.constant 0 : index
    %18 = vector.load %arg6[%c0_12, %c0_13] : memref<256x1024xbf16, #tpu.memory_space<vmem>>, vector<256x1024xbf16>
    %cst_14 = arith.constant dense<0.000000e+00> : vector<104x1024xf32>
    %19 = tpu.matmul %17, %18, %cst_14 {dimension_numbers = #tpu.dot_dimension_numbers<[1], [0], [0], [1], [0, 0, 1, 1], [], []>} : vector<104x256xbf16>, vector<256x1024xbf16>, vector<104x1024xf32> -> vector<104x1024xf32>
    %c0_15 = arith.constant 0 : index
    %c0_16 = arith.constant 0 : index
    %20 = vector.load %arg7[%c0_15, %c0_16] : memref<1x1024xf32, #tpu.memory_space<vmem>>, vector<1x1024xf32>
    %21 = vector.broadcast %20 : vector<1x1024xf32> to vector<104x1024xf32>
    %22 = arith.addf %19, %21 : vector<104x1024xf32>
    %cst_17 = arith.constant 0.000000e+00 : f32
    %23 = vector.broadcast %cst_17 : f32 to vector<104x1024xf32>
    %24 = arith.maximumf %22, %23 : vector<104x1024xf32>
    %25 = arith.truncf %24 : vector<104x1024xf32> to vector<104x1024xbf16>
    %c0_18 = arith.constant 0 : index
    %c0_19 = arith.constant 0 : index
    %26 = vector.load %arg8[%c0_18, %c0_19] : memref<1024x256xbf16, #tpu.memory_space<vmem>>, vector<1024x256xbf16>
    %cst_20 = arith.constant dense<0.000000e+00> : vector<104x256xf32>
    %27 = tpu.matmul %25, %26, %cst_20 {dimension_numbers = #tpu.dot_dimension_numbers<[1], [0], [0], [1], [0, 0, 1, 1], [], []>} : vector<104x1024xbf16>, vector<1024x256xbf16>, vector<104x256xf32> -> vector<104x256xf32>
    %c0_21 = arith.constant 0 : index
    %c0_22 = arith.constant 0 : index
    %28 = vector.load %arg9[%c0_21, %c0_22] : memref<1x256xf32, #tpu.memory_space<vmem>>, vector<1x256xf32>
    %29 = vector.broadcast %28 : vector<1x256xf32> to vector<104x256xf32>
    %30 = arith.addf %27, %29 : vector<104x256xf32>
    %cst_23 = arith.constant 0.000000e+00 : f32
    %31 = vector.broadcast %cst_23 : f32 to vector<104x256xf32>
    %32 = arith.maximumf %30, %31 : vector<104x256xf32>
    %33 = arith.truncf %32 : vector<104x256xf32> to vector<104x256xbf16>
    %c0_24 = arith.constant 0 : index
    %c0_25 = arith.constant 0 : index
    %34 = vector.load %arg10[%c0_24, %c0_25] : memref<256x128xbf16, #tpu.memory_space<vmem>>, vector<256x128xbf16>
    %cst_26 = arith.constant dense<0.000000e+00> : vector<104x128xf32>
    %35 = tpu.matmul %33, %34, %cst_26 {dimension_numbers = #tpu.dot_dimension_numbers<[1], [0], [0], [1], [0, 0, 1, 1], [], []>} : vector<104x256xbf16>, vector<256x128xbf16>, vector<104x128xf32> -> vector<104x128xf32>
    %c0_27 = arith.constant 0 : index
    %c0_28 = arith.constant 0 : index
    %36 = vector.load %arg11[%c0_27, %c0_28] : memref<1x128xf32, #tpu.memory_space<vmem>>, vector<1x128xf32>
    %37 = vector.broadcast %36 : vector<1x128xf32> to vector<104x128xf32>
    %38 = arith.addf %35, %37 : vector<104x128xf32>
    %cst_29 = arith.constant 0.000000e+00 : f32
    %39 = vector.broadcast %cst_29 : f32 to vector<104x128xf32>
    %40 = arith.maximumf %38, %39 : vector<104x128xf32>
    %41 = arith.truncf %40 : vector<104x128xf32> to vector<104x128xbf16>
    %c0_30 = arith.constant 0 : index
    %c0_31 = arith.constant 0 : index
    %42 = vector.load %arg12[%c0_30, %c0_31] : memref<128x64xbf16, #tpu.memory_space<vmem>>, vector<128x64xbf16>
    %cst_32 = arith.constant dense<0.000000e+00> : vector<104x64xf32>
    %43 = tpu.matmul %41, %42, %cst_32 {dimension_numbers = #tpu.dot_dimension_numbers<[1], [0], [0], [1], [0, 0, 1, 1], [], []>} : vector<104x128xbf16>, vector<128x64xbf16>, vector<104x64xf32> -> vector<104x64xf32>
    %c0_33 = arith.constant 0 : index
    %c0_34 = arith.constant 0 : index
    %44 = vector.load %arg13[%c0_33, %c0_34] : memref<1x64xf32, #tpu.memory_space<vmem>>, vector<1x64xf32>
    %45 = vector.broadcast %44 : vector<1x64xf32> to vector<104x64xf32>
    %46 = arith.addf %43, %45 : vector<104x64xf32>
    %cst_35 = arith.constant 0.000000e+00 : f32
    %47 = vector.broadcast %cst_35 : f32 to vector<104x64xf32>
    %48 = arith.maximumf %46, %47 : vector<104x64xf32>
    %49 = arith.truncf %48 : vector<104x64xf32> to vector<104x64xbf16>
    %c0_36 = arith.constant 0 : index
    %c0_37 = arith.constant 0 : index
    %50 = vector.load %arg14[%c0_36, %c0_37] : memref<64x128xbf16, #tpu.memory_space<vmem>>, vector<64x128xbf16>
    %cst_38 = arith.constant dense<0.000000e+00> : vector<104x128xf32>
    %51 = tpu.matmul %49, %50, %cst_38 {dimension_numbers = #tpu.dot_dimension_numbers<[1], [0], [0], [1], [0, 0, 1, 1], [], []>} : vector<104x64xbf16>, vector<64x128xbf16>, vector<104x128xf32> -> vector<104x128xf32>
    %c0_39 = arith.constant 0 : index
    %c0_40 = arith.constant 0 : index
    %52 = vector.load %arg15[%c0_39, %c0_40] : memref<1x128xf32, #tpu.memory_space<vmem>>, vector<1x128xf32>
    %53 = vector.broadcast %52 : vector<1x128xf32> to vector<104x128xf32>
    %54 = arith.addf %51, %53 : vector<104x128xf32>
    %c0_41 = arith.constant 0 : index
    %c0_42 = arith.constant 0 : index
    %55 = vector.load %arg16[%c0_41, %c0_42] : memref<104x128xf32, #tpu.memory_space<vmem>>, vector<104x128xf32>
    tpu.vector_store %arg16[%c0_41, %c0_42], %54 {strides = array<i32>} : memref<104x128xf32, #tpu.memory_space<vmem>>, vector<104x128xf32>,
    return
  }
  func.func @transform_0(%arg0: i32) -> (i32, i32) {
    %c0_i32 = arith.constant 0 : i32
    %c0_i32_0 = arith.constant 0 : i32
    return %arg0, %c0_i32 : i32, i32
  }
  func.func @transform_1(%arg0: i32) -> (i32, i32) {
    %c0_i32 = arith.constant 0 : i32
    %c0_i32_0 = arith.constant 0 : i32
    %c0_i32_1 = arith.constant 0 : i32
    return %c0_i32, %c0_i32_0 : i32, i32
  }
  func.func @transform_2(%arg0: i32) -> (i32, i32) {
    %c0_i32 = arith.constant 0 : i32
    %c0_i32_0 = arith.constant 0 : i32
    %c0_i32_1 = arith.constant 0 : i32
    return %c0_i32, %c0_i32_0 : i32, i32
  }
  func.func @transform_3(%arg0: i32) -> (i32, i32) {
    %c0_i32 = arith.constant 0 : i32
    %c0_i32_0 = arith.constant 0 : i32
    %c0_i32_1 = arith.constant 0 : i32
    return %c0_i32, %c0_i32_0 : i32, i32
  }
  func.func @transform_4(%arg0: i32) -> (i32, i32) {
    %c0_i32 = arith.constant 0 : i32
    %c0_i32_0 = arith.constant 0 : i32
    %c0_i32_1 = arith.constant 0 : i32
    return %c0_i32, %c0_i32_0 : i32, i32
  }
  func.func @transform_5(%arg0: i32) -> (i32, i32) {
    %c0_i32 = arith.constant 0 : i32
    %c0_i32_0 = arith.constant 0 : i32
    %c0_i32_1 = arith.constant 0 : i32
    return %c0_i32, %c0_i32_0 : i32, i32
  }
  func.func @transform_6(%arg0: i32) -> (i32, i32) {
    %c0_i32 = arith.constant 0 : i32
    %c0_i32_0 = arith.constant 0 : i32
    %c0_i32_1 = arith.constant 0 : i32
    return %c0_i32, %c0_i32_0 : i32, i32
  }
  func.func @transform_7(%arg0: i32) -> (i32, i32) {
    %c0_i32 = arith.constant 0 : i32
    %c0_i32_0 = arith.constant 0 : i32
    %c0_i32_1 = arith.constant 0 : i32
    return %c0_i32, %c0_i32_0 : i32, i32
  }
  func.func @transform_8(%arg0: i32) -> (i32, i32) {
    %c0_i32 = arith.constant 0 : i32
    %c0_i32_0 = arith.constant 0 : i32
    %c0_i32_1 = arith.constant 0 : i32
    return %c0_i32, %c0_i32_0 : i32, i32
  }
  func.func @transform_9(%arg0: i32) -> (i32, i32) {
    %c0_i32 = arith.constant 0 : i32
    %c0_i32_0 = arith.constant 0 : i32
    %c0_i32_1 = arith.constant 0 : i32
    return %c0_i32, %c0_i32_0 : i32, i32
  }
  func.func @transform_10(%arg0: i32) -> (i32, i32) {
    %c0_i32 = arith.constant 0 : i32
    %c0_i32_0 = arith.constant 0 : i32
    %c0_i32_1 = arith.constant 0 : i32
    return %c0_i32, %c0_i32_0 : i32, i32
  }
  func.func @transform_11(%arg0: i32) -> (i32, i32) {
    %c0_i32 = arith.constant 0 : i32
    %c0_i32_0 = arith.constant 0 : i32
    %c0_i32_1 = arith.constant 0 : i32
    return %c0_i32, %c0_i32_0 : i32, i32
  }
  func.func @transform_12(%arg0: i32) -> (i32, i32) {
    %c0_i32 = arith.constant 0 : i32
    %c0_i32_0 = arith.constant 0 : i32
    %c0_i32_1 = arith.constant 0 : i32
    return %c0_i32, %c0_i32_0 : i32, i32
  }
  func.func @transform_13(%arg0: i32) -> (i32, i32) {
    %c0_i32 = arith.constant 0 : i32
    %c0_i32_0 = arith.constant 0 : i32
    %c0_i32_1 = arith.constant 0 : i32
    return %c0_i32, %c0_i32_0 : i32, i32
  }
  func.func @transform_14(%arg0: i32) -> (i32, i32) {
    %c0_i32 = arith.constant 0 : i32
    %c0_i32_0 = arith.constant 0 : i32
    %c0_i32_1 = arith.constant 0 : i32
    return %c0_i32, %c0_i32_0 : i32, i32
  }
  func.func @transform_15(%arg0: i32) -> (i32, i32) {
    %c0_i32 = arith.constant 0 : i32
    %c0_i32_0 = arith.constant 0 : i32
    return %arg0, %c0_i32 : i32, i32
  }
}

</mosaic_0001>

<bundles_post_ra>
// kernel: _ccv1_forward_padded.1
= control target key start
LH: loop header
LB: loop body
LE: loop exit
PB: predicated region body
PF: predicated region fallthrough
CT: control target
= control target key end

     0   :  { %20 = vsyncpa [#allocation3], 0  ;;  %s5388_s0 = inlined_call_operand.vmem [shape: f32[104,12], index: 0, kind: input, shape index: {}]   ;;  %s5389_s1 = inlined_call_operand.vmem [shape: bf16[12,128], index: 1, kind: input, shape index: {}]   ;;  %s5390_s2 = inlined_call_operand.vmem [shape: f32[1,128], index: 2, kind: input, shape index: {}]   ;;  %s5391_s3 = inlined_call_operand.vmem [shape: bf16[128,256], index: 3, kind: input, shape index: {}]   ;;  %s5392_s4 = inlined_call_operand.vmem [shape: f32[1,256], index: 4, kind: input, shape index: {}]   ;;  %s5393_s5 = inlined_call_operand.hbm [shape: bf16[256,1024], index: 5, kind: input, shape index: {}]   ;;  %s5394_s6 = inlined_call_operand.vmem [shape: f32[1,1024], index: 6, kind: input, shape index: {}]   ;;  %s5395_s7 = inlined_call_operand.hbm [shape: bf16[1024,256], index: 7, kind: input, shape index: {}]   ;;  %s5396_s8 = inlined_call_operand.vmem [shape: f32[1,256], index: 8, kind: input, shape index: {}]   ;;  %s5397_s9 = inlined_call_operand.hbm [shape: bf16[256,128], index: 9, kind: input, shape index: {}]   ;;  %s5398_s10 = inlined_call_operand.vmem [shape: f32[1,128], index: 10, kind: input, shape index: {}]   ;;  %s5399_s11 = inlined_call_operand.vmem [shape: bf16[128,64], index: 11, kind: input, shape index: {}]   ;;  %s5400_s12 = inlined_call_operand.vmem [shape: f32[1,64], index: 12, kind: input, shape index: {}]   ;;  %s5401_s13 = inlined_call_operand.vmem [shape: bf16[64,128], index: 13, kind: input, shape index: {}]   ;;  %s5402_s14 = inlined_call_operand.vmem [shape: f32[1,128], index: 14, kind: input, shape index: {}]   ;;  %s5403_s15 = inlined_call_operand.hbm [shape: f32[104,128], index: 15, kind: output, shape index: {}]  }
   0x1   :  { %21 = vsyncpa [#allocation6], 0 }
   0x2   :  { %22 = vsyncpa [#allocation4], 0  ;;  %s4583_s18 = smov [#allocation5]  }
   0x3   :  { %s52_s19 = sshll.u32 %s4583_s18, 4  ;;  %s53_s19 = int_to_ptr.vmem [resolvable:$true] %s52_s19 }
   0x4   :  { %s4505_s20 = scalar_lea.vmem %s53_s19, 16384  ;;  %p4510_p1 = scmp.lt.s32.totalorder %s53_s19, %s53_s19 }
   0x5   :  { %p4506_p0 = scmp.ne.s32.totalorder %s53_s19, %s4505_s20  ;;  %p4511_p2 = scmp.lt.s32.totalorder %s4505_s20, %s4505_s20 }
   0x7   :  { %p4512_p3 = por %p4511_p2, %p4510_p1 }
   0x9   :  { %p4513_p4 = pnand %p4512_p3, %p4506_p0 }
   0xb   :  { %4516 = shalt.err (!%p4513_p4)
}
   0xc   :  { %s4584_s21 = smov 128   ;;  %s4585_s22 = smov 8  }
   0xd   :  { %58 = dma.hbm_to_vmem [thread:$0]  %s5395_s7, 16384, %s53_s19, [#allocation6], %s4584_s21, %s4584_s21, %s4585_s22  }
   0xe   :  { %s4586_s25 = smov [#allocation2]  }
   0xf   :  { %s38_s26 = sshll.u32 %s4586_s25, 4  ;;  %s39_s26 = int_to_ptr.vmem [resolvable:$true] %s38_s26 }
  0x10   :  { %s4525_s27 = scalar_lea.vmem %s39_s26, 16384  ;;  %p4530_p6 = scmp.lt.s32.totalorder %s39_s26, %s39_s26 }
  0x11   :  { %p4526_p5 = scmp.ne.s32.totalorder %s39_s26, %s4525_s27  ;;  %p4531_p7 = scmp.lt.s32.totalorder %s4525_s27, %s4525_s27 }
  0x13   :  { %p4532_p8 = por %p4531_p7, %p4530_p6 }
  0x15   :  { %p4533_p9 = pnand %p4532_p8, %p4526_p5 }
  0x17   :  { %4536 = shalt.err (!%p4533_p9)
}
  0x18   :  { %s4587_s28 = smov 512   ;;  %s4588_s29 = smov 32  }
  0x19   :  { %44 = dma.hbm_to_vmem [thread:$0]  %s5393_s5, 16384, %s39_s26, [#allocation3], %s4587_s28, %s4587_s28, %s4588_s29  }
  0x1a   :  { %s4589_s17 = smov [#allocation7]  }
  0x1b   :  { %s66_s18 = sshll.u32 %s4589_s17, 4  ;;  %s67_s18 = int_to_ptr.vmem [resolvable:$true] %s66_s18 }
  0x1c   :  { %s4545_s7 = scalar_lea.vmem %s67_s18, 2048  ;;  %p4550_p11 = scmp.lt.s32.totalorder %s67_s18, %s67_s18 }
  0x1d   :  { %p4546_p10 = scmp.ne.s32.totalorder %s67_s18, %s4545_s7  ;;  %p4551_p12 = scmp.lt.s32.totalorder %s4545_s7, %s4545_s7 }
  0x1f   :  { %p4552_p13 = por %p4551_p12, %p4550_p11 }
  0x21   :  { %p4553_p0 = pnand %p4552_p13, %p4546_p10 }
  0x23   :  { %4556 = shalt.err (!%p4553_p0)
}
  0x24   :  { %s4590_s19 = smov 64   ;;  %s4591_s20 = smov 4  }
  0x25   :  { %72 = dma.hbm_to_vmem [thread:$0]  %s5397_s9, 2048, %s67_s18, [#allocation6], %s4590_s19, %s4590_s19, %s4591_s20  }
  0x26   :  { %4577 = dma.done.wait [#allocation3], 16384  }
  0x27   :  { %4578 = vsyncadd [#allocation3], 4294950912 }
  0x28   :  { %4579 = dma.done.wait [#allocation6], 18432  }
  0x29   :  { %4580 = vsyncadd [#allocation6], 4294948864  ;;  %v4592_v0 = vmov 0.0   ;;  %vm4593_vm0 = vmmov 0   ;;  %vm149_vm1 = vcmask 1045504   ;;  %v93_v2 = vld [vmem:[%s5388_s0] sm:$0xff] }
  0x2a   :  { %4121 = vmatprep.subr.bf16.mxu0 %v4592_v0  ;;  %4123 = vmatprep.mubr.msk.bf16.mxu0 %vm4593_vm0, %v4592_v0  ;;  %v4252_v1 = vld [vmem:[%s5389_s1] sm:$0x3f]   ;;  %v94_v3 = vld [vmem:[%s5388_s0 + $0x8] sm:$0xff]  ;;  %vm127_vm2 = vcmask 97280   ;;  %v95_v6 = vld [vmem:[%s5388_s0 + $0x10] sm:$0xff]  ;;  %v4594_v39 = vmov 0  }
  0x2b   :  { %v151_v4 = vsel %vm149_vm1, %v4252_v1, 0  ;;  %v106_v5 = vpack.c.bf16 %v94_v3, %v93_v2  ;;  %v4253_v7 = vld [vmem:[%s5391_s3 + $0x74] ss:$8 sps:$4 sm:$0xff]   ;;  %v4255_v8 = vld [vmem:[%s5391_s3 + $0x70] ss:$8 sps:$4 sm:$0xff]   ;;  %v97_v15 = vld [vmem:[%s5388_s0 + $0x20] sm:$0xff]  ;;  %401 = vmatprep.mubr.bf16.mxu1 %v4594_v39 }
  0x2c   :  { %4122 = vmatpush3.bf16.msra.mxu0 %v151_v4  ;;  %v96_v9 = vld [vmem:[%s5388_s0 + $0x18] sm:$0xff]  ;;  %v4256_v10 = vld [vmem:[%s5391_s3 + $0x64] ss:$8 sps:$4 sm:$0xff]   ;;  %369 = vmatprep.subr.bf16.mxu1 %v4253_v7  ;;  %v4258_v11 = vld [vmem:[%s5391_s3 + $0x60] ss:$8 sps:$4 sm:$0xff]   ;;  %vm3569_vm3 = vcmask 523264  }
  0x2d   :  { %370 = vmatpush1.bf16.msra.mxu1 %v4255_v8  ;;  %v107_v12 = vpack.c.bf16 %v96_v9, %v95_v6  ;;  %v4259_v13 = vld [vmem:[%s5391_s3 + $0x54] ss:$8 sps:$4 sm:$0xff]   ;;  %v4261_v14 = vld [vmem:[%s5391_s3 + $0x50] ss:$8 sps:$4 sm:$0xff]   ;;  %v98_v16 = vld [vmem:[%s5388_s0 + $0x28] sm:$0xff] }
  0x2e   :  { %371 = vmatprep.subr.bf16.mxu1 %v4256_v10  ;;  %v4262_v17 = vld [vmem:[%s5391_s3 + $0x44] ss:$8 sps:$4 sm:$0xff]   ;;  %v4264_v18 = vld [vmem:[%s5391_s3 + $0x40] ss:$8 sps:$4 sm:$0xff]   ;;  %v4265_v19 = vld [vmem:[%s5391_s3 + $0x34] ss:$8 sps:$4 sm:$0xff]   ;;  %v108_v20 = vpack.c.bf16 %v98_v16, %v97_v15 }
  0x2f   :  { %4124 = vmatmul.mubr.msk.bf16.vlgmr.msra.gmra.mxu0 %vm127_vm2, %v106_v5  ;;  %v4267_v21 = vld [vmem:[%s5391_s3 + $0x30] ss:$8 sps:$4 sm:$0xff]   ;;  %v4268_v22 = vld [vmem:[%s5391_s3 + $0x24] ss:$8 sps:$4 sm:$0xff]   ;;  %v4270_v34 = vld [vmem:[%s5391_s3 + $0x20] ss:$8 sps:$4 sm:$0xff]  }
  0x30   :  { %4127 = vmatprep.mubr.msk.bf16.mxu0 %vm4593_vm0, %v4592_v0  ;;  %v99_v23 = vld [vmem:[%s5388_s0 + $0x30] sm:$0xff]  ;;  %v100_v24 = vld [vmem:[%s5388_s0 + $0x38] sm:$0xff]  ;;  %v101_v26 = vld [vmem:[%s5388_s0 + $0x40] sm:$0xff] }
  0x31   :  { %372 = vmatpush1.bf16.msra.mxu1 %v4258_v11  ;;  %v109_v25 = vpack.c.bf16 %v100_v24, %v99_v23  ;;  %v102_v27 = vld [vmem:[%s5388_s0 + $0x48] sm:$0xff]  ;;  %v103_v29 = vld [vmem:[%s5388_s0 + $0x50] sm:$0xff]  ;;  %v104_v30 = vld [vmem:[%s5388_s0 + $0x58] sm:$0xff] }
  0x32   :  { %373 = vmatprep.subr.bf16.mxu1 %v4259_v13  ;;  %v110_v28 = vpack.c.bf16 %v102_v27, %v101_v26  ;;  %v111_v31 = vpack.c.bf16 %v104_v30, %v103_v29  ;;  %v105_v32 = vld [vmem:[%s5388_s0 + $0x60] sm:$0xff]  ;;  %v4271_v35 = vld [vmem:[%s5391_s3 + $0x14] ss:$8 sps:$4 sm:$0xff]   ;;  %v4273_v36 = vld [vmem:[%s5391_s3 + $0x10] ss:$8 sps:$4 sm:$0xff]  }
  0x33   :  { %v112_v33 = vpack.c.bf16 %v105_v32, %v105_v32  ;;  %v4274_v37 = vld [vmem:[%s5391_s3 + $0x4] ss:$8 sps:$4 sm:$0xff]   ;;  %v4276_v38 = vld [vmem:[%s5391_s3] ss:$8 sps:$4 sm:$0xff]  }
  0x34   :  { %v566_v40 = vld [vmem:[#allocation2 + $0x1c0] sm:$0xff]  ;;  %v4801_v42 = vld [vmem:[#allocation2 + $0x1c8] sm:$0xff] }
  0x35   :  { %374 = vmatpush1.bf16.msra.mxu1 %v4261_v14  ;;  %v570_v41 = vld [vmem:[#allocation2 + $0x1e0] sm:$0xff]  ;;  %v4803_v45 = vld [vmem:[#allocation2 + $0x1e8] sm:$0xff] }
  0x36   :  { %375 = vmatprep.subr.bf16.mxu1 %v4262_v17  ;;  %v3791_v43 = vcombine.low %v566_v40, %v570_v41  ;;  %v3792_v44 = vcombine.high %v566_v40, %v570_v41  ;;  %v558_v46 = vld [vmem:[#allocation2 + $0x180] sm:$0xff]  ;;  %v3793_v48 = vcombine.low %v4801_v42, %v4803_v45  ;;  %v3794_v49 = vcombine.high %v4801_v42, %v4803_v45  ;;  %v559_v41 = vld [vmem:[#allocation2 + $0x188] sm:$0xff] }
  0x37   :  { %4128 = vmatmul.mubr.msk.bf16.gmra.mxu0 %vm127_vm2, %v107_v12  ;;  %v562_v47 = vld [vmem:[#allocation2 + $0x1a0] sm:$0xff]  ;;  %v535_v45 = vld [vmem:[#allocation2 + $0xc8] sm:$0xff] }
  0x38   :  { %4131 = vmatprep.mubr.msk.bf16.mxu0 %vm4593_vm0, %v4592_v0  ;;  %v3784_v50 = vcombine.high %v558_v46, %v562_v47  ;;  %v550_v51 = vld [vmem:[#allocation2 + $0x140] sm:$0xff]  ;;  %1320 = vmatprep.subr.bf16.mxu0 %v3792_v44  ;;  %v3783_v53 = vcombine.low %v558_v46, %v562_v47 }
  0x39   :  { %376 = vmatpush1.bf16.msra.mxu1 %v4264_v18  ;;  %v554_v52 = vld [vmem:[#allocation2 + $0x160] sm:$0xff]  ;;  %1321 = vmatpush1.bf16.msra.mxu0 %v3791_v43  ;;  %v563_v43 = vld [vmem:[#allocation2 + $0x1a8] sm:$0xff] }
  0x3a   :  { %377 = vmatprep.subr.bf16.mxu1 %v4265_v19  ;;  %1322 = vmatprep.subr.bf16.mxu0 %v3784_v50  ;;  %v3776_v54 = vcombine.high %v550_v51, %v554_v52  ;;  %v542_v55 = vld [vmem:[#allocation2 + $0x100] sm:$0xff]  ;;  %v3775_v57 = vcombine.low %v550_v51, %v554_v52  ;;  %v3786_v51 = vcombine.high %v559_v41, %v563_v43 }
  0x3b   :  { %v546_v56 = vld [vmem:[#allocation2 + $0x120] sm:$0xff] }
  0x3c   :  { %v3768_v58 = vcombine.high %v542_v55, %v546_v56  ;;  %v534_v59 = vld [vmem:[#allocation2 + $0xc0] sm:$0xff]  ;;  %v3767_v61 = vcombine.low %v542_v55, %v546_v56  ;;  %v3785_v56 = vcombine.low %v559_v41, %v563_v43  ;;  %v635_v41 = vld [vmem:[#allocation2 + $0x3e8] sm:$0xff] }
  0x3d   :  { %378 = vmatpush1.bf16.msra.mxu1 %v4267_v21  ;;  %1323 = vmatpush1.bf16.msra.mxu0 %v3783_v53  ;;  %v538_v60 = vld [vmem:[#allocation2 + $0xe0] sm:$0xff]  ;;  %v551_v53 = vld [vmem:[#allocation2 + $0x148] sm:$0xff] }
  0x3e   :  { %379 = vmatprep.subr.bf16.mxu1 %v4268_v22  ;;  %1324 = vmatprep.subr.bf16.mxu0 %v3776_v54  ;;  %v3760_v62 = vcombine.high %v534_v59, %v538_v60  ;;  %v526_v63 = vld [vmem:[#allocation2 + $0x80] sm:$0xff]  ;;  %v3759_v2 = vcombine.low %v534_v59, %v538_v60  ;;  %v555_v54 = vld [vmem:[#allocation2 + $0x168] sm:$0xff] }
  0x3f   :  { %4132 = vmatmul.mubr.msk.bf16.gmra.mxu0 %vm127_vm2, %v108_v20  ;;  %v530_v1 = vld [vmem:[#allocation2 + $0xa0] sm:$0xff]  ;;  %v3778_v59 = vcombine.high %v551_v53, %v555_v54 }
  0x40   :  { %4135 = vmatprep.mubr.msk.bf16.mxu0 %vm4593_vm0, %v4592_v0  ;;  %v3752_v3 = vcombine.high %v526_v63, %v530_v1  ;;  %v518_v4 = vld [vmem:[#allocation2 + $0x40] sm:$0xff]  ;;  %v3751_v6 = vcombine.low %v526_v63, %v530_v1 }
  0x41   :  { %380 = vmatpush1.bf16.msra.mxu1 %v4270_v34  ;;  %1325 = vmatpush1.bf16.msra.mxu0 %v3775_v57  ;;  %v522_v5 = vld [vmem:[#allocation2 + $0x60] sm:$0xff] }
  0x42   :  { %381 = vmatprep.subr.bf16.mxu1 %v4271_v35  ;;  %1326 = vmatprep.subr.bf16.mxu0 %v3768_v58  ;;  %v3744_v7 = vcombine.high %v518_v4, %v522_v5  ;;  %v510_v8 = vld [vmem:[#allocation2] sm:$0xff]  ;;  %v3743_v10 = vcombine.low %v518_v4, %v522_v5 }
  0x43   :  { %v514_v9 = vld [vmem:[#allocation2 + $0x20] sm:$0xff] }
  0x44   :  { %v3736_v11 = vcombine.high %v510_v8, %v514_v9  ;;  %v630_v12 = vld [vmem:[#allocation2 + $0x3c0] sm:$0xff]  ;;  %v3735_v14 = vcombine.low %v510_v8, %v514_v9 }
  0x45   :  { %382 = vmatpush1.bf16.msra.mxu1 %v4273_v36  ;;  %1327 = vmatpush1.bf16.msra.mxu0 %v3767_v61  ;;  %v634_v13 = vld [vmem:[#allocation2 + $0x3e0] sm:$0xff]  ;;  %v543_v61 = vld [vmem:[#allocation2 + $0x108] sm:$0xff] }
  0x46   :  { %383 = vmatprep.subr.bf16.mxu1 %v4274_v37  ;;  %1328 = vmatprep.subr.bf16.mxu0 %v3760_v62  ;;  %v3856_v15 = vcombine.high %v630_v12, %v634_v13  ;;  %v622_v16 = vld [vmem:[#allocation2 + $0x380] sm:$0xff]  ;;  %v3855_v18 = vcombine.low %v630_v12, %v634_v13  ;;  %v547_v62 = vld [vmem:[#allocation2 + $0x128] sm:$0xff] }
  0x47   :  { %4136 = vmatmul.mubr.msk.bf16.gmra.mxu0 %vm127_vm2, %v109_v25  ;;  %v626_v17 = vld [vmem:[#allocation2 + $0x3a0] sm:$0xff]  ;;  %v3770_v5 = vcombine.high %v543_v61, %v547_v62  ;;  %v527_v12 = vld [vmem:[#allocation2 + $0x88] sm:$0xff] }
  0x48   :  { %4139 = vmatprep.mubr.msk.bf16.mxu0 %vm4593_vm0, %v4592_v0  ;;  %v3848_v19 = vcombine.high %v622_v16, %v626_v17  ;;  %v614_v20 = vld [vmem:[#allocation2 + $0x340] sm:$0xff]  ;;  %v3847_v22 = vcombine.low %v622_v16, %v626_v17  ;;  %v531_v13 = vld [vmem:[#allocation2 + $0xa8] sm:$0xff] }
  0x49   :  { %384 = vmatpush1.bf16.msra.mxu1 %v4276_v38  ;;  %1329 = vmatpush1.bf16.msra.mxu0 %v3759_v2  ;;  %v618_v21 = vld [vmem:[#allocation2 + $0x360] sm:$0xff]  ;;  %v3777_v2 = vcombine.low %v551_v53, %v555_v54 }
  0x4a   :  { %1421 = vmatprep.subr.bf16.mxu1 %v3794_v49  ;;  %1330 = vmatprep.subr.bf16.mxu0 %v3752_v3  ;;  %v3840_v23 = vcombine.high %v614_v20, %v618_v21  ;;  %v606_v24 = vld [vmem:[#allocation2 + $0x300] sm:$0xff]  ;;  %v3839_v26 = vcombine.low %v614_v20, %v618_v21  ;;  %v519_v21 = vld [vmem:[#allocation2 + $0x48] sm:$0xff] }
  0x4b   :  { %v610_v25 = vld [vmem:[#allocation2 + $0x320] sm:$0xff] }
  0x4c   :  { %v3832_v27 = vcombine.high %v606_v24, %v610_v25  ;;  %v602_v29 = vld [vmem:[#allocation2 + $0x2e0] sm:$0xff]  ;;  %v3831_v30 = vcombine.low %v606_v24, %v610_v25  ;;  %v3753_v24 = vcombine.low %v527_v12, %v531_v13 }
  0x4d   :  { %1331 = vmatpush1.bf16.msra.mxu0 %v3751_v6 }
  0x4e   :  { %1332 = vmatprep.subr.bf16.mxu0 %v3744_v7  ;;  %v3769_v7 = vcombine.low %v543_v61, %v547_v62  ;;  %v619_v61 = vld [vmem:[#allocation2 + $0x368] sm:$0xff] }
  0x4f   :  { %4140 = vmatmul.mubr.msk.bf16.gmra.mxu0 %vm127_vm2, %v110_v28  ;;  %v598_v28 = vld [vmem:[#allocation2 + $0x2c0] sm:$0xff] }
  0x50   :  { %4143 = vmatprep.mubr.msk.bf16.mxu0 %vm4593_vm0, %v4592_v0  ;;  %v3823_v32 = vcombine.low %v598_v28, %v602_v29 }
  0x51   :  { %1333 = vmatpush1.bf16.msra.mxu0 %v3743_v10 }
  0x52   :  { %1334 = vmatprep.subr.bf16.mxu0 %v3736_v11 }
  0x55   :  { %1335 = vmatpush1.bf16.msra.mxu0 %v3735_v14 }
  0x56   :  { %1336 = vmatprep.subr.bf16.mxu0 %v3856_v15 }
  0x57   :  { %4144 = vmatmul.mubr.msk.bf16.gmra.mxu0 %vm127_vm2, %v111_v31  ;;  %v3824_v31 = vcombine.high %v598_v28, %v602_v29  ;;  %v511_v29 = vld [vmem:[#allocation2 + $0x8] sm:$0xff] }
  0x58   :  { %4147 = vmatprep.mubr.msk.bf16.mxu0 %vm4593_vm0, %v4592_v0 }
  0x59   :  { %1337 = vmatpush2.bf16.msra.mxu0 %v3855_v18 }
  0x5a   :  { %1338 = vmatprep.subr.bf16.mxu0 %v3848_v19  ;;  %v3754_v19 = vcombine.high %v527_v12, %v531_v13  ;;  %v603_v12 = vld [vmem:[#allocation2 + $0x2e8] sm:$0xff] }
  0x5d   :  { %1339 = vmatpush2.bf16.msra.mxu0 %v3847_v22  ;;  %v523_v22 = vld [vmem:[#allocation2 + $0x68] sm:$0xff] }
  0x5e   :  { %1340 = vmatprep.subr.bf16.mxu0 %v3840_v23 }
  0x5f   :  { %4148 = vmatmul.mubr.msk.bf16.gmra.mxu0 %vm127_vm2, %v112_v33  ;;  %v4812_v33 = vld [vmem:[%s5390_s2] ss:$0 sm:$0xff] }
  0x61   :  { %1341 = vmatpush2.bf16.msra.mxu0 %v3839_v26 }
  0x62   :  { %1342 = vmatprep.subr.bf16.mxu0 %v3832_v27  ;;  %v3746_v27 = vcombine.high %v519_v21, %v523_v22 }
  0x65   :  { %1343 = vmatpush2.bf16.msra.mxu0 %v3831_v30  ;;  %v515_v30 = vld [vmem:[#allocation2 + $0x28] sm:$0xff] }
  0x66   :  { %1344 = vmatprep.subr.bf16.mxu0 %v3824_v31 }
  0x69   :  { %1345 = vmatpush2.bf16.msra.mxu0 %v3823_v32 }
  0xef   :  { %v187_v34 = vpop.f32.mrf.mxu0 }
  0xf0   :  { %v188_v36 = vadd.f32 %v4812_v33, %v187_v34  ;;  %v3745_v34 = vcombine.low %v519_v21, %v523_v22  ;;  %v591_v21 = vld [vmem:[#allocation2 + $0x288] sm:$0xff] }
  0xf1   :  { %v4125_v35 = vpop.f32.mrf.mxu0 }
  0xf2   :  { %v241_v44 = vmax.f32 %v188_v36, 0.0 }
  0xf3   :  { %v190_v37 = vpop.f32.mrf.mxu0 }
  0xf4   :  { %v191_v38 = vadd.f32 %v4812_v33, %v190_v37  ;;  %v3738_v37 = vcombine.high %v511_v29, %v515_v30 }
  0xf5   :  { %v4126_v40 = vpop.f32.mrf.mxu0 }
  0xf6   :  { %v242_v46 = vmax.f32 %v191_v38, 0.0  ;;  %v631_v40 = vld [vmem:[#allocation2 + $0x3c8] sm:$0xff] }
  0xf7   :  { %v195_v47 = vpop.f32.mrf.mxu0 }
  0xf8   :  { %v254_v49 = vpack.c.bf16 %v242_v46, %v241_v44  ;;  %v196_v50 = vadd.f32 %v4812_v33, %v195_v47  ;;  %v3737_v44 = vcombine.low %v511_v29, %v515_v30  ;;  %v587_v30 = vld [vmem:[#allocation2 + $0x268] sm:$0xff] }
  0xf9   :  { %v4129_v52 = vpop.f32.mrf.mxu0 }
  0xfa   :  { %402 = vmatmul.mubr.bf16.vlgmr.msra.gmra.mxu1 %v254_v49  ;;  %v243_v57 = vmax.f32 %v196_v50, 0.0  ;;  %v3858_v49 = vcombine.high %v631_v40, %v635_v41  ;;  %v627_v52 = vld [vmem:[#allocation2 + $0x3a8] sm:$0xff] }
  0xfb   :  { %v198_v55 = vpop.f32.mrf.mxu0  ;;  %411 = vmatprep.mubr.bf16.mxu1 %v4594_v39  ;;  %1422 = vmatpush1.bf16.msra.mxu1 %v3793_v48  ;;  %v539_v48 = vld [vmem:[#allocation2 + $0xe8] sm:$0xff] }
  0xfc   :  { %v199_v58 = vadd.f32 %v4812_v33, %v198_v55  ;;  %1423 = vmatprep.subr.bf16.mxu1 %v3786_v51  ;;  %v3762_v10 = vcombine.high %v535_v45, %v539_v48  ;;  %v3761_v16 = vcombine.low %v535_v45, %v539_v48  ;;  %v623_v51 = vld [vmem:[#allocation2 + $0x388] sm:$0xff]  ;;  %v3857_v55 = vcombine.low %v631_v40, %v635_v41 }
  0xfd   :  { %v4130_v60 = vpop.f32.mrf.mxu0  ;;  %v579_v40 = vld [vmem:[#allocation2 + $0x228] sm:$0xff] }
  0xfe   :  { %v244_v63 = vmax.f32 %v199_v58, 0.0  ;;  %v3850_v58 = vcombine.high %v623_v51, %v627_v52  ;;  %v615_v60 = vld [vmem:[#allocation2 + $0x348] sm:$0xff] }
  0xff   :  { %v203_v1 = vpop.f32.mrf.mxu0  ;;  %1424 = vmatpush1.bf16.msra.mxu1 %v3785_v56 }
 0x100   :  { %v255_v3 = vpack.c.bf16 %v244_v63, %v243_v57  ;;  %v204_v4 = vadd.f32 %v4812_v33, %v203_v1  ;;  %1425 = vmatprep.subr.bf16.mxu1 %v3778_v59  ;;  %v3849_v63 = vcombine.low %v623_v51, %v627_v52  ;;  %v573_v51 = vld [vmem:[#allocation2 + $0x1f8] sm:$0xff] }
 0x101   :  { %v4133_v42 = vpop.f32.mrf.mxu0 }
 0x102   :  { %412 = vmatmul.mubr.bf16.gmra.mxu1 %v255_v3  ;;  %v245_v8 = vmax.f32 %v204_v4, 0.0  ;;  %v3842_v3 = vcombine.high %v615_v60, %v619_v61  ;;  %v611_v42 = vld [vmem:[#allocation2 + $0x328] sm:$0xff] }
 0x103   :  { %v206_v6 = vpop.f32.mrf.mxu0  ;;  %421 = vmatprep.mubr.bf16.mxu1 %v4594_v39  ;;  %1426 = vmatpush1.bf16.msra.mxu1 %v3777_v2 }
 0x104   :  { %v207_v9 = vadd.f32 %v4812_v33, %v206_v6  ;;  %1427 = vmatprep.subr.bf16.mxu1 %v3770_v5  ;;  %v607_v5 = vld [vmem:[#allocation2 + $0x308] sm:$0xff]  ;;  %v3841_v6 = vcombine.low %v615_v60, %v619_v61 }
 0x105   :  { %v4134_v11 = vpop.f32.mrf.mxu0 }
 0x106   :  { %v246_v14 = vmax.f32 %v207_v9, 0.0  ;;  %v3834_v9 = vcombine.high %v607_v5, %v611_v42  ;;  %v599_v11 = vld [vmem:[#allocation2 + $0x2c8] sm:$0xff] }
 0x107   :  { %v211_v15 = vpop.f32.mrf.mxu0  ;;  %1428 = vmatpush1.bf16.msra.mxu1 %v3769_v7 }
 0x108   :  { %v256_v17 = vpack.c.bf16 %v246_v14, %v245_v8  ;;  %v212_v18 = vadd.f32 %v4812_v33, %v211_v15  ;;  %1429 = vmatprep.subr.bf16.mxu1 %v3762_v10  ;;  %v3833_v15 = vcombine.low %v607_v5, %v611_v42 }
 0x109   :  { %v4137_v20 = vpop.f32.mrf.mxu0 }
 0x10a   :  { %422 = vmatmul.mubr.bf16.gmra.mxu1 %v256_v17  ;;  %v247_v25 = vmax.f32 %v212_v18, 0.0  ;;  %v594_v20 = vld [vmem:[#allocation2 + $0x2a0] sm:$0xff] }
 0x10b   :  { %v214_v23 = vpop.f32.mrf.mxu0  ;;  %431 = vmatprep.mubr.bf16.mxu1 %v4594_v39  ;;  %1430 = vmatpush1.bf16.msra.mxu1 %v3761_v16  ;;  %v3826_v16 = vcombine.high %v599_v11, %v603_v12 }
 0x10c   :  { %v215_v26 = vadd.f32 %v4812_v33, %v214_v23  ;;  %1431 = vmatprep.subr.bf16.mxu1 %v3754_v19  ;;  %v3825_v19 = vcombine.low %v599_v11, %v603_v12  ;;  %v595_v23 = vld [vmem:[#allocation2 + $0x2a8] sm:$0xff]  ;;  %v565_v11 = vld [vmem:[#allocation2 + $0x1b8] sm:$0xff] }
 0x10d   :  { %v4138_v28 = vpop.f32.mrf.mxu0 }
 0x10e   :  { %v248_v31 = vmax.f32 %v215_v26, 0.0  ;;  %v3818_v26 = vcombine.high %v591_v21, %v595_v23  ;;  %v583_v28 = vld [vmem:[#allocation2 + $0x248] sm:$0xff] }
 0x10f   :  { %v219_v32 = vpop.f32.mrf.mxu0  ;;  %1432 = vmatpush1.bf16.msra.mxu1 %v3753_v24 }
 0x110   :  { %v257_v35 = vpack.c.bf16 %v248_v31, %v247_v25  ;;  %v220_v36 = vadd.f32 %v4812_v33, %v219_v32  ;;  %1433 = vmatprep.subr.bf16.mxu1 %v3746_v27  ;;  %v3817_v25 = vcombine.low %v591_v21, %v595_v23  ;;  %v586_v27 = vld [vmem:[#allocation2 + $0x260] sm:$0xff]  ;;  %v3809_v32 = vcombine.low %v583_v28, %v587_v30  ;;  %v553_v23 = vld [vmem:[#allocation2 + $0x158] sm:$0xff] }
 0x111   :  { %v4141_v38 = vpop.f32.mrf.mxu0 }
 0x112   :  { %432 = vmatmul.mubr.bf16.gmra.mxu1 %v257_v35  ;;  %v249_v46 = vmax.f32 %v220_v36, 0.0  ;;  %v574_v35 = vld [vmem:[#allocation2 + $0x200] sm:$0xff] }
 0x113   :  { %v222_v43 = vpop.f32.mrf.mxu0  ;;  %441 = vmatprep.mubr.bf16.mxu1 %v4594_v39  ;;  %1434 = vmatpush1.bf16.msra.mxu1 %v3745_v34  ;;  %v3810_v34 = vcombine.high %v583_v28, %v587_v30  ;;  %v578_v36 = vld [vmem:[#allocation2 + $0x220] sm:$0xff] }
 0x114   :  { %v223_v47 = vadd.f32 %v4812_v33, %v222_v43  ;;  %1435 = vmatprep.subr.bf16.mxu1 %v3738_v37  ;;  %v575_v37 = vld [vmem:[#allocation2 + $0x208] sm:$0xff]  ;;  %v3800_v38 = vcombine.high %v574_v35, %v578_v36  ;;  %v3799_v41 = vcombine.low %v574_v35, %v578_v36  ;;  %v548_v35 = vld [vmem:[#allocation2 + $0x130] sm:$0xff] }
 0x115   :  { %v4142_v50 = vpop.f32.mrf.mxu0  ;;  %v3801_v43 = vcombine.low %v575_v37, %v579_v40 }
 0x116   :  { %v250_v53 = vmax.f32 %v223_v47, 0.0  ;;  %v572_v47 = vld [vmem:[#allocation2 + $0x1f0] sm:$0xff] }
 0x117   :  { %v227_v54 = vpop.f32.mrf.mxu0  ;;  %1436 = vmatpush1.bf16.msra.mxu1 %v3737_v44  ;;  %v3802_v44 = vcombine.high %v575_v37, %v579_v40  ;;  %v549_v40 = vld [vmem:[#allocation2 + $0x138] sm:$0xff] }
 0x118   :  { %v258_v56 = vpack.c.bf16 %v250_v53, %v249_v46  ;;  %v228_v57 = vadd.f32 %v4812_v33, %v227_v54  ;;  %1437 = vmatprep.subr.bf16.mxu1 %v3858_v49  ;;  %v568_v46 = vld [vmem:[#allocation2 + $0x1d0] sm:$0xff]  ;;  %v569_v49 = vld [vmem:[#allocation2 + $0x1d8] sm:$0xff] }
 0x119   :  { %v4145_v59 = vpop.f32.mrf.mxu0  ;;  %v3796_v50 = vcombine.high %v568_v46, %v572_v47  ;;  %v3795_v52 = vcombine.low %v568_v46, %v572_v47  ;;  %v3797_v53 = vcombine.low %v569_v49, %v573_v51  ;;  %v3798_v54 = vcombine.high %v569_v49, %v573_v51 }
 0x11a   :  { %442 = vmatmul.mubr.bf16.gmra.mxu1 %v258_v56  ;;  %v251_v1 = vmax.f32 %v228_v57, 0.0  ;;  %v277_v59 = vld [vmem:[%s5392_s4] sm:$0x3] }
 0x11b   :  { %v230_v62 = vpop.f32.mrf.mxu0  ;;  %451 = vmatprep.mubr.bf16.mxu1 %v4594_v39  ;;  %1438 = vmatpush2.bf16.msra.mxu1 %v3857_v55  ;;  %v279_v55 = vlaneseq }
 0x11c   :  { %v231_v2 = vadd.f32 %v4812_v33, %v230_v62  ;;  %1439 = vmatprep.subr.bf16.mxu1 %v3850_v58 }
 0x11d   :  { %v4146_v4 = vpop.f32.mrf.mxu0  ;;  %v4836_v56 = vshrl.u32 %v279_v55, 7 }
 0x11e   :  { %v252_v45 = vmax.f32 %v231_v2, 0.0 }
 0x11f   :  { %v235_v48 = vpop.f32.mrf.mxu0  ;;  %1440 = vmatpush2.bf16.msra.mxu1 %v3849_v63  ;;  %v4839_v57 = vsub.s32 1, %v4836_v56  ;;  %v4842_v58 = vsub.s32 0, %v4836_v56 }
 0x120   :  { %v259_v7 = vpack.c.bf16 %v252_v45, %v251_v1  ;;  %v236_v8 = vadd.f32 %v4812_v33, %v235_v48  ;;  %1441 = vmatprep.subr.bf16.mxu1 %v3842_v3  ;;  %v590_v33 = vld [vmem:[#allocation2 + $0x280] sm:$0xff] }
 0x121   :  { %v4149_v10 = vpop.f32.mrf.mxu0  ;;  %v3816_v22 = vcombine.high %v590_v33, %v594_v20  ;;  %v3815_v24 = vcombine.low %v590_v33, %v594_v20  ;;  %v4848_v61 = vrot.slane %v277_v59, %v4839_v57  ;;  %v4851_v62 = vrot.slane %v277_v59, %v4842_v58  ;;  %v552_v33 = vld [vmem:[#allocation2 + $0x150] sm:$0xff] }
 0x122   :  { %452 = vmatmul.mubr.bf16.gmra.mxu1 %v259_v7  ;;  %v253_v13 = vmax.f32 %v236_v8, 0.0  ;;  %v561_v10 = vld [vmem:[#allocation2 + $0x198] sm:$0xff]  ;;  %v540_v59 = vld [vmem:[#allocation2 + $0xf0] sm:$0xff] }
 0x123   :  { %v238_v14 = vpop.f32.mrf.mxu0  ;;  %461 = vmatprep.mubr.bf16.mxu1 %v4594_v39  ;;  %1442 = vmatpush2.bf16.msra.mxu1 %v3841_v6  ;;  %v582_v39 = vld [vmem:[#allocation2 + $0x240] sm:$0xff]  ;;  %v560_v6 = vld [vmem:[#allocation2 + $0x190] sm:$0xff] }
 0x124   :  { %1443 = vmatprep.subr.bf16.mxu1 %v3834_v9  ;;  %v260_v18 = vpack.c.bf16 %v253_v13, %v253_v13  ;;  %1346 = vmatprep.subr.bf16.mxu0 %v3816_v22  ;;  %v3808_v29 = vcombine.high %v582_v39, %v586_v27  ;;  %v3807_v31 = vcombine.low %v582_v39, %v586_v27  ;;  %v564_v9 = vld [vmem:[#allocation2 + $0x1b0] sm:$0xff] }
 0x125   :  { %v4150_v17 = vpop.f32.mrf.mxu0  ;;  %1347 = vmatpush2.bf16.msra.mxu0 %v3815_v24  ;;  %v556_v22 = vld [vmem:[#allocation2 + $0x170] sm:$0xff]  ;;  %v557_v24 = vld [vmem:[#allocation2 + $0x178] sm:$0xff]  ;;  %v3787_v39 = vcombine.low %v560_v6, %v564_v9  ;;  %v3789_v27 = vcombine.low %v561_v10, %v565_v11 }
 0x126   :  { %1348 = vmatprep.subr.bf16.mxu0 %v3808_v29  ;;  %v3781_v46 = vcombine.low %v553_v23, %v557_v24 }
 0x127   :  { %1444 = vmatpush2.bf16.msra.mxu1 %v3833_v15 }
 0x128   :  { %1445 = vmatprep.subr.bf16.mxu1 %v3826_v16 }
 0x129   :  { %1349 = vmatpush2.bf16.msra.mxu0 %v3807_v31  ;;  %v3780_v31 = vcombine.high %v552_v33, %v556_v22 }
 0x12a   :  { %462 = vmatmul.mubr.bf16.gmra.mxu1 %v260_v18  ;;  %1350 = vmatprep.subr.bf16.mxu0 %v3800_v38  ;;  %v3788_v18 = vcombine.high %v560_v6, %v564_v9  ;;  %v545_v38 = vld [vmem:[#allocation2 + $0x118] sm:$0xff] }
 0x12b   :  { %1446 = vmatpush2.bf16.msra.mxu1 %v3825_v19  ;;  %v3790_v19 = vcombine.high %v561_v10, %v565_v11  ;;  %v529_v11 = vld [vmem:[#allocation2 + $0x98] sm:$0xff] }
 0x12c   :  { %1447 = vmatprep.subr.bf16.mxu1 %v3818_v26 }
 0x12d   :  { %1351 = vmatpush2.bf16.msra.mxu0 %v3799_v41 }
 0x12e   :  { %1522 = vmatprep.subr.bf16.mxu0 %v3796_v50 }
 0x12f   :  { %1448 = vmatpush2.bf16.msra.mxu1 %v3817_v25 }
 0x130   :  { %1449 = vmatprep.subr.bf16.mxu1 %v3810_v34  ;;  %v544_v34 = vld [vmem:[#allocation2 + $0x110] sm:$0xff] }
 0x131   :  { %v3772_v47 = vcombine.high %v544_v34, %v548_v35 }
 0x133   :  { %1450 = vmatpush2.bf16.msra.mxu1 %v3809_v32  ;;  %v3782_v32 = vcombine.high %v553_v23, %v557_v24  ;;  %v520_v23 = vld [vmem:[#allocation2 + $0x50] sm:$0xff] }
 0x134   :  { %1451 = vmatprep.subr.bf16.mxu1 %v3802_v44 }
 0x137   :  { %1452 = vmatpush2.bf16.msra.mxu1 %v3801_v43  ;;  %v3779_v43 = vcombine.low %v552_v33, %v556_v22 }
 0x138   :  { %1623 = vmatprep.subr.bf16.mxu1 %v3798_v54 }
 0x1ba   :  { %v403_v60 = vpop.f32.mrf.mxu1 }
 0x1bb   :  { %v404_v4 = vadd.f32 %v403_v60, %v4851_v62  ;;  %v537_v60 = vld [vmem:[#allocation2 + $0xd8] sm:$0xff] }
 0x1bc   :  { %v405_v63 = vpop.f32.mrf.mxu1 }
 0x1bd   :  { %v406_v2 = vadd.f32 %v405_v63, %v4848_v61  ;;  %v470_v12 = vmax.f32 %v404_v4, 0.0  ;;  %v541_v63 = vld [vmem:[#allocation2 + $0xf8] sm:$0xff]  ;;  %v3773_v4 = vcombine.low %v545_v38, %v549_v40 }
 0x1be   :  { %v407_v1 = vpop.f32.mrf.mxu1  ;;  %v3766_v6 = vcombine.high %v537_v60, %v541_v63 }
 0x1bf   :  { %v408_v3 = vadd.f32 %v407_v1, %v4851_v62  ;;  %v471_v7 = vmax.f32 %v406_v2, 0.0 }
 0x1c0   :  { %v409_v5 = vpop.f32.mrf.mxu1 }
 0x1c1   :  { %v410_v42 = vadd.f32 %v409_v5, %v4848_v61  ;;  %v472_v45 = vmax.f32 %v408_v3, 0.0  ;;  %v3771_v3 = vcombine.low %v544_v34, %v548_v35 }
 0x1c2   :  { %v413_v48 = vpop.f32.mrf.mxu1 }
 0x1c3   :  { %v473_v8 = vmax.f32 %v410_v42, 0.0  ;;  %v4859_v15 = vpack.c.bf16 %v472_v45, %v470_v12  ;;  %v414_v16 = vadd.f32 %v413_v48, %v4851_v62  ;;  %v533_v12 = vld [vmem:[#allocation2 + $0xb8] sm:$0xff] }
 0x1c4   :  { %v415_v13 = vpop.f32.mrf.mxu1  ;;  %v3758_v22 = vcombine.high %v529_v11, %v533_v12 }
 0x1c5   :  { %v4857_v14 = vpack.c.bf16 %v473_v8, %v471_v7  ;;  %v416_v20 = vadd.f32 %v415_v13, %v4848_v61  ;;  %v474_v28 = vmax.f32 %v414_v16, 0.0  ;;  %v528_v7 = vld [vmem:[#allocation2 + $0x90] sm:$0xff] }
 0x1c6   :  { %v417_v17 = vpop.f32.mrf.mxu1  ;;  %v532_v8 = vld [vmem:[#allocation2 + $0xb0] sm:$0xff] }
 0x1c7   :  { %v418_v21 = vadd.f32 %v417_v17, %v4851_v62  ;;  %1352 = vmatprep.mubr.bf16.mxu0 %v4857_v14  ;;  %1453 = vmatprep.mubr.bf16.mxu1 %v4857_v14  ;;  %v475_v36 = vmax.f32 %v416_v20, 0.0 }
 0x1c8   :  { %v419_v25 = vpop.f32.mrf.mxu1  ;;  %1353 = vmatmul.mubr.bf16.vlgmr.msra.gmra.mxu0 %v4859_v15  ;;  %1454 = vmatmul.mubr.bf16.vlgmr.msra.gmra.mxu1 %v4859_v15 }
 0x1c9   :  { %v420_v26 = vadd.f32 %v419_v25, %v4848_v61  ;;  %1523 = vmatpush1.bf16.msra.mxu0 %v3795_v52  ;;  %1624 = vmatpush1.bf16.msra.mxu1 %v3797_v53  ;;  %v476_v29 = vmax.f32 %v418_v21, 0.0  ;;  %v3774_v52 = vcombine.high %v545_v38, %v549_v40  ;;  %v536_v53 = vld [vmem:[#allocation2 + $0xd0] sm:$0xff] }
 0x1ca   :  { %v423_v30 = vpop.f32.mrf.mxu1  ;;  %1524 = vmatprep.subr.bf16.mxu0 %v3788_v18  ;;  %1625 = vmatprep.subr.bf16.mxu1 %v3790_v19  ;;  %v3764_v48 = vcombine.high %v536_v53, %v540_v59  ;;  %v3763_v16 = vcombine.low %v536_v53, %v540_v59  ;;  %v3765_v18 = vcombine.low %v537_v60, %v541_v63  ;;  %v512_v38 = vld [vmem:[#allocation2 + $0x10] sm:$0xff] }
 0x1cb   :  { %v477_v37 = vmax.f32 %v420_v26, 0.0  ;;  %v4871_v49 = vpack.c.bf16 %v476_v29, %v474_v28  ;;  %v424_v50 = vadd.f32 %v423_v30, %v4851_v62  ;;  %v3756_v19 = vcombine.high %v528_v7, %v532_v8  ;;  %v524_v26 = vld [vmem:[#allocation2 + $0x70] sm:$0xff] }
 0x1cc   :  { %v425_v41 = vpop.f32.mrf.mxu1  ;;  %v3755_v30 = vcombine.low %v528_v7, %v532_v8  ;;  %v516_v40 = vld [vmem:[#allocation2 + $0x30] sm:$0xff] }
 0x1cd   :  { %v4869_v44 = vpack.c.bf16 %v477_v37, %v475_v36  ;;  %1525 = vmatpush1.bf16.msra.mxu0 %v3787_v39  ;;  %1626 = vmatpush1.bf16.msra.mxu1 %v3789_v27  ;;  %v426_v54 = vadd.f32 %v425_v41, %v4848_v61  ;;  %v478_v5 = vmax.f32 %v424_v50, 0.0  ;;  %v521_v39 = vld [vmem:[#allocation2 + $0x58] sm:$0xff]  ;;  %v3748_v36 = vcombine.high %v520_v23, %v524_v26 }
 0x1ce   :  { %v427_v51 = vpop.f32.mrf.mxu1  ;;  %1526 = vmatprep.subr.bf16.mxu0 %v3780_v31  ;;  %1627 = vmatprep.subr.bf16.mxu1 %v3782_v32  ;;  %v525_v27 = vld [vmem:[#allocation2 + $0x78] sm:$0xff]  ;;  %v3757_v31 = vcombine.low %v529_v11, %v533_v12 }
 0x1cf   :  { %v428_v55 = vadd.f32 %v427_v51, %v4851_v62  ;;  %1362 = vmatprep.mubr.bf16.mxu0 %v4869_v44  ;;  %1463 = vmatprep.mubr.bf16.mxu1 %v4869_v44  ;;  %v479_v9 = vmax.f32 %v426_v54, 0.0  ;;  %v3750_v37 = vcombine.high %v521_v39, %v525_v27  ;;  %v3747_v51 = vcombine.low %v520_v23, %v524_v26 }
 0x1d0   :  { %v429_v1 = vpop.f32.mrf.mxu1  ;;  %1363 = vmatmul.mubr.bf16.gmra.mxu0 %v4871_v49  ;;  %1464 = vmatmul.mubr.bf16.gmra.mxu1 %v4871_v49  ;;  %v3749_v53 = vcombine.low %v521_v39, %v525_v27  ;;  %v3740_v54 = vcombine.high %v512_v38, %v516_v40 }
 0x1d1   :  { %v430_v2 = vadd.f32 %v429_v1, %v4848_v61  ;;  %1527 = vmatpush1.bf16.msra.mxu0 %v3779_v43  ;;  %1628 = vmatpush1.bf16.msra.mxu1 %v3781_v46  ;;  %v480_v42 = vmax.f32 %v428_v55, 0.0  ;;  %v513_v46 = vld [vmem:[#allocation2 + $0x18] sm:$0xff]  ;;  %v632_v1 = vld [vmem:[#allocation2 + $0x3d0] sm:$0xff] }
 0x1d2   :  { %v433_v45 = vpop.f32.mrf.mxu1  ;;  %1528 = vmatprep.subr.bf16.mxu0 %v3772_v47  ;;  %1629 = vmatprep.subr.bf16.mxu1 %v3774_v52  ;;  %v517_v47 = vld [vmem:[#allocation2 + $0x38] sm:$0xff] }
 0x1d3   :  { %v481_v10 = vmax.f32 %v430_v2, 0.0  ;;  %v4883_v33 = vpack.c.bf16 %v480_v42, %v478_v5  ;;  %v434_v20 = vadd.f32 %v433_v45, %v4851_v62  ;;  %v3742_v63 = vcombine.high %v513_v46, %v517_v47  ;;  %v633_v5 = vld [vmem:[#allocation2 + $0x3d8] sm:$0xff] }
 0x1d4   :  { %v435_v13 = vpop.f32.mrf.mxu1  ;;  %v637_v42 = vld [vmem:[#allocation2 + $0x3f8] sm:$0xff]  ;;  %v3741_v7 = vcombine.low %v513_v46, %v517_v47 }
 0x1d5   :  { %v4881_v17 = vpack.c.bf16 %v481_v10, %v479_v9  ;;  %1529 = vmatpush1.bf16.msra.mxu0 %v3771_v3  ;;  %1630 = vmatpush1.bf16.msra.mxu1 %v3773_v4  ;;  %v436_v24 = vadd.f32 %v435_v13, %v4848_v61  ;;  %v482_v32 = vmax.f32 %v434_v20, 0.0  ;;  %v636_v4 = vld [vmem:[#allocation2 + $0x3f0] sm:$0xff]  ;;  %v3862_v12 = vcombine.high %v633_v5, %v637_v42  ;;  %v625_v20 = vld [vmem:[#allocation2 + $0x398] sm:$0xff] }
 0x1d6   :  { %v437_v21 = vpop.f32.mrf.mxu1  ;;  %1530 = vmatprep.subr.bf16.mxu0 %v3764_v48  ;;  %1631 = vmatprep.subr.bf16.mxu1 %v3766_v6  ;;  %v3739_v6 = vcombine.low %v512_v38, %v516_v40  ;;  %v3860_v11 = vcombine.high %v632_v1, %v636_v4  ;;  %v624_v13 = vld [vmem:[#allocation2 + $0x390] sm:$0xff]  ;;  %v3859_v23 = vcombine.low %v632_v1, %v636_v4  ;;  %v613_v1 = vld [vmem:[#allocation2 + $0x338] sm:$0xff] }
 0x1d7   :  { %v438_v25 = vadd.f32 %v437_v21, %v4851_v62  ;;  %1372 = vmatprep.mubr.bf16.mxu0 %v4881_v17  ;;  %1473 = vmatprep.mubr.bf16.mxu1 %v4881_v17  ;;  %v483_v41 = vmax.f32 %v436_v24, 0.0  ;;  %v629_v21 = vld [vmem:[#allocation2 + $0x3b8] sm:$0xff] }
 0x1d8   :  { %v439_v28 = vpop.f32.mrf.mxu1  ;;  %1373 = vmatmul.mubr.bf16.gmra.mxu0 %v4883_v33  ;;  %1474 = vmatmul.mubr.bf16.gmra.mxu1 %v4883_v33 }
 0x1d9   :  { %v440_v29 = vadd.f32 %v439_v28, %v4848_v61  ;;  %1531 = vmatpush1.bf16.msra.mxu0 %v3763_v16  ;;  %1632 = vmatpush1.bf16.msra.mxu1 %v3765_v18  ;;  %v484_v34 = vmax.f32 %v438_v25, 0.0  ;;  %v628_v16 = vld [vmem:[#allocation2 + $0x3b0] sm:$0xff]  ;;  %v3861_v25 = vcombine.low %v633_v5, %v637_v42 }
 0x1da   :  { %v443_v35 = vpop.f32.mrf.mxu1  ;;  %1532 = vmatprep.subr.bf16.mxu0 %v3756_v19  ;;  %1633 = vmatprep.subr.bf16.mxu1 %v3758_v22  ;;  %v3852_v26 = vcombine.high %v624_v13, %v628_v16  ;;  %v3851_v40 = vcombine.low %v624_v13, %v628_v16 }
 0x1db   :  { %v485_v43 = vmax.f32 %v440_v29, 0.0  ;;  %v4895_v55 = vpack.c.bf16 %v484_v34, %v482_v32  ;;  %v444_v59 = vadd.f32 %v443_v35, %v4851_v62  ;;  %v3854_v29 = vcombine.high %v625_v20, %v629_v21  ;;  %v620_v34 = vld [vmem:[#allocation2 + $0x370] sm:$0xff]  ;;  %v617_v35 = vld [vmem:[#allocation2 + $0x358] sm:$0xff] }
 0x1dc   :  { %v445_v50 = vpop.f32.mrf.mxu1 }
 0x1dd   :  { %v4893_v52 = vpack.c.bf16 %v485_v43, %v483_v41  ;;  %1533 = vmatpush1.bf16.msra.mxu0 %v3755_v30  ;;  %1634 = vmatpush1.bf16.msra.mxu1 %v3757_v31  ;;  %v446_v2 = vadd.f32 %v445_v50, %v4848_v61  ;;  %v486_v8 = vmax.f32 %v444_v59, 0.0  ;;  %v616_v30 = vld [vmem:[#allocation2 + $0x350] sm:$0xff]  ;;  %v3853_v41 = vcombine.low %v625_v20, %v629_v21 }
 0x1de   :  { %v447_v60 = vpop.f32.mrf.mxu1  ;;  %1534 = vmatprep.subr.bf16.mxu0 %v3748_v36  ;;  %1635 = vmatprep.subr.bf16.mxu1 %v3750_v37  ;;  %v621_v36 = vld [vmem:[#allocation2 + $0x378] sm:$0xff]  ;;  %v3844_v50 = vcombine.high %v616_v30, %v620_v34 }
 0x1df   :  { %v448_v3 = vadd.f32 %v447_v60, %v4851_v62  ;;  %1382 = vmatprep.mubr.bf16.mxu0 %v4893_v52  ;;  %1483 = vmatprep.mubr.bf16.mxu1 %v4893_v52  ;;  %v487_v18 = vmax.f32 %v446_v2, 0.0  ;;  %v612_v60 = vld [vmem:[#allocation2 + $0x330] sm:$0xff]  ;;  %v3845_v42 = vcombine.low %v617_v35, %v621_v36 }
 0x1e0   :  { %v449_v45 = vpop.f32.mrf.mxu1  ;;  %1383 = vmatmul.mubr.bf16.gmra.mxu0 %v4895_v55  ;;  %1484 = vmatmul.mubr.bf16.gmra.mxu1 %v4895_v55 }
 0x1e1   :  { %v450_v48 = vadd.f32 %v449_v45, %v4848_v61  ;;  %1535 = vmatpush1.bf16.msra.mxu0 %v3747_v51  ;;  %1636 = vmatpush1.bf16.msra.mxu1 %v3749_v53  ;;  %v488_v9 = vmax.f32 %v448_v3, 0.0  ;;  %v3846_v51 = vcombine.high %v617_v35, %v621_v36  ;;  %v608_v53 = vld [vmem:[#allocation2 + $0x310] sm:$0xff]  ;;  %v3843_v3 = vcombine.low %v616_v30, %v620_v34  ;;  %v585_v35 = vld [vmem:[#allocation2 + $0x258] sm:$0xff] }
 0x1e2   :  { %v453_v10 = vpop.f32.mrf.mxu1  ;;  %1536 = vmatprep.subr.bf16.mxu0 %v3740_v54  ;;  %1637 = vmatprep.subr.bf16.mxu1 %v3742_v63  ;;  %v609_v63 = vld [vmem:[#allocation2 + $0x318] sm:$0xff]  ;;  %v584_v30 = vld [vmem:[#allocation2 + $0x250] sm:$0xff] }
 0x1e3   :  { %v489_v19 = vmax.f32 %v450_v48, 0.0  ;;  %v4907_v39 = vpack.c.bf16 %v488_v9, %v486_v8  ;;  %v454_v27 = vadd.f32 %v453_v10, %v4851_v62  ;;  %v3838_v8 = vcombine.high %v609_v63, %v613_v1  ;;  %v600_v9 = vld [vmem:[#allocation2 + $0x2d0] sm:$0xff]  ;;  %v589_v36 = vld [vmem:[#allocation2 + $0x278] sm:$0xff] }
 0x1e4   :  { %v455_v22 = vpop.f32.mrf.mxu1  ;;  %v604_v10 = vld [vmem:[#allocation2 + $0x2f0] sm:$0xff] }
 0x1e5   :  { %v4905_v24 = vpack.c.bf16 %v489_v19, %v487_v18  ;;  %1537 = vmatpush1.bf16.msra.mxu0 %v3739_v6  ;;  %1638 = vmatpush1.bf16.msra.mxu1 %v3741_v7  ;;  %v456_v31 = vadd.f32 %v455_v22, %v4848_v61  ;;  %v490_v43 = vmax.f32 %v454_v27, 0.0  ;;  %v3836_v7 = vcombine.high %v608_v53, %v612_v60  ;;  %v592_v22 = vld [vmem:[#allocation2 + $0x290] sm:$0xff]  ;;  %v597_v27 = vld [vmem:[#allocation2 + $0x2b8] sm:$0xff] }
 0x1e6   :  { %v457_v28 = vpop.f32.mrf.mxu1  ;;  %1538 = vmatprep.subr.bf16.mxu0 %v3860_v11  ;;  %1639 = vmatprep.subr.bf16.mxu1 %v3862_v12  ;;  %v601_v11 = vld [vmem:[#allocation2 + $0x2d8] sm:$0xff]  ;;  %v3835_v18 = vcombine.low %v608_v53, %v612_v60  ;;  %v3837_v19 = vcombine.low %v609_v63, %v613_v1  ;;  %v3828_v20 = vcombine.high %v600_v9, %v604_v10  ;;  %v588_v34 = vld [vmem:[#allocation2 + $0x270] sm:$0xff] }
 0x1e7   :  { %v458_v32 = vadd.f32 %v457_v28, %v4851_v62  ;;  %1392 = vmatprep.mubr.bf16.mxu0 %v4905_v24  ;;  %1493 = vmatprep.mubr.bf16.mxu1 %v4905_v24  ;;  %v491_v54 = vmax.f32 %v456_v31, 0.0  ;;  %v605_v12 = vld [vmem:[#allocation2 + $0x2f8] sm:$0xff]  ;;  %v3827_v28 = vcombine.low %v600_v9, %v604_v10  ;;  %v3813_v53 = vcombine.low %v585_v35, %v589_v36  ;;  %v4297_v10 = vld [vmem:[#allocation5 + $0x44] ss:$8 sps:$4 sm:$0xff]  }
 0x1e8   :  { %v459_v37 = vpop.f32.mrf.mxu1  ;;  %1393 = vmatmul.mubr.bf16.gmra.mxu0 %v4907_v39  ;;  %1494 = vmatmul.mubr.bf16.gmra.mxu1 %v4907_v39  ;;  %v3830_v21 = vcombine.high %v601_v11, %v605_v12  ;;  %v4279_v63 = vld [vmem:[#allocation5 + $0x74] ss:$8 sps:$4 sm:$0xff]   ;;  %v4289_v9 = vld [vmem:[#allocation5 + $0x50] ss:$8 sps:$4 sm:$0xff]  }
 0x1e9   :  { %v460_v38 = vadd.f32 %v459_v37, %v4848_v61  ;;  %1539 = vmatpush2.bf16.msra.mxu0 %v3859_v23  ;;  %1640 = vmatpush2.bf16.msra.mxu1 %v3861_v25  ;;  %v492_v46 = vmax.f32 %v458_v32, 0.0  ;;  %v596_v25 = vld [vmem:[#allocation2 + $0x2b0] sm:$0xff] }
 0x1ea   :  { %1540 = vmatprep.subr.bf16.mxu0 %v3852_v26  ;;  %1641 = vmatprep.subr.bf16.mxu1 %v3854_v29  ;;  %v463_v47 = vpop.f32.mrf.mxu1  ;;  %v593_v26 = vld [vmem:[#allocation2 + $0x298] sm:$0xff]  ;;  %v3829_v29 = vcombine.low %v601_v11, %v605_v12  ;;  %v3820_v31 = vcombine.high %v592_v22, %v596_v25  ;;  %v3819_v37 = vcombine.low %v592_v22, %v596_v25  ;;  %v4298_v11 = vld [vmem:[#allocation5 + $0x140] ss:$8 sps:$4 sm:$0xff]  }
 0x1eb   :  { %v493_v59 = vmax.f32 %v460_v38, 0.0  ;;  %v464_v2 = vadd.f32 %v463_v47, %v4851_v62  ;;  %v4921_v48 = vpack.c.bf16 %v492_v46, %v490_v43  ;;  %v3822_v32 = vcombine.high %v593_v26, %v597_v27  ;;  %v576_v43 = vld [vmem:[#allocation2 + $0x210] sm:$0xff]  ;;  %v577_v47 = vld [vmem:[#allocation2 + $0x218] sm:$0xff] }
 0x1ec   :  { %v465_v4 = vpop.f32.mrf.mxu1  ;;  %v3821_v38 = vcombine.low %v593_v26, %v597_v27  ;;  %v580_v46 = vld [vmem:[#allocation2 + $0x230] sm:$0xff]  ;;  %v4321_v27 = vld [vmem:[#allocation5 + $0x4] ss:$8 sps:$4 sm:$0xff]  }
 0x1ed   :  { %v4918_v5 = vpack.c.bf16 %v493_v59, %v491_v54  ;;  %1541 = vmatpush2.bf16.msra.mxu0 %v3851_v40  ;;  %1642 = vmatpush2.bf16.msra.mxu1 %v3853_v41  ;;  %v466_v45 = vadd.f32 %v465_v4, %v4848_v61  ;;  %v494_v13 = vmax.f32 %v464_v2, 0.0  ;;  %v3812_v40 = vcombine.high %v584_v30, %v588_v34  ;;  %v4282_v1 = vld [vmem:[#allocation5 + $0x174] ss:$8 sps:$4 sm:$0xff]   ;;  %v4277_v2 = vld [vmem:[#allocation5 + $0x70] ss:$8 sps:$4 sm:$0xff]  }
 0x1ee   :  { %1542 = vmatprep.subr.bf16.mxu0 %v3844_v50  ;;  %1643 = vmatprep.subr.bf16.mxu1 %v3846_v51  ;;  %v467_v6 = vpop.f32.mrf.mxu1  ;;  %v3814_v41 = vcombine.high %v585_v35, %v589_v36  ;;  %v581_v50 = vld [vmem:[#allocation2 + $0x238] sm:$0xff]  ;;  %v3811_v51 = vcombine.low %v584_v30, %v588_v34  ;;  %v3804_v54 = vcombine.high %v576_v43, %v580_v46  ;;  %v4285_v4 = vld [vmem:[#allocation5 + $0x64] ss:$8 sps:$4 sm:$0xff]   ;;  %v4334_v35 = vld [vmem:[#allocation5 + $0x1e0] ss:$8 sps:$4 sm:$0xff]  }
 0x1ef   :  { %1402 = vmatprep.mubr.bf16.mxu0 %v4918_v5  ;;  %1503 = vmatprep.mubr.bf16.mxu1 %v4918_v5  ;;  %v495_v62 = vmax.f32 %v466_v45, 0.0  ;;  %v4931_v23 = vpack.c.bf16 %v494_v13, %v494_v13  ;;  %v3806_v59 = vcombine.high %v577_v47, %v581_v50  ;;  %v3803_v60 = vcombine.low %v576_v43, %v580_v46  ;;  %v4283_v45 = vld [vmem:[#allocation5 + $0x60] ss:$8 sps:$4 sm:$0xff]   ;;  %v4303_v12 = vld [vmem:[#allocation5 + $0x34] ss:$8 sps:$4 sm:$0xff]  }
 0x1f0   :  { %1403 = vmatmul.mubr.bf16.gmra.mxu0 %v4921_v48  ;;  %1504 = vmatmul.mubr.bf16.gmra.mxu1 %v4921_v48  ;;  %v468_v61 = vpop.f32.mrf.mxu1  ;;  %v4286_v6 = vld [vmem:[#allocation5 + $0x160] ss:$8 sps:$4 sm:$0xff]   ;;  %v4306_v13 = vld [vmem:[#allocation5 + $0x134] ss:$8 sps:$4 sm:$0xff]   ;;  %v4313_v25 = vld [vmem:[#allocation5 + $0x10] ss:$8 sps:$4 sm:$0xff]  }
 0x1f1   :  { %v4927_v16 = vpack.c.bf16 %v495_v62, %v495_v62  ;;  %1543 = vmatpush2.bf16.msra.mxu0 %v3843_v3  ;;  %1644 = vmatpush2.bf16.msra.mxu1 %v3845_v42  ;;  %v4280_v3 = vld [vmem:[#allocation5 + $0x170] ss:$8 sps:$4 sm:$0xff]   ;;  %v4288_v42 = vld [vmem:[#allocation5 + $0x164] ss:$8 sps:$4 sm:$0xff]   ;;  %v4318_v22 = vld [vmem:[#allocation5 + $0x114] ss:$8 sps:$4 sm:$0xff]  }
 0x1f2   :  { %1544 = vmatprep.subr.bf16.mxu0 %v3836_v7  ;;  %1645 = vmatprep.subr.bf16.mxu1 %v3838_v8  ;;  %v4291_v7 = vld [vmem:[#allocation5 + $0x54] ss:$8 sps:$4 sm:$0xff]   ;;  %v4292_v62 = vld [vmem:[#allocation5 + $0x150] ss:$8 sps:$4 sm:$0xff]   ;;  %v4333_v34 = vld [vmem:[#allocation5 + $0xe4] ss:$8 sps:$4 sm:$0xff]  }
 0x1f3   :  { %1412 = vmatprep.mubr.bf16.mxu0 %v4927_v16  ;;  %1513 = vmatprep.mubr.bf16.mxu1 %v4927_v16  ;;  %v4294_v8 = vld [vmem:[#allocation5 + $0x154] ss:$8 sps:$4 sm:$0xff]   ;;  %v4301_v61 = vld [vmem:[#allocation5 + $0x30] ss:$8 sps:$4 sm:$0xff]   ;;  %v4346_v43 = vld [vmem:[#allocation5 + $0x1c0] ss:$8 sps:$4 sm:$0xff]  }
 0x1f4   :  { %v4316_v26 = vld [vmem:[#allocation5 + $0x110] ss:$8 sps:$4 sm:$0xff]   ;;  %v4330_v30 = vld [vmem:[#allocation5 + $0x1f4] ss:$8 sps:$4 sm:$0xff]  }
 0x1f5   :  { %1545 = vmatpush2.bf16.msra.mxu0 %v3835_v18  ;;  %1646 = vmatpush2.bf16.msra.mxu1 %v3837_v19  ;;  %v4304_v18 = vld [vmem:[#allocation5 + $0x130] ss:$8 sps:$4 sm:$0xff]   ;;  %v4309_v19 = vld [vmem:[#allocation5 + $0x24] ss:$8 sps:$4 sm:$0xff]   ;;  %v4339_v36 = vld [vmem:[#allocation5 + $0xd4] ss:$8 sps:$4 sm:$0xff]  }
 0x1f6   :  { %1546 = vmatprep.subr.bf16.mxu0 %v3828_v20  ;;  %1647 = vmatprep.subr.bf16.mxu1 %v3830_v21  ;;  %v4310_v20 = vld [vmem:[#allocation5 + $0x120] ss:$8 sps:$4 sm:$0xff]   ;;  %v4315_v21 = vld [vmem:[#allocation5 + $0x14] ss:$8 sps:$4 sm:$0xff]  }
 0x1f7   :  { %v4351_v46 = vld [vmem:[#allocation5 + $0xb4] ss:$8 sps:$4 sm:$0xff]  }
 0x1f8   :  { %1413 = vmatmul.mubr.bf16.gmra.mxu0 %v4931_v23  ;;  %1514 = vmatmul.mubr.bf16.gmra.mxu1 %v4931_v23 }
 0x1f9   :  { %1547 = vmatpush2.bf16.msra.mxu0 %v3827_v28  ;;  %1648 = vmatpush2.bf16.msra.mxu1 %v3829_v29  ;;  %v4322_v28 = vld [vmem:[#allocation5 + $0x100] ss:$8 sps:$4 sm:$0xff]   ;;  %v4327_v29 = vld [vmem:[#allocation5 + $0xf4] ss:$8 sps:$4 sm:$0xff]  }
 0x1fa   :  { %1554 = vmatprep.mubr.bf16.mxu0 %v4857_v14  ;;  %1655 = vmatprep.mubr.bf16.mxu1 %v4857_v14  ;;  %v3805_v14 = vcombine.low %v577_v47, %v581_v50  ;;  %v4354_v47 = vld [vmem:[#allocation5 + $0x1b4] ss:$8 sps:$4 sm:$0xff]   ;;  %v4349_v50 = vld [vmem:[#allocation5 + $0xb0] ss:$8 sps:$4 sm:$0xff]  }
 0x1fb   :  { %1548 = vmatprep.subr.bf16.mxu0 %v3820_v31  ;;  %1649 = vmatprep.subr.bf16.mxu1 %v3822_v32  ;;  %v4325_v31 = vld [vmem:[#allocation5 + $0xf0] ss:$8 sps:$4 sm:$0xff]  }
 0x1fc   :  { %v4328_v32 = vld [vmem:[#allocation5 + $0x1f0] ss:$8 sps:$4 sm:$0xff]  }
 0x1fd   :  { %1549 = vmatpush2.bf16.msra.mxu0 %v3819_v37  ;;  %1650 = vmatpush2.bf16.msra.mxu1 %v3821_v38  ;;  %v4342_v37 = vld [vmem:[#allocation5 + $0x1d4] ss:$8 sps:$4 sm:$0xff]   ;;  %v4337_v38 = vld [vmem:[#allocation5 + $0xd0] ss:$8 sps:$4 sm:$0xff]  }
 0x1fe   :  { %1550 = vmatprep.subr.bf16.mxu0 %v3812_v40  ;;  %1651 = vmatprep.subr.bf16.mxu1 %v3814_v41  ;;  %v4340_v40 = vld [vmem:[#allocation5 + $0x1d0] ss:$8 sps:$4 sm:$0xff]   ;;  %v4345_v41 = vld [vmem:[#allocation5 + $0xc4] ss:$8 sps:$4 sm:$0xff]  }
 0x201   :  { %1551 = vmatpush2.bf16.msra.mxu0 %v3811_v51  ;;  %1652 = vmatpush2.bf16.msra.mxu1 %v3813_v53  ;;  %v4352_v51 = vld [vmem:[#allocation5 + $0x1b0] ss:$8 sps:$4 sm:$0xff]   ;;  %v4357_v53 = vld [vmem:[#allocation5 + $0xa4] ss:$8 sps:$4 sm:$0xff]  }
 0x202   :  { %1552 = vmatprep.subr.bf16.mxu0 %v3804_v54  ;;  %1653 = vmatprep.subr.bf16.mxu1 %v3806_v59  ;;  %v4358_v54 = vld [vmem:[#allocation5 + $0x1a0] ss:$8 sps:$4 sm:$0xff]   ;;  %v4363_v59 = vld [vmem:[#allocation5 + $0x94] ss:$8 sps:$4 sm:$0xff]  }
 0x205   :  { %1553 = vmatpush2.bf16.msra.mxu0 %v3803_v60  ;;  %1654 = vmatpush2.bf16.msra.mxu1 %v3805_v14  ;;  %v4366_v60 = vld [vmem:[#allocation5 + $0x194] ss:$8 sps:$4 sm:$0xff]   ;;  %v4361_v14 = vld [vmem:[#allocation5 + $0x90] ss:$8 sps:$4 sm:$0xff]  }
 0x206   :  { %2664 = vmatprep.subr.bf16.mxu0 %v4279_v63  ;;  %2765 = vmatprep.subr.bf16.mxu1 %v4282_v1  ;;  %v4364_v63 = vld [vmem:[#allocation5 + $0x190] ss:$8 sps:$4 sm:$0xff]   ;;  %v4369_v1 = vld [vmem:[#allocation5 + $0x84] ss:$8 sps:$4 sm:$0xff]  }
 0x208   :  { %1555 = vmatmul.mubr.bf16.vlgmr.msra.gmra.mxu0 %v4859_v15  ;;  %1656 = vmatmul.mubr.bf16.vlgmr.msra.gmra.mxu1 %v4859_v15  ;;  %v4300_v15 = vld [vmem:[#allocation5 + $0x144] ss:$8 sps:$4 sm:$0xff]  }
 0x209   :  { %1564 = vmatprep.mubr.bf16.mxu0 %v4869_v44  ;;  %1665 = vmatprep.mubr.bf16.mxu1 %v4869_v44  ;;  %v4295_v44 = vld [vmem:[#allocation5 + $0x40] ss:$8 sps:$4 sm:$0xff]  }
 0x20a   :  { %2665 = vmatpush1.bf16.msra.mxu0 %v4277_v2  ;;  %2766 = vmatpush1.bf16.msra.mxu1 %v4280_v3  ;;  %v4372_v2 = vld [vmem:[#allocation5 + $0x184] ss:$8 sps:$4 sm:$0xff]   ;;  %v4367_v3 = vld [vmem:[#allocation5 + $0x80] ss:$8 sps:$4 sm:$0xff]  }
 0x20b   :  { %2666 = vmatprep.subr.bf16.mxu0 %v4285_v4  ;;  %2767 = vmatprep.subr.bf16.mxu1 %v4288_v42  ;;  %v4375_v4 = vld [vmem:[#allocation5 + $0x274] ss:$8 sps:$4 sm:$0xff]  }
 0x20c   :  { %v4378_v42 = vld [vmem:[#allocation5 + $0x374] ss:$8 sps:$4 sm:$0xff]  }
 0x20e   :  { %2667 = vmatpush1.bf16.msra.mxu0 %v4283_v45  ;;  %2768 = vmatpush1.bf16.msra.mxu1 %v4286_v6  ;;  %v654_v45 = vsub.s32 3, %v4836_v56  ;;  %v650_v6 = vsub.s32 2, %v4836_v56 }
 0x20f   :  { %2668 = vmatprep.subr.bf16.mxu0 %v4291_v7  ;;  %2769 = vmatprep.subr.bf16.mxu1 %v4294_v8  ;;  %v4968_v7 = vld [vmem:[%s5394_s6] sm:$0xff] }
 0x210   :  { %1565 = vmatmul.mubr.bf16.gmra.mxu0 %v4871_v49  ;;  %1666 = vmatmul.mubr.bf16.gmra.mxu1 %v4871_v49  ;;  %v4312_v49 = vld [vmem:[#allocation5 + $0x124] ss:$8 sps:$4 sm:$0xff]  }
 0x211   :  { %1574 = vmatprep.mubr.bf16.mxu0 %v4881_v17  ;;  %1675 = vmatprep.mubr.bf16.mxu1 %v4881_v17  ;;  %v4307_v17 = vld [vmem:[#allocation5 + $0x20] ss:$8 sps:$4 sm:$0xff]  }
 0x212   :  { %2669 = vmatpush1.bf16.msra.mxu0 %v4289_v9  ;;  %2770 = vmatpush1.bf16.msra.mxu1 %v4292_v62  ;;  %v4972_v62 = vrot.slane %v4968_v7, %v4839_v57 }
 0x213   :  { %2670 = vmatprep.subr.bf16.mxu0 %v4297_v10  ;;  %2771 = vmatprep.subr.bf16.mxu1 %v4300_v15  ;;  %v4975_v10 = vrot.slane %v4968_v7, %v654_v45  ;;  %v4979_v15 = vrot.slane %v4968_v7, %v4842_v58 }
 0x216   :  { %2671 = vmatpush1.bf16.msra.mxu0 %v4295_v44  ;;  %2772 = vmatpush1.bf16.msra.mxu1 %v4298_v11  ;;  %v4982_v44 = vrot.slane %v4968_v7, %v650_v6  ;;  %v4387_v6 = vld [vmem:[#allocation5 + $0x254] ss:$8 sps:$4 sm:$0xff]  }
 0x217   :  { %2672 = vmatprep.subr.bf16.mxu0 %v4303_v12  ;;  %2773 = vmatprep.subr.bf16.mxu1 %v4306_v13 }
 0x218   :  { %1575 = vmatmul.mubr.bf16.gmra.mxu0 %v4883_v33  ;;  %1676 = vmatmul.mubr.bf16.gmra.mxu1 %v4883_v33  ;;  %v4324_v33 = vld [vmem:[#allocation5 + $0x104] ss:$8 sps:$4 sm:$0xff]  }
 0x219   :  { %1584 = vmatprep.mubr.bf16.mxu0 %v4893_v52  ;;  %1685 = vmatprep.mubr.bf16.mxu1 %v4893_v52  ;;  %v4319_v52 = vld [vmem:[#allocation5] ss:$8 sps:$4 sm:$0xff]  }
 0x21a   :  { %2673 = vmatpush1.bf16.msra.mxu0 %v4301_v61  ;;  %2774 = vmatpush1.bf16.msra.mxu1 %v4304_v18 }
 0x21b   :  { %2674 = vmatprep.subr.bf16.mxu0 %v4309_v19  ;;  %2775 = vmatprep.subr.bf16.mxu1 %v4312_v49 }
 0x21e   :  { %2675 = vmatpush1.bf16.msra.mxu0 %v4307_v17  ;;  %2776 = vmatpush1.bf16.msra.mxu1 %v4310_v20 }
 0x21f   :  { %2676 = vmatprep.subr.bf16.mxu0 %v4315_v21  ;;  %2777 = vmatprep.subr.bf16.mxu1 %v4318_v22 }
 0x220   :  { %1585 = vmatmul.mubr.bf16.gmra.mxu0 %v4895_v55  ;;  %1686 = vmatmul.mubr.bf16.gmra.mxu1 %v4895_v55  ;;  %v4336_v55 = vld [vmem:[#allocation5 + $0x1e4] ss:$8 sps:$4 sm:$0xff]  }
 0x221   :  { %1594 = vmatprep.mubr.bf16.mxu0 %v4905_v24  ;;  %1695 = vmatprep.mubr.bf16.mxu1 %v4905_v24  ;;  %v4331_v24 = vld [vmem:[#allocation5 + $0xe0] ss:$8 sps:$4 sm:$0xff]  }
 0x222   :  { %2677 = vmatpush1.bf16.msra.mxu0 %v4313_v25  ;;  %2778 = vmatpush1.bf16.msra.mxu1 %v4316_v26 }
 0x223   :  { %2678 = vmatprep.subr.bf16.mxu0 %v4321_v27  ;;  %2779 = vmatprep.subr.bf16.mxu1 %v4324_v33 }
 0x226   :  { %2679 = vmatpush1.bf16.msra.mxu0 %v4319_v52  ;;  %2780 = vmatpush1.bf16.msra.mxu1 %v4322_v28 }
 0x227   :  { %2680 = vmatprep.subr.bf16.mxu0 %v4327_v29  ;;  %2781 = vmatprep.subr.bf16.mxu1 %v4330_v30 }
 0x228   :  { %1595 = vmatmul.mubr.bf16.gmra.mxu0 %v4907_v39  ;;  %1696 = vmatmul.mubr.bf16.gmra.mxu1 %v4907_v39  ;;  %v4348_v39 = vld [vmem:[#allocation5 + $0x1c4] ss:$8 sps:$4 sm:$0xff]  }
 0x229   :  { %1604 = vmatprep.mubr.bf16.mxu0 %v4918_v5  ;;  %1705 = vmatprep.mubr.bf16.mxu1 %v4918_v5  ;;  %v4343_v5 = vld [vmem:[#allocation5 + $0xc0] ss:$8 sps:$4 sm:$0xff]  }
 0x22a   :  { %2681 = vmatpush2.bf16.msra.mxu0 %v4325_v31  ;;  %2782 = vmatpush2.bf16.msra.mxu1 %v4328_v32 }
 0x22b   :  { %2682 = vmatprep.subr.bf16.mxu0 %v4333_v34  ;;  %2783 = vmatprep.subr.bf16.mxu1 %v4336_v55 }
 0x22e   :  { %2683 = vmatpush2.bf16.msra.mxu0 %v4331_v24  ;;  %2784 = vmatpush2.bf16.msra.mxu1 %v4334_v35 }
 0x22f   :  { %2684 = vmatprep.subr.bf16.mxu0 %v4339_v36  ;;  %2785 = vmatprep.subr.bf16.mxu1 %v4342_v37 }
 0x230   :  { %1605 = vmatmul.mubr.bf16.gmra.mxu0 %v4921_v48  ;;  %1706 = vmatmul.mubr.bf16.gmra.mxu1 %v4921_v48  ;;  %v4360_v48 = vld [vmem:[#allocation5 + $0x1a4] ss:$8 sps:$4 sm:$0xff]  }
 0x231   :  { %1614 = vmatprep.mubr.bf16.mxu0 %v4927_v16  ;;  %1715 = vmatprep.mubr.bf16.mxu1 %v4927_v16  ;;  %v4355_v16 = vld [vmem:[#allocation5 + $0xa0] ss:$8 sps:$4 sm:$0xff]  }
 0x232   :  { %2685 = vmatpush2.bf16.msra.mxu0 %v4337_v38  ;;  %2786 = vmatpush2.bf16.msra.mxu1 %v4340_v40  ;;  %v4373_v40 = vld [vmem:[#allocation5 + $0x270] ss:$8 sps:$4 sm:$0xff]  }
 0x233   :  { %2686 = vmatprep.subr.bf16.mxu0 %v4345_v41  ;;  %2787 = vmatprep.subr.bf16.mxu1 %v4348_v39  ;;  %v4376_v41 = vld [vmem:[#allocation5 + $0x370] ss:$8 sps:$4 sm:$0xff]  }
 0x236   :  { %2687 = vmatpush2.bf16.msra.mxu0 %v4343_v5  ;;  %2788 = vmatpush2.bf16.msra.mxu1 %v4346_v43 }
 0x237   :  { %2688 = vmatprep.subr.bf16.mxu0 %v4351_v46  ;;  %2789 = vmatprep.subr.bf16.mxu1 %v4354_v47  ;;  %v4381_v47 = vld [vmem:[#allocation5 + $0x264] ss:$8 sps:$4 sm:$0xff]  }
 0x238   :  { %1615 = vmatmul.mubr.bf16.gmra.mxu0 %v4931_v23  ;;  %1716 = vmatmul.mubr.bf16.gmra.mxu1 %v4931_v23  ;;  %v4370_v23 = vld [vmem:[#allocation5 + $0x180] ss:$8 sps:$4 sm:$0xff]  }
 0x23a   :  { %2689 = vmatpush2.bf16.msra.mxu0 %v4349_v50  ;;  %2790 = vmatpush2.bf16.msra.mxu1 %v4352_v51  ;;  %v4384_v50 = vld [vmem:[#allocation5 + $0x364] ss:$8 sps:$4 sm:$0xff]  }
 0x23b   :  { %2690 = vmatprep.subr.bf16.mxu0 %v4357_v53  ;;  %2791 = vmatprep.subr.bf16.mxu1 %v4360_v48 }
 0x23e   :  { %2691 = vmatpush2.bf16.msra.mxu0 %v4355_v16  ;;  %2792 = vmatpush2.bf16.msra.mxu1 %v4358_v54 }
 0x23f   :  { %2692 = vmatprep.subr.bf16.mxu0 %v4363_v59  ;;  %2793 = vmatprep.subr.bf16.mxu1 %v4366_v60 }
 0x242   :  { %2693 = vmatpush2.bf16.msra.mxu0 %v4361_v14  ;;  %2794 = vmatpush2.bf16.msra.mxu1 %v4364_v63 }
 0x243   :  { %2694 = vmatprep.subr.bf16.mxu0 %v4369_v1  ;;  %2795 = vmatprep.subr.bf16.mxu1 %v4372_v2  ;;  %v4379_v2 = vld [vmem:[#allocation5 + $0x260] ss:$8 sps:$4 sm:$0xff]  }
 0x246   :  { %2695 = vmatpush2.bf16.msra.mxu0 %v4367_v3  ;;  %2796 = vmatpush2.bf16.msra.mxu1 %v4370_v23  ;;  %v4382_v3 = vld [vmem:[#allocation5 + $0x360] ss:$8 sps:$4 sm:$0xff]  }
 0x247   :  { %2866 = vmatprep.subr.bf16.mxu0 %v4375_v4  ;;  %2967 = vmatprep.subr.bf16.mxu1 %v4378_v42 }
 0x288   :  { %v1354_v8 = vpop.f32.mrf.mxu0  ;;  %v1455_v9 = vpop.f32.mrf.mxu1 }
 0x289   :  { %v1355_v20 = vadd.f32 %v1354_v8, %v4979_v15  ;;  %v1456_v21 = vadd.f32 %v1455_v9, %v4982_v44  ;;  %v4390_v8 = vld [vmem:[#allocation5 + $0x354] ss:$8 sps:$4 sm:$0xff]  }
 0x28a   :  { %v1356_v11 = vpop.f32.mrf.mxu0  ;;  %v1457_v12 = vpop.f32.mrf.mxu1 }
 0x28b   :  { %v1357_v18 = vadd.f32 %v1356_v11, %v4972_v62  ;;  %v1458_v19 = vadd.f32 %v1457_v12, %v4975_v10  ;;  %v1724_v55 = vmax.f32 %v1355_v20, 0.0  ;;  %v1726_v24 = vmax.f32 %v1456_v21, 0.0  ;;  %v4385_v20 = vld [vmem:[#allocation5 + $0x250] ss:$8 sps:$4 sm:$0xff]  }
 0x28c   :  { %v1358_v13 = vpop.f32.mrf.mxu0  ;;  %v1459_v61 = vpop.f32.mrf.mxu1 }
 0x28d   :  { %v1359_v49 = vadd.f32 %v1358_v13, %v4979_v15  ;;  %v1460_v17 = vadd.f32 %v1459_v61, %v4982_v44  ;;  %v1725_v30 = vmax.f32 %v1357_v18, 0.0  ;;  %v1727_v31 = vmax.f32 %v1458_v19, 0.0 }
 0x28e   :  { %v1360_v22 = vpop.f32.mrf.mxu0  ;;  %v1461_v25 = vpop.f32.mrf.mxu1 }
 0x28f   :  { %v1361_v26 = vadd.f32 %v1360_v22, %v4972_v62  ;;  %v1462_v27 = vadd.f32 %v1461_v25, %v4975_v10  ;;  %v1732_v33 = vmax.f32 %v1359_v49, 0.0  ;;  %v1734_v52 = vmax.f32 %v1460_v17, 0.0 }
 0x290   :  { %v1364_v28 = vpop.f32.mrf.mxu0  ;;  %v1465_v29 = vpop.f32.mrf.mxu1 }
 0x291   :  { %v1733_v32 = vmax.f32 %v1361_v26, 0.0  ;;  %v1735_v34 = vmax.f32 %v1462_v27, 0.0  ;;  %v1828_v39 = vpack.c.bf16 %v1732_v33, %v1724_v55  ;;  %v1830_v5 = vpack.c.bf16 %v1734_v52, %v1726_v24  ;;  %v4388_v33 = vld [vmem:[#allocation5 + $0x350] ss:$8 sps:$4 sm:$0xff]   ;;  %v4393_v52 = vld [vmem:[#allocation5 + $0x244] ss:$8 sps:$4 sm:$0xff]  }
 0x292   :  { %v1366_v35 = vpop.f32.mrf.mxu0  ;;  %v1467_v36 = vpop.f32.mrf.mxu1  ;;  %v1365_v16 = vadd.f32 %v1364_v28, %v4979_v15  ;;  %v1466_v54 = vadd.f32 %v1465_v29, %v4982_v44 }
 0x293   :  { %v1829_v37 = vpack.c.bf16 %v1733_v32, %v1725_v30  ;;  %v1831_v38 = vpack.c.bf16 %v1735_v34, %v1727_v31  ;;  %v1367_v51 = vadd.f32 %v1366_v35, %v4972_v62  ;;  %v1468_v59 = vadd.f32 %v1467_v36, %v4975_v10  ;;  %v4396_v32 = vld [vmem:[#allocation5 + $0x344] ss:$8 sps:$4 sm:$0xff]  }
 0x294   :  { %v1368_v43 = vpop.f32.mrf.mxu0  ;;  %v1469_v46 = vpop.f32.mrf.mxu1  ;;  %v1740_v13 = vmax.f32 %v1365_v16, 0.0  ;;  %v1742_v61 = vmax.f32 %v1466_v54, 0.0 }
 0x295   :  { %v1369_v53 = vadd.f32 %v1368_v43, %v4979_v15  ;;  %v1470_v48 = vadd.f32 %v1469_v46, %v4982_v44  ;;  %2696 = vmatprep.mubr.bf16.mxu0 %v1829_v37  ;;  %2797 = vmatprep.mubr.bf16.mxu1 %v1831_v38  ;;  %v1741_v9 = vmax.f32 %v1367_v51, 0.0  ;;  %v1743_v18 = vmax.f32 %v1468_v59, 0.0  ;;  %v4391_v38 = vld [vmem:[#allocation5 + $0x240] ss:$8 sps:$4 sm:$0xff]   ;;  %v4399_v46 = vld [vmem:[#allocation5 + $0x234] ss:$8 sps:$4 sm:$0xff]  }
 0x296   :  { %v1370_v60 = vpop.f32.mrf.mxu0  ;;  %v1471_v14 = vpop.f32.mrf.mxu1  ;;  %2697 = vmatmul.mubr.bf16.vlgmr.msra.gmra.mxu0 %v1828_v39  ;;  %2798 = vmatmul.mubr.bf16.vlgmr.msra.gmra.mxu1 %v1830_v5  ;;  %v4394_v43 = vld [vmem:[#allocation5 + $0x340] ss:$8 sps:$4 sm:$0xff]  }
 0x297   :  { %v1371_v63 = vadd.f32 %v1370_v60, %v4972_v62  ;;  %v1472_v1 = vadd.f32 %v1471_v14, %v4975_v10  ;;  %2867 = vmatpush1.bf16.msra.mxu0 %v4373_v40  ;;  %2968 = vmatpush1.bf16.msra.mxu1 %v4376_v41  ;;  %v1748_v23 = vmax.f32 %v1369_v53, 0.0  ;;  %v1750_v4 = vmax.f32 %v1470_v48, 0.0  ;;  %v4402_v60 = vld [vmem:[#allocation5 + $0x334] ss:$8 sps:$4 sm:$0xff]  }
 0x298   :  { %v1374_v42 = vpop.f32.mrf.mxu0  ;;  %v1475_v45 = vpop.f32.mrf.mxu1  ;;  %2868 = vmatprep.subr.bf16.mxu0 %v4381_v47  ;;  %2969 = vmatprep.subr.bf16.mxu1 %v4384_v50 }
 0x299   :  { %v1749_v11 = vmax.f32 %v1371_v63, 0.0  ;;  %v1751_v12 = vmax.f32 %v1472_v1, 0.0  ;;  %v1836_v21 = vpack.c.bf16 %v1748_v23, %v1740_v13  ;;  %v1838_v22 = vpack.c.bf16 %v1750_v4, %v1742_v61  ;;  %v4397_v1 = vld [vmem:[#allocation5 + $0x230] ss:$8 sps:$4 sm:$0xff]  }
 0x29a   :  { %v1376_v19 = vpop.f32.mrf.mxu0  ;;  %v1477_v49 = vpop.f32.mrf.mxu1  ;;  %v1375_v34 = vadd.f32 %v1374_v42, %v4979_v15  ;;  %v1476_v55 = vadd.f32 %v1475_v45, %v4982_v44  ;;  %v4400_v45 = vld [vmem:[#allocation5 + $0x330] ss:$8 sps:$4 sm:$0xff]  }
 0x29b   :  { %2869 = vmatpush1.bf16.msra.mxu0 %v4379_v2  ;;  %2970 = vmatpush1.bf16.msra.mxu1 %v4382_v3  ;;  %v1837_v17 = vpack.c.bf16 %v1749_v11, %v1741_v9  ;;  %v1839_v27 = vpack.c.bf16 %v1751_v12, %v1743_v18  ;;  %v1377_v28 = vadd.f32 %v1376_v19, %v4972_v62  ;;  %v4408_v12 = vld [vmem:[#allocation5 + $0x324] ss:$8 sps:$4 sm:$0xff]  }
 0x29c   :  { %v1378_v25 = vpop.f32.mrf.mxu0  ;;  %v1479_v26 = vpop.f32.mrf.mxu1  ;;  %2870 = vmatprep.subr.bf16.mxu0 %v4387_v6  ;;  %2971 = vmatprep.subr.bf16.mxu1 %v4390_v8  ;;  %v1478_v29 = vadd.f32 %v1477_v49, %v4975_v10  ;;  %v1756_v48 = vmax.f32 %v1375_v34, 0.0  ;;  %v1758_v16 = vmax.f32 %v1476_v55, 0.0  ;;  %v4405_v6 = vld [vmem:[#allocation5 + $0x224] ss:$8 sps:$4 sm:$0xff]  }
 0x29d   :  { %v1379_v30 = vadd.f32 %v1378_v25, %v4979_v15  ;;  %v1480_v31 = vadd.f32 %v1479_v26, %v4982_v44  ;;  %2706 = vmatprep.mubr.bf16.mxu0 %v1837_v17  ;;  %2807 = vmatprep.mubr.bf16.mxu1 %v1839_v27  ;;  %v1757_v47 = vmax.f32 %v1377_v28, 0.0  ;;  %v4406_v27 = vld [vmem:[#allocation5 + $0x320] ss:$8 sps:$4 sm:$0xff]  }
 0x29e   :  { %v1380_v24 = vpop.f32.mrf.mxu0  ;;  %v1481_v35 = vpop.f32.mrf.mxu1  ;;  %2707 = vmatmul.mubr.bf16.gmra.mxu0 %v1836_v21  ;;  %2808 = vmatmul.mubr.bf16.gmra.mxu1 %v1838_v22  ;;  %v1759_v50 = vmax.f32 %v1478_v29, 0.0 }
 0x29f   :  { %v1381_v36 = vadd.f32 %v1380_v24, %v4972_v62  ;;  %v1482_v37 = vadd.f32 %v1481_v35, %v4975_v10  ;;  %2871 = vmatpush1.bf16.msra.mxu0 %v4385_v20  ;;  %v1764_v40 = vmax.f32 %v1379_v30, 0.0  ;;  %v1766_v41 = vmax.f32 %v1480_v31, 0.0  ;;  %2972 = vmatpush1.bf16.msra.mxu1 %v4388_v33  ;;  %v4403_v20 = vld [vmem:[#allocation5 + $0x220] ss:$8 sps:$4 sm:$0xff]   ;;  %v4411_v33 = vld [vmem:[#allocation5 + $0x214] ss:$8 sps:$4 sm:$0xff]  }
 0x2a0   :  { %v1384_v39 = vpop.f32.mrf.mxu0  ;;  %v1485_v5 = vpop.f32.mrf.mxu1  ;;  %2872 = vmatprep.subr.bf16.mxu0 %v4393_v52  ;;  %2973 = vmatprep.subr.bf16.mxu1 %v4396_v32  ;;  %v4414_v24 = vld [vmem:[#allocation5 + $0x314] ss:$8 sps:$4 sm:$0xff]  }
 0x2a1   :  { %v1765_v51 = vmax.f32 %v1381_v36, 0.0  ;;  %v1767_v53 = vmax.f32 %v1482_v37, 0.0  ;;  %v1844_v2 = vpack.c.bf16 %v1764_v40, %v1756_v48  ;;  %v1846_v3 = vpack.c.bf16 %v1766_v41, %v1758_v16  ;;  %v4409_v37 = vld [vmem:[#allocation5 + $0x210] ss:$8 sps:$4 sm:$0xff]  }
 0x2a2   :  { %v1386_v54 = vpop.f32.mrf.mxu0  ;;  %v1487_v59 = vpop.f32.mrf.mxu1  ;;  %v1385_v13 = vadd.f32 %v1384_v39, %v4979_v15  ;;  %v1486_v61 = vadd.f32 %v1485_v5, %v4982_v44 }
 0x2a3   :  { %2873 = vmatpush1.bf16.msra.mxu0 %v4391_v38  ;;  %v1845_v14 = vpack.c.bf16 %v1765_v51, %v1757_v47  ;;  %v1847_v63 = vpack.c.bf16 %v1767_v53, %v1759_v50  ;;  %v1387_v23 = vadd.f32 %v1386_v54, %v4972_v62  ;;  %2974 = vmatpush1.bf16.msra.mxu1 %v4394_v43  ;;  %v4412_v43 = vld [vmem:[#allocation5 + $0x310] ss:$8 sps:$4 sm:$0xff]   ;;  %v4420_v53 = vld [vmem:[#allocation5 + $0x304] ss:$8 sps:$4 sm:$0xff]  }
 0x2a4   :  { %v1388_v4 = vpop.f32.mrf.mxu0  ;;  %v1489_v42 = vpop.f32.mrf.mxu1  ;;  %2874 = vmatprep.subr.bf16.mxu0 %v4399_v46  ;;  %v1488_v8 = vadd.f32 %v1487_v59, %v4975_v10  ;;  %2975 = vmatprep.subr.bf16.mxu1 %v4402_v60  ;;  %v1772_v31 = vmax.f32 %v1385_v13, 0.0  ;;  %v1774_v32 = vmax.f32 %v1486_v61, 0.0  ;;  %v4417_v46 = vld [vmem:[#allocation5 + $0x204] ss:$8 sps:$4 sm:$0xff]  }
 0x2a5   :  { %v1389_v9 = vadd.f32 %v1388_v4, %v4979_v15  ;;  %v1490_v11 = vadd.f32 %v1489_v42, %v4982_v44  ;;  %2716 = vmatprep.mubr.bf16.mxu0 %v1845_v14  ;;  %2817 = vmatprep.mubr.bf16.mxu1 %v1847_v63  ;;  %v1773_v52 = vmax.f32 %v1387_v23, 0.0  ;;  %v4415_v63 = vld [vmem:[#allocation5 + $0x200] ss:$8 sps:$4 sm:$0xff]   ;;  %v4423_v42 = vld [vmem:[#allocation5 + $0x2f4] ss:$8 sps:$4 sm:$0xff]  }
 0x2a6   :  { %v1390_v18 = vpop.f32.mrf.mxu0  ;;  %v1491_v19 = vpop.f32.mrf.mxu1  ;;  %2717 = vmatmul.mubr.bf16.gmra.mxu0 %v1844_v2  ;;  %2818 = vmatmul.mubr.bf16.gmra.mxu1 %v1846_v3  ;;  %v1775_v28 = vmax.f32 %v1488_v8, 0.0  ;;  %v4418_v4 = vld [vmem:[#allocation5 + $0x300] ss:$8 sps:$4 sm:$0xff]  }
 0x2a7   :  { %v1391_v49 = vadd.f32 %v1390_v18, %v4972_v62  ;;  %v1492_v17 = vadd.f32 %v1491_v19, %v4975_v10  ;;  %2875 = vmatpush1.bf16.msra.mxu0 %v4397_v1  ;;  %v1780_v21 = vmax.f32 %v1389_v9, 0.0  ;;  %v1782_v22 = vmax.f32 %v1490_v11, 0.0  ;;  %2976 = vmatpush1.bf16.msra.mxu1 %v4400_v45  ;;  %v4426_v18 = vld [vmem:[#allocation5 + $0x3f4] ss:$8 sps:$4 sm:$0xff]  }
 0x2a8   :  { %v1394_v25 = vpop.f32.mrf.mxu0  ;;  %v1495_v26 = vpop.f32.mrf.mxu1  ;;  %2876 = vmatprep.subr.bf16.mxu0 %v4405_v6  ;;  %2977 = vmatprep.subr.bf16.mxu1 %v4408_v12 }
 0x2a9   :  { %v1781_v29 = vmax.f32 %v1391_v49, 0.0  ;;  %v1783_v30 = vmax.f32 %v1492_v17, 0.0  ;;  %v1852_v38 = vpack.c.bf16 %v1780_v21, %v1772_v31  ;;  %v1854_v40 = vpack.c.bf16 %v1782_v22, %v1774_v32  ;;  %v4421_v17 = vld [vmem:[#allocation5 + $0x2f0] ss:$8 sps:$4 sm:$0xff]  }
 0x2aa   :  { %v1396_v34 = vpop.f32.mrf.mxu0  ;;  %v1497_v55 = vpop.f32.mrf.mxu1  ;;  %v1395_v48 = vadd.f32 %v1394_v25, %v4979_v15  ;;  %v1496_v16 = vadd.f32 %v1495_v26, %v4982_v44 }
 0x2ab   :  { %2877 = vmatpush1.bf16.msra.mxu0 %v4403_v20  ;;  %v1853_v35 = vpack.c.bf16 %v1781_v29, %v1773_v52  ;;  %v1855_v36 = vpack.c.bf16 %v1783_v30, %v1775_v28  ;;  %v1397_v41 = vadd.f32 %v1396_v34, %v4972_v62  ;;  %2978 = vmatpush1.bf16.msra.mxu1 %v4406_v27  ;;  %v4424_v27 = vld [vmem:[#allocation5 + $0x3f0] ss:$8 sps:$4 sm:$0xff]   ;;  %v4432_v30 = vld [vmem:[#allocation5 + $0x3e4] ss:$8 sps:$4 sm:$0xff]  }
 0x2ac   :  { %v1398_v39 = vpop.f32.mrf.mxu0  ;;  %v1499_v5 = vpop.f32.mrf.mxu1  ;;  %2878 = vmatprep.subr.bf16.mxu0 %v4411_v33  ;;  %v1498_v47 = vadd.f32 %v1497_v55, %v4975_v10  ;;  %2979 = vmatprep.subr.bf16.mxu1 %v4414_v24  ;;  %v1788_v11 = vmax.f32 %v1395_v48, 0.0  ;;  %v1790_v12 = vmax.f32 %v1496_v16, 0.0  ;;  %v4429_v33 = vld [vmem:[#allocation5 + $0x2e4] ss:$8 sps:$4 sm:$0xff]  }
 0x2ad   :  { %v1399_v50 = vadd.f32 %v1398_v39, %v4979_v15  ;;  %v1500_v51 = vadd.f32 %v1499_v5, %v4982_v44  ;;  %2726 = vmatprep.mubr.bf16.mxu0 %v1853_v35  ;;  %2827 = vmatprep.mubr.bf16.mxu1 %v1855_v36  ;;  %v1789_v45 = vmax.f32 %v1397_v41, 0.0  ;;  %v4427_v36 = vld [vmem:[#allocation5 + $0x2e0] ss:$8 sps:$4 sm:$0xff]   ;;  %v4435_v5 = vld [vmem:[#allocation5 + $0x2d4] ss:$8 sps:$4 sm:$0xff]  }
 0x2ae   :  { %v1400_v54 = vpop.f32.mrf.mxu0  ;;  %v1501_v59 = vpop.f32.mrf.mxu1  ;;  %2727 = vmatmul.mubr.bf16.gmra.mxu0 %v1852_v38  ;;  %2828 = vmatmul.mubr.bf16.gmra.mxu1 %v1854_v40  ;;  %v1791_v6 = vmax.f32 %v1498_v47, 0.0  ;;  %v4430_v39 = vld [vmem:[#allocation5 + $0x3e0] ss:$8 sps:$4 sm:$0xff]  }
 0x2af   :  { %v1401_v60 = vadd.f32 %v1400_v54, %v4972_v62  ;;  %v1502_v14 = vadd.f32 %v1501_v59, %v4975_v10  ;;  %2879 = vmatpush1.bf16.msra.mxu0 %v4409_v37  ;;  %v1796_v1 = vmax.f32 %v1399_v50, 0.0  ;;  %v1798_v2 = vmax.f32 %v1500_v51, 0.0  ;;  %2980 = vmatpush1.bf16.msra.mxu1 %v4412_v43  ;;  %v4438_v54 = vld [vmem:[#allocation5 + $0x3d4] ss:$8 sps:$4 sm:$0xff]  }
 0x2b0   :  { %v1404_v3 = vpop.f32.mrf.mxu0  ;;  %v1505_v23 = vpop.f32.mrf.mxu1  ;;  %2880 = vmatprep.subr.bf16.mxu0 %v4417_v46  ;;  %2981 = vmatprep.subr.bf16.mxu1 %v4420_v53 }
 0x2b1   :  { %v1797_v8 = vmax.f32 %v1401_v60, 0.0  ;;  %v1799_v9 = vmax.f32 %v1502_v14, 0.0  ;;  %v1860_v20 = vpack.c.bf16 %v1796_v1, %v1788_v11  ;;  %v1862_v21 = vpack.c.bf16 %v1798_v2, %v1790_v12  ;;  %v4433_v1 = vld [vmem:[#allocation5 + $0x2d0] ss:$8 sps:$4 sm:$0xff]  }
 0x2b2   :  { %v1406_v13 = vpop.f32.mrf.mxu0  ;;  %v1507_v61 = vpop.f32.mrf.mxu1  ;;  %v1405_v31 = vadd.f32 %v1404_v3, %v4979_v15  ;;  %v1506_v32 = vadd.f32 %v1505_v23, %v4982_v44 }
 0x2b3   :  { %2881 = vmatpush1.bf16.msra.mxu0 %v4415_v63  ;;  %v1861_v19 = vpack.c.bf16 %v1797_v8, %v1789_v45  ;;  %v1863_v49 = vpack.c.bf16 %v1799_v9, %v1791_v6  ;;  %v1407_v22 = vadd.f32 %v1406_v13, %v4972_v62  ;;  %2982 = vmatpush1.bf16.msra.mxu1 %v4418_v4  ;;  %v4441_v45 = vld [vmem:[#allocation5 + $0x2c4] ss:$8 sps:$4 sm:$0xff]  }
 0x2b4   :  { %v1408_v25 = vpop.f32.mrf.mxu0  ;;  %v1509_v26 = vpop.f32.mrf.mxu1  ;;  %2882 = vmatprep.subr.bf16.mxu0 %v4423_v42  ;;  %v1508_v52 = vadd.f32 %v1507_v61, %v4975_v10  ;;  %2983 = vmatprep.subr.bf16.mxu1 %v4426_v18  ;;  %v1804_v51 = vmax.f32 %v1405_v31, 0.0  ;;  %v1806_v53 = vmax.f32 %v1506_v32, 0.0  ;;  %v4436_v42 = vld [vmem:[#allocation5 + $0x3d0] ss:$8 sps:$4 sm:$0xff]   ;;  %v4439_v61 = vld [vmem:[#allocation5 + $0x2c0] ss:$8 sps:$4 sm:$0xff]  }
 0x2b5   :  { %v1409_v28 = vadd.f32 %v1408_v25, %v4979_v15  ;;  %v1510_v29 = vadd.f32 %v1509_v26, %v4982_v44  ;;  %2736 = vmatprep.mubr.bf16.mxu0 %v1861_v19  ;;  %2837 = vmatprep.mubr.bf16.mxu1 %v1863_v49  ;;  %v1805_v37 = vmax.f32 %v1407_v22, 0.0  ;;  %v4442_v19 = vld [vmem:[#allocation5 + $0x3c0] ss:$8 sps:$4 sm:$0xff]   ;;  %v4447_v49 = vld [vmem:[#allocation5 + $0x2b4] ss:$8 sps:$4 sm:$0xff]  }
 0x2b6   :  { %v1410_v34 = vpop.f32.mrf.mxu0  ;;  %v1511_v55 = vpop.f32.mrf.mxu1  ;;  %2737 = vmatmul.mubr.bf16.gmra.mxu0 %v1860_v20  ;;  %2838 = vmatmul.mubr.bf16.gmra.mxu1 %v1862_v21  ;;  %v1807_v43 = vmax.f32 %v1508_v52, 0.0  ;;  %v4445_v20 = vld [vmem:[#allocation5 + $0x2b0] ss:$8 sps:$4 sm:$0xff]   ;;  %v4453_v25 = vld [vmem:[#allocation5 + $0x2a4] ss:$8 sps:$4 sm:$0xff]  }
 0x2b7   :  { %v1411_v24 = vadd.f32 %v1410_v34, %v4972_v62  ;;  %v1512_v35 = vadd.f32 %v1511_v55, %v4975_v10  ;;  %2883 = vmatpush2.bf16.msra.mxu0 %v4421_v17  ;;  %v1812_v38 = vmax.f32 %v1409_v28, 0.0  ;;  %2984 = vmatpush2.bf16.msra.mxu1 %v4424_v27  ;;  %v1814_v46 = vmax.f32 %v1510_v29, 0.0  ;;  %v4450_v17 = vld [vmem:[#allocation5 + $0x3b4] ss:$8 sps:$4 sm:$0xff]   ;;  %v4448_v22 = vld [vmem:[#allocation5 + $0x3b0] ss:$8 sps:$4 sm:$0xff]  }
 0x2b8   :  { %v1414_v40 = vpop.f32.mrf.mxu0  ;;  %v1515_v41 = vpop.f32.mrf.mxu1  ;;  %2884 = vmatprep.subr.bf16.mxu0 %v4429_v33  ;;  %2985 = vmatprep.subr.bf16.mxu1 %v4432_v30  ;;  %v662_v27 = vsub.s32 5, %v4836_v56  ;;  %v670_v33 = vsub.s32 7, %v4836_v56  ;;  %v4456_v52 = vld [vmem:[#allocation5 + $0x3a4] ss:$8 sps:$4 sm:$0xff]   ;;  %v658_v28 = vsub.s32 4, %v4836_v56  ;;  %v666_v29 = vsub.s32 6, %v4836_v56 }
 0x2b9   :  { %v1813_v47 = vmax.f32 %v1411_v24, 0.0  ;;  %v1815_v50 = vmax.f32 %v1512_v35, 0.0  ;;  %v1868_v2 = vpack.c.bf16 %v1812_v38, %v1804_v51  ;;  %v1415_v3 = vadd.f32 %v1414_v40, %v4979_v15  ;;  %v4451_v30 = vld [vmem:[#allocation5 + $0x2a0] ss:$8 sps:$4 sm:$0xff]   ;;  %v4459_v55 = vld [vmem:[#allocation5 + $0x294] ss:$8 sps:$4 sm:$0xff]  }
 0x2ba   :  { %v1416_v48 = vpop.f32.mrf.mxu0  ;;  %v1517_v16 = vpop.f32.mrf.mxu1  ;;  %v1870_v6 = vpack.c.bf16 %v1814_v46, %v1806_v53  ;;  %v1516_v8 = vadd.f32 %v1515_v41, %v4982_v44  ;;  %v4454_v34 = vld [vmem:[#allocation5 + $0x3a0] ss:$8 sps:$4 sm:$0xff]   ;;  %v5041_v24 = vrot.slane %v4968_v7, %v662_v27  ;;  %v5044_v35 = vrot.slane %v4968_v7, %v670_v33  ;;  %v4457_v41 = vld [vmem:[#allocation5 + $0x290] ss:$8 sps:$4 sm:$0xff]   ;;  %v4465_v46 = vld [vmem:[#allocation5 + $0x284] ss:$8 sps:$4 sm:$0xff]  }
 0x2bb   :  { %v1417_v59 = vadd.f32 %v1416_v48, %v4972_v62  ;;  %v1518_v60 = vadd.f32 %v1517_v16, %v4975_v10  ;;  %2885 = vmatpush2.bf16.msra.mxu0 %v4427_v36  ;;  %v1869_v14 = vpack.c.bf16 %v1813_v47, %v1805_v37  ;;  %v1871_v63 = vpack.c.bf16 %v1815_v50, %v1807_v43  ;;  %v4444_v10 = vld [vmem:[#allocation5 + $0x3c4] ss:$8 sps:$4 sm:$0xff]   ;;  %v4462_v36 = vld [vmem:[#allocation5 + $0x394] ss:$8 sps:$4 sm:$0xff]   ;;  %v4460_v43 = vld [vmem:[#allocation5 + $0x390] ss:$8 sps:$4 sm:$0xff]  }
 0x2bc   :  { %2986 = vmatpush2.bf16.msra.mxu1 %v4430_v39  ;;  %v1418_v23 = vpop.f32.mrf.mxu0  ;;  %v1519_v4 = vpop.f32.mrf.mxu1  ;;  %2886 = vmatprep.subr.bf16.mxu0 %v4435_v5  ;;  %v1820_v18 = vmax.f32 %v1415_v3, 0.0  ;;  %v1822_v44 = vmax.f32 %v1516_v8, 0.0  ;;  %v5047_v37 = vrot.slane %v4968_v7, %v658_v28  ;;  %v5050_v56 = vrot.slane %v4968_v7, %v666_v29  ;;  %v4468_v7 = vld [vmem:[#allocation5 + $0x384] ss:$8 sps:$4 sm:$0xff]  }
 0x2bd   :  { %v1821_v9 = vmax.f32 %v1417_v59, 0.0  ;;  %v1823_v62 = vmax.f32 %v1518_v60, 0.0  ;;  %2746 = vmatprep.mubr.bf16.mxu0 %v1869_v14  ;;  %2847 = vmatprep.mubr.bf16.mxu1 %v1871_v63  ;;  %v4463_v63 = vld [vmem:[#allocation5 + $0x280] ss:$8 sps:$4 sm:$0xff]  }
 0x2be   :  { %2987 = vmatprep.subr.bf16.mxu1 %v4438_v54  ;;  %v1419_v11 = vpop.f32.mrf.mxu0  ;;  %v1520_v12 = vpop.f32.mrf.mxu1  ;;  %2747 = vmatmul.mubr.bf16.gmra.mxu0 %v1868_v2  ;;  %v1876_v21 = vpack.c.bf16 %v1820_v18, %v1820_v18  ;;  %v1878_v26 = vpack.c.bf16 %v1822_v44, %v1822_v44  ;;  %v4466_v4 = vld [vmem:[#allocation5 + $0x380] ss:$8 sps:$4 sm:$0xff]  }
 0x2bf   :  { %v1877_v13 = vpack.c.bf16 %v1821_v9, %v1821_v9  ;;  %v1879_v15 = vpack.c.bf16 %v1823_v62, %v1823_v62  ;;  %2848 = vmatmul.mubr.bf16.gmra.mxu1 %v1870_v6  ;;  %2887 = vmatpush2.bf16.msra.mxu0 %v4433_v1 }
 0x2c0   :  { %2988 = vmatpush2.bf16.msra.mxu1 %v4436_v42  ;;  %2888 = vmatprep.subr.bf16.mxu0 %v4441_v45 }
 0x2c1   :  { %2989 = vmatprep.subr.bf16.mxu1 %v4444_v10  ;;  %2756 = vmatprep.mubr.bf16.mxu0 %v1877_v13 }
 0x2c2   :  { %2857 = vmatprep.mubr.bf16.mxu1 %v1879_v15 }
 0x2c3   :  { %2889 = vmatpush2.bf16.msra.mxu0 %v4439_v61 }
 0x2c4   :  { %2990 = vmatpush2.bf16.msra.mxu1 %v4442_v19  ;;  %2890 = vmatprep.subr.bf16.mxu0 %v4447_v49 }
 0x2c5   :  { %2991 = vmatprep.subr.bf16.mxu1 %v4450_v17 }
 0x2c6   :  { %2757 = vmatmul.mubr.bf16.gmra.mxu0 %v1876_v21 }
 0x2c7   :  { %2858 = vmatmul.mubr.bf16.gmra.mxu1 %v1878_v26  ;;  %2891 = vmatpush2.bf16.msra.mxu0 %v4445_v20 }
 0x2c8   :  { %2992 = vmatpush2.bf16.msra.mxu1 %v4448_v22  ;;  %v1556_v31 = vpop.f32.mrf.mxu0  ;;  %v1657_v32 = vpop.f32.mrf.mxu1  ;;  %2892 = vmatprep.subr.bf16.mxu0 %v4453_v25 }
 0x2c9   :  { %2993 = vmatprep.subr.bf16.mxu1 %v4456_v52  ;;  %v1557_v48 = vadd.f32 %v1556_v31, %v5047_v37  ;;  %v1658_v16 = vadd.f32 %v1657_v32, %v5050_v56 }
 0x2ca   :  { %v1558_v38 = vpop.f32.mrf.mxu0  ;;  %v1659_v40 = vpop.f32.mrf.mxu1 }
 0x2cb   :  { %2893 = vmatpush2.bf16.msra.mxu0 %v4451_v30  ;;  %v1559_v47 = vadd.f32 %v1558_v38, %v5041_v24  ;;  %v1660_v50 = vadd.f32 %v1659_v40, %v5044_v35  ;;  %v1728_v9 = vmax.f32 %v1557_v48, 0.0  ;;  %v1730_v62 = vmax.f32 %v1658_v16, 0.0 }
 0x2cc   :  { %2994 = vmatpush2.bf16.msra.mxu1 %v4454_v34  ;;  %v1560_v39 = vpop.f32.mrf.mxu0  ;;  %v1661_v5 = vpop.f32.mrf.mxu1  ;;  %2894 = vmatprep.subr.bf16.mxu0 %v4459_v55 }
 0x2cd   :  { %v1561_v51 = vadd.f32 %v1560_v39, %v5047_v37  ;;  %v1662_v53 = vadd.f32 %v1661_v5, %v5050_v56  ;;  %2995 = vmatprep.subr.bf16.mxu1 %v4462_v36  ;;  %v1729_v42 = vmax.f32 %v1559_v47, 0.0  ;;  %v1731_v45 = vmax.f32 %v1660_v50, 0.0 }
 0x2ce   :  { %v1562_v54 = vpop.f32.mrf.mxu0  ;;  %v1663_v59 = vpop.f32.mrf.mxu1 }
 0x2cf   :  { %v1563_v60 = vadd.f32 %v1562_v54, %v5041_v24  ;;  %v1664_v14 = vadd.f32 %v1663_v59, %v5044_v35  ;;  %2895 = vmatpush2.bf16.msra.mxu0 %v4457_v41  ;;  %v1736_v1 = vmax.f32 %v1561_v51, 0.0  ;;  %v1738_v2 = vmax.f32 %v1662_v53, 0.0 }
 0x2d0   :  { %2996 = vmatpush2.bf16.msra.mxu1 %v4460_v43  ;;  %v1566_v3 = vpop.f32.mrf.mxu0  ;;  %v1667_v23 = vpop.f32.mrf.mxu1  ;;  %2896 = vmatprep.subr.bf16.mxu0 %v4465_v46 }
 0x2d1   :  { %v1737_v6 = vmax.f32 %v1563_v60, 0.0  ;;  %v1739_v8 = vmax.f32 %v1664_v14, 0.0  ;;  %2997 = vmatprep.subr.bf16.mxu1 %v4468_v7  ;;  %v1832_v15 = vpack.c.bf16 %v1736_v1, %v1728_v9  ;;  %v1834_v61 = vpack.c.bf16 %v1738_v2, %v1730_v62 }
 0x2d2   :  { %v1568_v10 = vpop.f32.mrf.mxu0  ;;  %v1669_v11 = vpop.f32.mrf.mxu1  ;;  %v1567_v21 = vadd.f32 %v1566_v3, %v5047_v37  ;;  %v1668_v22 = vadd.f32 %v1667_v23, %v5050_v56 }
 0x2d3   :  { %2897 = vmatpush2.bf16.msra.mxu0 %v4463_v63  ;;  %v1833_v12 = vpack.c.bf16 %v1737_v6, %v1729_v42  ;;  %v1835_v13 = vpack.c.bf16 %v1739_v8, %v1731_v45  ;;  %v1569_v18 = vadd.f32 %v1568_v10, %v5041_v24  ;;  %v1670_v44 = vadd.f32 %v1669_v11, %v5044_v35 }
 0x2d4   :  { %2998 = vmatpush2.bf16.msra.mxu1 %v4466_v4  ;;  %v1570_v19 = vpop.f32.mrf.mxu0  ;;  %v1671_v49 = vpop.f32.mrf.mxu1  ;;  %v1744_v36 = vmax.f32 %v1567_v21, 0.0  ;;  %v1746_v38 = vmax.f32 %v1668_v22, 0.0 }
 0x2d5   :  { %v1571_v17 = vadd.f32 %v1570_v19, %v5047_v37  ;;  %v1672_v20 = vadd.f32 %v1671_v49, %v5050_v56  ;;  %2898 = vmatprep.mubr.bf16.mxu0 %v1833_v12  ;;  %2999 = vmatprep.mubr.bf16.mxu1 %v1835_v13  ;;  %v1745_v31 = vmax.f32 %v1569_v18, 0.0  ;;  %v1747_v32 = vmax.f32 %v1670_v44, 0.0 }
 0x2d6   :  { %v1572_v25 = vpop.f32.mrf.mxu0  ;;  %v1673_v26 = vpop.f32.mrf.mxu1  ;;  %2899 = vmatmul.mubr.bf16.vlgmr.msra.gmra.mxu0 %v1832_v15  ;;  %4151 = vmatprep.subr.bf16.mxu1 %v4592_v0 }
 0x2d7   :  { %v1573_v27 = vadd.f32 %v1572_v25, %v5041_v24  ;;  %v1674_v33 = vadd.f32 %v1673_v26, %v5044_v35  ;;  %3000 = vmatmul.mubr.bf16.vlgmr.msra.gmra.mxu1 %v1834_v61  ;;  %v1752_v52 = vmax.f32 %v1571_v17, 0.0  ;;  %v1754_v28 = vmax.f32 %v1672_v20, 0.0 }
 0x2d8   :  { %v1576_v29 = vpop.f32.mrf.mxu0  ;;  %v1677_v30 = vpop.f32.mrf.mxu1 }
 0x2d9   :  { %v1753_v34 = vmax.f32 %v1573_v27, 0.0  ;;  %v1755_v55 = vmax.f32 %v1674_v33, 0.0  ;;  %v1840_v43 = vpack.c.bf16 %v1752_v52, %v1744_v36  ;;  %v1842_v46 = vpack.c.bf16 %v1754_v28, %v1746_v38 }
 0x2da   :  { %v1578_v40 = vpop.f32.mrf.mxu0  ;;  %v1679_v41 = vpop.f32.mrf.mxu1  ;;  %v1577_v16 = vadd.f32 %v1576_v29, %v5047_v37  ;;  %v1678_v54 = vadd.f32 %v1677_v30, %v5050_v56 }
 0x2db   :  { %v1843_v39 = vpack.c.bf16 %v1755_v55, %v1747_v32  ;;  %v1841_v5 = vpack.c.bf16 %v1753_v34, %v1745_v31  ;;  %v1579_v47 = vadd.f32 %v1578_v40, %v5041_v24  ;;  %v1680_v53 = vadd.f32 %v1679_v41, %v5044_v35 }
 0x2dc   :  { %v1580_v50 = vpop.f32.mrf.mxu0  ;;  %v1681_v51 = vpop.f32.mrf.mxu1  ;;  %v1760_v8 = vmax.f32 %v1577_v16, 0.0  ;;  %v1762_v9 = vmax.f32 %v1678_v54, 0.0 }
 0x2dd   :  { %v1581_v7 = vadd.f32 %v1580_v50, %v5047_v37  ;;  %v1682_v48 = vadd.f32 %v1681_v51, %v5050_v56  ;;  %2908 = vmatprep.mubr.bf16.mxu0 %v1841_v5  ;;  %3009 = vmatprep.mubr.bf16.mxu1 %v1843_v39  ;;  %v1761_v4 = vmax.f32 %v1579_v47, 0.0  ;;  %v1763_v42 = vmax.f32 %v1680_v53, 0.0 }
 0x2de   :  { %v1582_v59 = vpop.f32.mrf.mxu0  ;;  %v1683_v60 = vpop.f32.mrf.mxu1  ;;  %2909 = vmatmul.mubr.bf16.gmra.mxu0 %v1840_v43 }
 0x2df   :  { %v1583_v14 = vadd.f32 %v1582_v59, %v5041_v24  ;;  %v1684_v63 = vadd.f32 %v1683_v60, %v5044_v35  ;;  %3010 = vmatmul.mubr.bf16.gmra.mxu1 %v1842_v46  ;;  %v1768_v1 = vmax.f32 %v1581_v7, 0.0  ;;  %v1770_v2 = vmax.f32 %v1682_v48, 0.0 }
 0x2e0   :  { %v1586_v3 = vpop.f32.mrf.mxu0  ;;  %v1687_v23 = vpop.f32.mrf.mxu1 }
 0x2e1   :  { %v1769_v45 = vmax.f32 %v1583_v14, 0.0  ;;  %v1771_v6 = vmax.f32 %v1684_v63, 0.0  ;;  %v1848_v13 = vpack.c.bf16 %v1768_v1, %v1760_v8  ;;  %v1850_v15 = vpack.c.bf16 %v1770_v2, %v1762_v9  ;;  %v4469_v63 = vld [vmem:[#allocation7 + $0x78] sm:$0xff]  }
 0x2e2   :  { %v1588_v62 = vpop.f32.mrf.mxu0  ;;  %v1689_v10 = vpop.f32.mrf.mxu1  ;;  %v1587_v20 = vadd.f32 %v1586_v3, %v5047_v37  ;;  %v1688_v21 = vadd.f32 %v1687_v23, %v5050_v56  ;;  %v4470_v1 = vld [vmem:[#allocation7 + $0x38] sm:$0xff]   ;;  %4037 = vmatprep.subr.bf16.mxu0 %v4469_v63  ;;  %v4474_v63 = vld [vmem:[#allocation7 + $0x28] sm:$0xff]  }
 0x2e3   :  { %v1851_v11 = vpack.c.bf16 %v1771_v6, %v1763_v42  ;;  %v1849_v12 = vpack.c.bf16 %v1769_v45, %v1761_v4  ;;  %v1589_v61 = vadd.f32 %v1588_v62, %v5041_v24  ;;  %v1690_v49 = vadd.f32 %v1689_v10, %v5044_v35  ;;  %4038 = vmatpush3.bf16.msra.mxu0 %v4470_v1 }
 0x2e4   :  { %v1590_v18 = vpop.f32.mrf.mxu0  ;;  %v1691_v19 = vpop.f32.mrf.mxu1  ;;  %v1776_v55 = vmax.f32 %v1587_v20, 0.0  ;;  %v1778_v36 = vmax.f32 %v1688_v21, 0.0  ;;  %v4471_v21 = vld [vmem:[#allocation7 + $0x70] sm:$0xff]  }
 0x2e5   :  { %v1591_v44 = vadd.f32 %v1590_v18, %v5047_v37  ;;  %v1692_v17 = vadd.f32 %v1691_v19, %v5050_v56  ;;  %2918 = vmatprep.mubr.bf16.mxu0 %v1849_v12  ;;  %3019 = vmatprep.mubr.bf16.mxu1 %v1851_v11  ;;  %v1777_v30 = vmax.f32 %v1589_v61, 0.0  ;;  %v1779_v31 = vmax.f32 %v1690_v49, 0.0 }
 0x2e6   :  { %v1592_v22 = vpop.f32.mrf.mxu0  ;;  %v1693_v25 = vpop.f32.mrf.mxu1  ;;  %2919 = vmatmul.mubr.bf16.gmra.mxu0 %v1848_v13  ;;  %4039 = vmatprep.subr.bf16.mxu0 %v4471_v21  ;;  %v4486_v21 = vld [vmem:[%s5399_s11 + $0x30] sm:$0xff]  }
 0x2e7   :  { %v1593_v26 = vadd.f32 %v1592_v22, %v5041_v24  ;;  %v1694_v27 = vadd.f32 %v1693_v25, %v5044_v35  ;;  %3020 = vmatmul.mubr.bf16.gmra.mxu1 %v1850_v15  ;;  %v1784_v33 = vmax.f32 %v1591_v44, 0.0  ;;  %v1786_v52 = vmax.f32 %v1692_v17, 0.0 }
 0x2e8   :  { %v1596_v28 = vpop.f32.mrf.mxu0  ;;  %v1697_v29 = vpop.f32.mrf.mxu1 }
 0x2e9   :  { %v1785_v32 = vmax.f32 %v1593_v26, 0.0  ;;  %v1787_v34 = vmax.f32 %v1694_v27, 0.0  ;;  %v1856_v5 = vpack.c.bf16 %v1784_v33, %v1776_v55  ;;  %v1858_v43 = vpack.c.bf16 %v1786_v52, %v1778_v36 }
 0x2ea   :  { %v1598_v38 = vpop.f32.mrf.mxu0  ;;  %v1699_v40 = vpop.f32.mrf.mxu1  ;;  %v1597_v48 = vadd.f32 %v1596_v28, %v5047_v37  ;;  %v1698_v16 = vadd.f32 %v1697_v29, %v5050_v56  ;;  %v4472_v28 = vld [vmem:[#allocation7 + $0x30] sm:$0xff]  }
 0x2eb   :  { %v1859_v41 = vpack.c.bf16 %v1787_v34, %v1779_v31  ;;  %v1857_v39 = vpack.c.bf16 %v1785_v32, %v1777_v30  ;;  %v1599_v46 = vadd.f32 %v1598_v38, %v5041_v24  ;;  %v1700_v51 = vadd.f32 %v1699_v40, %v5044_v35  ;;  %4040 = vmatpush3.bf16.msra.mxu0 %v4472_v28 }
 0x2ec   :  { %v1600_v47 = vpop.f32.mrf.mxu0  ;;  %v1701_v50 = vpop.f32.mrf.mxu1  ;;  %v1792_v9 = vmax.f32 %v1597_v48, 0.0  ;;  %v1794_v62 = vmax.f32 %v1698_v16, 0.0 }
 0x2ed   :  { %v1601_v53 = vadd.f32 %v1600_v47, %v5047_v37  ;;  %v1702_v7 = vadd.f32 %v1701_v50, %v5050_v56  ;;  %2928 = vmatprep.mubr.bf16.mxu0 %v1857_v39  ;;  %3029 = vmatprep.mubr.bf16.mxu1 %v1859_v41  ;;  %v1793_v42 = vmax.f32 %v1599_v46, 0.0  ;;  %v1795_v45 = vmax.f32 %v1700_v51, 0.0 }
 0x2ee   :  { %v1602_v54 = vpop.f32.mrf.mxu0  ;;  %v1703_v59 = vpop.f32.mrf.mxu1  ;;  %2929 = vmatmul.mubr.bf16.gmra.mxu0 %v1856_v5 }
 0x2ef   :  { %v1603_v60 = vadd.f32 %v1602_v54, %v5041_v24  ;;  %v1704_v14 = vadd.f32 %v1703_v59, %v5044_v35  ;;  %3030 = vmatmul.mubr.bf16.gmra.mxu1 %v1858_v43  ;;  %v1800_v2 = vmax.f32 %v1601_v53, 0.0  ;;  %v1802_v3 = vmax.f32 %v1702_v7, 0.0 }
 0x2f0   :  { %v1606_v23 = vpop.f32.mrf.mxu0  ;;  %v1707_v4 = vpop.f32.mrf.mxu1 }
 0x2f1   :  { %v1801_v6 = vmax.f32 %v1603_v60, 0.0  ;;  %v1803_v8 = vmax.f32 %v1704_v14, 0.0  ;;  %v1864_v15 = vpack.c.bf16 %v1800_v2, %v1792_v9  ;;  %v1866_v61 = vpack.c.bf16 %v1802_v3, %v1794_v62  ;;  %v4473_v14 = vld [vmem:[#allocation7 + $0x68] sm:$0xff]   ;;  %v4480_v9 = vld [vmem:[#allocation7 + $0x10] sm:$0xff]  }
 0x2f2   :  { %v1608_v10 = vpop.f32.mrf.mxu0  ;;  %v1709_v11 = vpop.f32.mrf.mxu1  ;;  %v1607_v22 = vadd.f32 %v1606_v23, %v5047_v37  ;;  %v1708_v25 = vadd.f32 %v1707_v4, %v5050_v56  ;;  %4041 = vmatprep.subr.bf16.mxu0 %v4473_v14  ;;  %v4475_v23 = vld [vmem:[#allocation7 + $0x60] sm:$0xff]   ;;  %v4481_v62 = vld [vmem:[#allocation7 + $0x48] sm:$0xff]  }
 0x2f3   :  { %v1867_v12 = vpack.c.bf16 %v1803_v8, %v1795_v45  ;;  %v1865_v13 = vpack.c.bf16 %v1801_v6, %v1793_v42  ;;  %v1609_v18 = vadd.f32 %v1608_v10, %v5041_v24  ;;  %v1710_v44 = vadd.f32 %v1709_v11, %v5044_v35  ;;  %4042 = vmatpush3.bf16.msra.mxu0 %v4474_v63  ;;  %v4476_v42 = vld [vmem:[#allocation7 + $0x20] sm:$0xff]   ;;  %v4477_v45 = vld [vmem:[#allocation7 + $0x58] sm:$0xff]   ;;  %v4479_v8 = vld [vmem:[#allocation7 + $0x50] sm:$0xff]  }
 0x2f4   :  { %v1610_v19 = vpop.f32.mrf.mxu0  ;;  %v1711_v49 = vpop.f32.mrf.mxu1  ;;  %v1808_v40 = vmax.f32 %v1607_v22, 0.0  ;;  %v1810_v41 = vmax.f32 %v1708_v25, 0.0  ;;  %4043 = vmatprep.subr.bf16.mxu0 %v4475_v23  ;;  %v4478_v6 = vld [vmem:[#allocation7 + $0x18] sm:$0xff]   ;;  %v4482_v10 = vld [vmem:[#allocation7 + $0x8] sm:$0xff]   ;;  %v4483_v11 = vld [vmem:[#allocation7 + $0x40] sm:$0xff]  }
 0x2f5   :  { %v1611_v17 = vadd.f32 %v1610_v19, %v5047_v37  ;;  %v1712_v20 = vadd.f32 %v1711_v49, %v5050_v56  ;;  %2938 = vmatprep.mubr.bf16.mxu0 %v1865_v13  ;;  %3039 = vmatprep.mubr.bf16.mxu1 %v1867_v12  ;;  %v1809_v29 = vmax.f32 %v1609_v18, 0.0  ;;  %v1811_v34 = vmax.f32 %v1710_v44, 0.0  ;;  %v4484_v12 = vld [vmem:[#allocation7] sm:$0xff]   ;;  %v4485_v49 = vld [vmem:[%s5399_s11 + $0x38] sm:$0xff]  }
 0x2f6   :  { %v1612_v26 = vpop.f32.mrf.mxu0  ;;  %v1713_v27 = vpop.f32.mrf.mxu1  ;;  %2939 = vmatmul.mubr.bf16.gmra.mxu0 %v1864_v15  ;;  %v2012_v13 = vld [vmem:[%s5396_s8] sm:$0x3]  ;;  %4152 = vmatpush3.bf16.msra.mxu1 %v4485_v49 }
 0x2f7   :  { %v1613_v33 = vadd.f32 %v1612_v26, %v5041_v24  ;;  %v1714_v52 = vadd.f32 %v1713_v27, %v5044_v35  ;;  %3040 = vmatmul.mubr.bf16.gmra.mxu1 %v1866_v61  ;;  %v1816_v30 = vmax.f32 %v1611_v17, 0.0  ;;  %v1818_v55 = vmax.f32 %v1712_v20, 0.0  ;;  %4044 = vmatpush3.bf16.msra.mxu0 %v4476_v42 }
 0x2f8   :  { %v1616_v31 = vpop.f32.mrf.mxu0  ;;  %v1717_v32 = vpop.f32.mrf.mxu1  ;;  %4045 = vmatprep.subr.bf16.mxu0 %v4477_v45  ;;  %v5112_v15 = vrot.slane %v2012_v13, %v4842_v58  ;;  %v5115_v61 = vrot.slane %v2012_v13, %v4839_v57  ;;  %4153 = vmatprep.subr.bf16.mxu1 %v4592_v0 }
 0x2f9   :  { %v1817_v36 = vmax.f32 %v1613_v33, 0.0  ;;  %v1819_v38 = vmax.f32 %v1714_v52, 0.0  ;;  %v1872_v51 = vpack.c.bf16 %v1816_v30, %v1808_v40  ;;  %v1617_v53 = vadd.f32 %v1616_v31, %v5047_v37  ;;  %v4487_v52 = vld [vmem:[%s5399_s11 + $0x28] sm:$0xff]  }
 0x2fa   :  { %v1618_v39 = vpop.f32.mrf.mxu0  ;;  %v1719_v5 = vpop.f32.mrf.mxu1  ;;  %v1874_v16 = vpack.c.bf16 %v1818_v55, %v1810_v41  ;;  %v1718_v54 = vadd.f32 %v1717_v32, %v5050_v56  ;;  %4154 = vmatpush3.bf16.msra.mxu1 %v4486_v21  ;;  %v4488_v32 = vld [vmem:[%s5399_s11 + $0x20] sm:$0xff]  }
 0x2fb   :  { %v1875_v43 = vpack.c.bf16 %v1819_v38, %v1811_v34  ;;  %v1619_v46 = vadd.f32 %v1618_v39, %v5041_v24  ;;  %v1720_v47 = vadd.f32 %v1719_v5, %v5044_v35  ;;  %v1873_v50 = vpack.c.bf16 %v1817_v36, %v1809_v29  ;;  %4046 = vmatpush3.bf16.msra.mxu0 %v4478_v6  ;;  %v4489_v5 = vld [vmem:[%s5399_s11 + $0x18] sm:$0xff]  }
 0x2fc   :  { %v1620_v7 = vpop.f32.mrf.mxu0  ;;  %v1721_v48 = vpop.f32.mrf.mxu1  ;;  %v1824_v3 = vmax.f32 %v1617_v53, 0.0  ;;  %v1826_v37 = vmax.f32 %v1718_v54, 0.0  ;;  %4047 = vmatprep.subr.bf16.mxu0 %v4479_v8  ;;  %4155 = vmatprep.subr.bf16.mxu1 %v4592_v0  ;;  %v4490_v53 = vld [vmem:[%s5399_s11 + $0x10] sm:$0xff]  }
 0x2fd   :  { %v1825_v59 = vmax.f32 %v1619_v46, 0.0  ;;  %v1827_v60 = vmax.f32 %v1720_v47, 0.0  ;;  %2948 = vmatprep.mubr.bf16.mxu0 %v1873_v50  ;;  %3049 = vmatprep.mubr.bf16.mxu1 %v1875_v43 }
 0x2fe   :  { %v1621_v1 = vpop.f32.mrf.mxu0  ;;  %v1722_v2 = vpop.f32.mrf.mxu1  ;;  %2949 = vmatmul.mubr.bf16.gmra.mxu0 %v1872_v51  ;;  %v1880_v56 = vpack.c.bf16 %v1824_v3, %v1824_v3  ;;  %v1882_v4 = vpack.c.bf16 %v1826_v37, %v1826_v37  ;;  %4156 = vmatpush3.bf16.msra.mxu1 %v4487_v52 }
 0x2ff   :  { %v1881_v24 = vpack.c.bf16 %v1825_v59, %v1825_v59  ;;  %v1883_v35 = vpack.c.bf16 %v1827_v60, %v1827_v60  ;;  %3050 = vmatmul.mubr.bf16.gmra.mxu1 %v1874_v16  ;;  %4048 = vmatpush3.bf16.msra.mxu0 %v4480_v9 }
 0x300   :  { %4049 = vmatprep.subr.bf16.mxu0 %v4481_v62  ;;  %4157 = vmatprep.subr.bf16.mxu1 %v4592_v0 }
 0x301   :  { %2958 = vmatprep.mubr.bf16.mxu0 %v1881_v24  ;;  %3059 = vmatprep.mubr.bf16.mxu1 %v1883_v35 }
 0x302   :  { %4158 = vmatpush3.bf16.msra.mxu1 %v4488_v32 }
 0x303   :  { %4050 = vmatpush3.bf16.msra.mxu0 %v4482_v10  ;;  %4159 = vmatprep.subr.bf16.mxu1 %v4592_v0 }
 0x304   :  { %4051 = vmatprep.subr.bf16.mxu0 %v4483_v11 }
 0x306   :  { %2959 = vmatmul.mubr.bf16.gmra.mxu0 %v1880_v56  ;;  %4160 = vmatpush3.bf16.msra.mxu1 %v4489_v5 }
 0x307   :  { %3060 = vmatmul.mubr.bf16.gmra.mxu1 %v1882_v4  ;;  %4052 = vmatpush3.bf16.msra.mxu0 %v4484_v12 }
 0x308   :  { %4167 = vmatprep.mubr.msk.bf16.mxu1 %vm4593_vm0, %v4592_v0  ;;  %4195 = vmatprep.subr.bf16.mxu0 %v4592_v0 }
 0x309   :  { %4161 = vmatprep.subr.bf16.mxu1 %v4592_v0 }
 0x30a   :  { %4162 = vmatpush3.bf16.msra.mxu1 %v4490_v53 }
 0x30b   :  { %4163 = vmatprep.subr.bf16.mxu1 %v4592_v0 }
 0x356   :  { %v2698_v18 = vpop.f32.mrf.mxu0  ;;  %v2799_v19 = vpop.f32.mrf.mxu1 }
 0x357   :  { %v2699_v44 = vadd.f32 %v2698_v18, %v5112_v15 }
 0x358   :  { %v2700_v17 = vpop.f32.mrf.mxu0  ;;  %v2801_v20 = vpop.f32.mrf.mxu1 }
 0x359   :  { %v5124_v58 = vadd.f32 %v2799_v19, %v2699_v44  ;;  %v2701_v57 = vadd.f32 %v2700_v17, %v5115_v61 }
 0x35a   :  { %v5128_v22 = vpop.f32.mrf.mxu0  ;;  %v5130_v25 = vpop.f32.mrf.mxu1 }
 0x35b   :  { %v5132_v26 = vadd.f32 %v2801_v20, %v2701_v57 }
 0x35c   :  { %v5134_v27 = vpop.f32.mrf.mxu0  ;;  %v5136_v33 = vpop.f32.mrf.mxu1 }
 0x35e   :  { %v2708_v28 = vpop.f32.mrf.mxu0  ;;  %v2809_v30 = vpop.f32.mrf.mxu1 }
 0x35f   :  { %v2709_v29 = vadd.f32 %v2708_v28, %v5112_v15 }
 0x360   :  { %v2710_v31 = vpop.f32.mrf.mxu0  ;;  %v2811_v36 = vpop.f32.mrf.mxu1 }
 0x361   :  { %v5146_v34 = vadd.f32 %v2809_v30, %v2709_v29  ;;  %v2711_v55 = vadd.f32 %v2710_v31, %v5115_v61 }
 0x362   :  { %v5150_v38 = vpop.f32.mrf.mxu0  ;;  %v5154_v41 = vpop.f32.mrf.mxu1 }
 0x363   :  { %v5152_v40 = vadd.f32 %v2811_v36, %v2711_v55 }
 0x364   :  { %v5156_v39 = vpop.f32.mrf.mxu0  ;;  %v5161_v43 = vpop.f32.mrf.mxu1 }
 0x366   :  { %v2718_v46 = vpop.f32.mrf.mxu0  ;;  %v2819_v50 = vpop.f32.mrf.mxu1 }
 0x367   :  { %v2719_v47 = vadd.f32 %v2718_v46, %v5112_v15 }
 0x368   :  { %v2720_v51 = vpop.f32.mrf.mxu0  ;;  %v2821_v16 = vpop.f32.mrf.mxu1 }
 0x369   :  { %v5168_v7 = vadd.f32 %v2819_v50, %v2719_v47  ;;  %v2721_v48 = vadd.f32 %v2720_v51, %v5115_v61 }
 0x36a   :  { %v5172_v54 = vpop.f32.mrf.mxu0  ;;  %v5176_v60 = vpop.f32.mrf.mxu1 }
 0x36b   :  { %v5174_v59 = vadd.f32 %v2821_v16, %v2721_v48 }
 0x36c   :  { %v5178_v14 = vpop.f32.mrf.mxu0  ;;  %v5180_v63 = vpop.f32.mrf.mxu1 }
 0x36e   :  { %v2728_v1 = vpop.f32.mrf.mxu0  ;;  %v2829_v24 = vpop.f32.mrf.mxu1 }
 0x36f   :  { %v2729_v2 = vadd.f32 %v2728_v1, %v5112_v15 }
 0x370   :  { %v2730_v35 = vpop.f32.mrf.mxu0  ;;  %v2831_v23 = vpop.f32.mrf.mxu1 }
 0x371   :  { %v5184_v3 = vadd.f32 %v2829_v24, %v2729_v2  ;;  %v2731_v37 = vadd.f32 %v2730_v35, %v5115_v61  ;;  %v2703_v35 = vadd.f32 %v5128_v22, %v5112_v15  ;;  %v2713_v22 = vadd.f32 %v5150_v38, %v5112_v15 }
 0x372   :  { %v5187_v56 = vpop.f32.mrf.mxu0  ;;  %v5191_v42 = vpop.f32.mrf.mxu1 }
 0x373   :  { %v5189_v4 = vadd.f32 %v2831_v23, %v2731_v37  ;;  %v2705_v23 = vadd.f32 %v5134_v27, %v5115_v61 }
 0x374   :  { %v5193_v45 = vpop.f32.mrf.mxu0  ;;  %v5195_v6 = vpop.f32.mrf.mxu1 }
 0x376   :  { %v2738_v8 = vpop.f32.mrf.mxu0  ;;  %v2839_v62 = vpop.f32.mrf.mxu1 }
 0x377   :  { %v2739_v9 = vadd.f32 %v2738_v8, %v5112_v15 }
 0x378   :  { %v2740_v10 = vpop.f32.mrf.mxu0  ;;  %v2841_v13 = vpop.f32.mrf.mxu1 }
 0x379   :  { %v5198_v11 = vadd.f32 %v2839_v62, %v2739_v9  ;;  %v2741_v12 = vadd.f32 %v2740_v10, %v5115_v61  ;;  %v2804_v10 = vadd.f32 %v5130_v25, %v2703_v35  ;;  %v2715_v25 = vadd.f32 %v5156_v39, %v5115_v61 }
 0x37a   :  { %v5201_v18 = vpop.f32.mrf.mxu0  ;;  %v5205_v49 = vpop.f32.mrf.mxu1 }
 0x37b   :  { %v5203_v19 = vadd.f32 %v2841_v13, %v2741_v12 }
 0x37c   :  { %v5207_v44 = vpop.f32.mrf.mxu0  ;;  %v5209_v17 = vpop.f32.mrf.mxu1 }
 0x37e   :  { %v2748_v20 = vpop.f32.mrf.mxu0 }
 0x37f   :  { %v2749_v21 = vadd.f32 %v2748_v20, %v5112_v15  ;;  %v2849_v57 = vpop.f32.mrf.mxu1 }
 0x380   :  { %v2750_v52 = vpop.f32.mrf.mxu0 }
 0x381   :  { %v5212_v28 = vadd.f32 %v2849_v57, %v2749_v21  ;;  %v2751_v29 = vadd.f32 %v2750_v52, %v5115_v61  ;;  %v2851_v30 = vpop.f32.mrf.mxu1  ;;  %v2806_v21 = vadd.f32 %v5136_v33, %v2705_v23 }
 0x382   :  { %v5215_v31 = vpop.f32.mrf.mxu0 }
 0x383   :  { %v5217_v32 = vadd.f32 %v2851_v30, %v2751_v29  ;;  %v5219_v55 = vpop.f32.mrf.mxu1 }
 0x384   :  { %v5221_v36 = vpop.f32.mrf.mxu0 }
 0x385   :  { %v5223_v5 = vpop.f32.mrf.mxu1 }
 0x386   :  { %v2758_v46 = vpop.f32.mrf.mxu0 }
 0x387   :  { %v2759_v47 = vadd.f32 %v2758_v46, %v5112_v15  ;;  %v2859_v50 = vpop.f32.mrf.mxu1 }
 0x388   :  { %v5226_v51 = vpop.f32.mrf.mxu0 }
 0x389   :  { %v5228_v53 = vadd.f32 %v2859_v50, %v2759_v47  ;;  %v5230_v48 = vpop.f32.mrf.mxu1 }
 0x38a   :  { %v2762_v16 = vpop.f32.mrf.mxu0 }
 0x38b   :  { %v2863_v1 = vpop.f32.mrf.mxu1 }
 0x38c   :  { %v2763_v2 = vpop.f32.mrf.mxu0 }
 0x38d   :  { %v2864_v24 = vpop.f32.mrf.mxu1 }
 0x38e   :  { %v2814_v24 = vadd.f32 %v5154_v41, %v2713_v22 }
 0x396   :  { %v2900_v37 = vpop.f32.mrf.mxu0 }
 0x397   :  { %v2901_v8 = vadd.f32 %v2900_v37, %v5124_v58  ;;  %v3001_v9 = vpop.f32.mrf.mxu1 }
 0x398   :  { %v2902_v62 = vpop.f32.mrf.mxu0 }
 0x399   :  { %v2903_v12 = vadd.f32 %v2902_v62, %v5132_v26  ;;  %v3003_v13 = vpop.f32.mrf.mxu1  ;;  %v3002_v57 = vadd.f32 %v3001_v9, %v2901_v8 }
 0x39a   :  { %v2904_v20 = vpop.f32.mrf.mxu0 }
 0x39b   :  { %v2905_v52 = vadd.f32 %v2904_v20, %v2804_v10  ;;  %v3005_v29 = vpop.f32.mrf.mxu1  ;;  %v3004_v27 = vadd.f32 %v3003_v13, %v2903_v12  ;;  %v3068_v26 = vmax.f32 %v3002_v57, 0.0  ;;  %v2816_v10 = vadd.f32 %v5161_v43, %v2715_v25 }
 0x39c   :  { %v2906_v30 = vpop.f32.mrf.mxu0 }
 0x39d   :  { %v3006_v46 = vadd.f32 %v3005_v29, %v2905_v52  ;;  %v2907_v58 = vadd.f32 %v2906_v30, %v2806_v21  ;;  %v3007_v47 = vpop.f32.mrf.mxu1  ;;  %v3069_v37 = vmax.f32 %v3004_v27, 0.0 }
 0x39e   :  { %v2910_v50 = vpop.f32.mrf.mxu0 }
 0x39f   :  { %v3070_v16 = vmax.f32 %v3006_v46, 0.0  ;;  %v3008_v1 = vadd.f32 %v3007_v47, %v2907_v58  ;;  %v2911_v33 = vadd.f32 %v2910_v50, %v5146_v34  ;;  %v3011_v2 = vpop.f32.mrf.mxu1  ;;  %v2723_v34 = vadd.f32 %v5172_v54, %v5112_v15 }
 0x3a0   :  { %v2912_v35 = vpop.f32.mrf.mxu0 }
 0x3a1   :  { %v3094_v38 = vpack.c.bf16 %v3070_v16, %v3068_v26  ;;  %v3071_v23 = vmax.f32 %v3008_v1, 0.0  ;;  %v2913_v8 = vadd.f32 %v2912_v35, %v5152_v40  ;;  %v3013_v9 = vpop.f32.mrf.mxu1  ;;  %v3012_v12 = vadd.f32 %v3011_v2, %v2911_v33 }
 0x3a2   :  { %v2914_v62 = vpop.f32.mrf.mxu0  ;;  %v2725_v40 = vadd.f32 %v5178_v14, %v5115_v61  ;;  %v2824_v47 = vadd.f32 %v5176_v60, %v2723_v34 }
 0x3a3   :  { %v3095_v39 = vpack.c.bf16 %v3071_v23, %v3069_v37  ;;  %v2915_v13 = vadd.f32 %v2914_v62, %v2814_v24  ;;  %v3015_v20 = vpop.f32.mrf.mxu1  ;;  %v3014_v57 = vadd.f32 %v3013_v9, %v2913_v8  ;;  %v3072_v30 = vmax.f32 %v3012_v12, 0.0 }
 0x3a4   :  { %v2916_v21 = vpop.f32.mrf.mxu0  ;;  %v2826_v14 = vadd.f32 %v5180_v63, %v2725_v40 }
 0x3a5   :  { %v3016_v41 = vadd.f32 %v3015_v20, %v2915_v13  ;;  %v2917_v52 = vadd.f32 %v2916_v21, %v2816_v10  ;;  %v3017_v29 = vpop.f32.mrf.mxu1  ;;  %3275 = vmatprep.mubr.bf16.mxu0 %v3095_v39  ;;  %v3073_v25 = vmax.f32 %v3014_v57, 0.0 }
 0x3a6   :  { %v2920_v22 = vpop.f32.mrf.mxu0  ;;  %3276 = vmatmul.mubr.bf16.vlgmr.msra.gmra.mxu0 %v3094_v38 }
 0x3a7   :  { %v3074_v43 = vmax.f32 %v3016_v41, 0.0  ;;  %v3018_v27 = vadd.f32 %v3017_v29, %v2917_v52  ;;  %v2921_v46 = vadd.f32 %v2920_v22, %v5168_v7  ;;  %v3021_v58 = vpop.f32.mrf.mxu1  ;;  %v2733_v7 = vadd.f32 %v5187_v56, %v5112_v15 }
 0x3a8   :  { %v2922_v54 = vpop.f32.mrf.mxu0 }
 0x3a9   :  { %v3096_v50 = vpack.c.bf16 %v3074_v43, %v3072_v30  ;;  %v3075_v26 = vmax.f32 %v3018_v27, 0.0  ;;  %v2923_v16 = vadd.f32 %v2922_v54, %v5174_v59  ;;  %v3023_v1 = vpop.f32.mrf.mxu1  ;;  %v3022_v24 = vadd.f32 %v3021_v58, %v2921_v46 }
 0x3aa   :  { %v2924_v33 = vpop.f32.mrf.mxu0  ;;  %v2735_v59 = vadd.f32 %v5193_v45, %v5115_v61  ;;  %v2834_v20 = vadd.f32 %v5191_v42, %v2733_v7 }
 0x3ab   :  { %v3097_v2 = vpack.c.bf16 %v3075_v26, %v3073_v25  ;;  %v2925_v35 = vadd.f32 %v2924_v33, %v2824_v47  ;;  %v3025_v37 = vpop.f32.mrf.mxu1  ;;  %v3024_v23 = vadd.f32 %v3023_v1, %v2923_v16  ;;  %v3076_v10 = vmax.f32 %v3022_v24, 0.0 }
 0x3ac   :  { %v2926_v38 = vpop.f32.mrf.mxu0  ;;  %v2836_v45 = vadd.f32 %v5195_v6, %v2735_v59 }
 0x3ad   :  { %v3026_v60 = vadd.f32 %v3025_v37, %v2925_v35  ;;  %v2927_v8 = vadd.f32 %v2926_v38, %v2826_v14  ;;  %v3027_v9 = vpop.f32.mrf.mxu1  ;;  %3283 = vmatprep.mubr.bf16.mxu0 %v3097_v2  ;;  %v3077_v34 = vmax.f32 %v3024_v23, 0.0 }
 0x3ae   :  { %v2930_v62 = vpop.f32.mrf.mxu0  ;;  %3284 = vmatmul.mubr.bf16.gmra.mxu0 %v3096_v50 }
 0x3af   :  { %v3078_v63 = vmax.f32 %v3026_v60, 0.0  ;;  %v3028_v39 = vadd.f32 %v3027_v9, %v2927_v8  ;;  %v2931_v12 = vadd.f32 %v2930_v62, %v5184_v3  ;;  %v3031_v13 = vpop.f32.mrf.mxu1  ;;  %v2743_v3 = vadd.f32 %v5201_v18, %v5112_v15 }
 0x3b0   :  { %v2932_v56 = vpop.f32.mrf.mxu0 }
 0x3b1   :  { %v3098_v21 = vpack.c.bf16 %v3078_v63, %v3076_v10  ;;  %v3079_v57 = vmax.f32 %v3028_v39, 0.0  ;;  %v2933_v41 = vadd.f32 %v2932_v56, %v5189_v4  ;;  %v3033_v52 = vpop.f32.mrf.mxu1  ;;  %v3032_v22 = vadd.f32 %v3031_v13, %v2931_v12 }
 0x3b2   :  { %v2934_v29 = vpop.f32.mrf.mxu0  ;;  %v2745_v4 = vadd.f32 %v5207_v44, %v5115_v61  ;;  %v2844_v1 = vadd.f32 %v5205_v49, %v2743_v3 }
 0x3b3   :  { %v3099_v40 = vpack.c.bf16 %v3079_v57, %v3077_v34  ;;  %v2935_v30 = vadd.f32 %v2934_v29, %v2834_v20  ;;  %v3035_v43 = vpop.f32.mrf.mxu1  ;;  %v3034_v46 = vadd.f32 %v3033_v52, %v2933_v41  ;;  %v3080_v25 = vmax.f32 %v3032_v22, 0.0 }
 0x3b4   :  { %v2936_v27 = vpop.f32.mrf.mxu0  ;;  %v2846_v44 = vadd.f32 %v5209_v17, %v2745_v4  ;;  %v2761_v52 = vadd.f32 %v5226_v51, %v5115_v61 }
 0x3b5   :  { %v3036_v42 = vadd.f32 %v3035_v43, %v2935_v30  ;;  %v2937_v58 = vadd.f32 %v2936_v27, %v2836_v45  ;;  %v3037_v47 = vpop.f32.mrf.mxu1  ;;  %3291 = vmatprep.mubr.bf16.mxu0 %v3099_v40  ;;  %v3081_v33 = vmax.f32 %v3034_v46, 0.0 }
 0x3b6   :  { %v2940_v54 = vpop.f32.mrf.mxu0  ;;  %3292 = vmatmul.mubr.bf16.gmra.mxu0 %v3098_v21 }
 0x3b7   :  { %v3082_v6 = vmax.f32 %v3036_v42, 0.0  ;;  %v3038_v50 = vadd.f32 %v3037_v47, %v2937_v58  ;;  %v2941_v26 = vadd.f32 %v2940_v54, %v5198_v11  ;;  %v3041_v16 = vpop.f32.mrf.mxu1  ;;  %v2753_v11 = vadd.f32 %v5215_v31, %v5112_v15 }
 0x3b8   :  { %v2942_v18 = vpop.f32.mrf.mxu0 }
 0x3b9   :  { %v3100_v14 = vpack.c.bf16 %v3082_v6, %v3080_v25  ;;  %v3083_v2 = vmax.f32 %v3038_v50, 0.0  ;;  %v2943_v24 = vadd.f32 %v2942_v18, %v5203_v19  ;;  %v3043_v35 = vpop.f32.mrf.mxu1  ;;  %v3042_v38 = vadd.f32 %v3041_v16, %v2941_v26 }
 0x3ba   :  { %v2944_v37 = vpop.f32.mrf.mxu0  ;;  %v2755_v19 = vadd.f32 %v5221_v36, %v5115_v61  ;;  %v2854_v20 = vadd.f32 %v5219_v55, %v2753_v11 }
 0x3bb   :  { %v3101_v7 = vpack.c.bf16 %v3083_v2, %v3081_v33  ;;  %v2945_v23 = vadd.f32 %v2944_v37, %v2844_v1  ;;  %v3045_v60 = vpop.f32.mrf.mxu1  ;;  %v3044_v9 = vadd.f32 %v3043_v35, %v2943_v24  ;;  %v3084_v63 = vmax.f32 %v3042_v38, 0.0  ;;  %v4491_v35 = vld [vmem:[%s5399_s11 + $0x8] sm:$0xff]   ;;  %v4492_v37 = vld [vmem:[%s5399_s11] sm:$0xff]  }
 0x3bc   :  { %v2946_v8 = vpop.f32.mrf.mxu0  ;;  %v2856_v41 = vadd.f32 %v5223_v5, %v2755_v19  ;;  %4164 = vmatpush3.bf16.msra.mxu1 %v4491_v35  ;;  %v4495_v38 = vld [vmem:[%s5401_s13 + $0x8] sm:$0xff]  }
 0x3bd   :  { %v3046_v49 = vadd.f32 %v3045_v60, %v2945_v23  ;;  %v2947_v59 = vadd.f32 %v2946_v8, %v2846_v44  ;;  %v3047_v62 = vpop.f32.mrf.mxu1  ;;  %3299 = vmatprep.mubr.bf16.mxu0 %v3101_v7  ;;  %v3085_v31 = vmax.f32 %v3044_v9, 0.0  ;;  %4165 = vmatprep.subr.bf16.mxu1 %v4592_v0  ;;  %v4493_v44 = vld [vmem:[%s5401_s13 + $0x18] sm:$0xff]   ;;  %v4494_v7 = vld [vmem:[%s5401_s13 + $0x10] sm:$0xff]   ;;  %v4496_v23 = vld [vmem:[%s5401_s13] sm:$0xff]  }
 0x3be   :  { %v2950_v10 = vpop.f32.mrf.mxu0  ;;  %3300 = vmatmul.mubr.bf16.gmra.mxu0 %v3100_v14  ;;  %v5312_v9 = vld [vmem:[%s5398_s10] ss:$0 sm:$0xff] }
 0x3bf   :  { %v3086_v17 = vmax.f32 %v3046_v49, 0.0  ;;  %v3048_v39 = vadd.f32 %v3047_v62, %v2947_v59  ;;  %v2951_v12 = vadd.f32 %v2950_v10, %v5212_v28  ;;  %v3051_v13 = vpop.f32.mrf.mxu1  ;;  %4196 = vmatpush3.bf16.msra.mxu0 %v4493_v44 }
 0x3c0   :  { %v2952_v15 = vpop.f32.mrf.mxu0  ;;  %4166 = vmatpush3.bf16.msra.mxu1 %v4492_v37  ;;  %4197 = vmatprep.subr.bf16.mxu0 %v4592_v0 }
 0x3c1   :  { %v3102_v56 = vpack.c.bf16 %v3086_v17, %v3084_v63  ;;  %v3087_v34 = vmax.f32 %v3048_v39, 0.0  ;;  %v2953_v21 = vadd.f32 %v2952_v15, %v5217_v32  ;;  %v3053_v57 = vpop.f32.mrf.mxu1  ;;  %v3052_v45 = vadd.f32 %v3051_v13, %v2951_v12  ;;  %4231 = vmatprep.subr.bf16.mxu1 %v4592_v0 }
 0x3c2   :  { %v2954_v36 = vpop.f32.mrf.mxu0  ;;  %v2862_v32 = vadd.f32 %v5230_v48, %v2761_v52 }
 0x3c3   :  { %v3103_v29 = vpack.c.bf16 %v3087_v34, %v3085_v31  ;;  %v2955_v40 = vadd.f32 %v2954_v36, %v2854_v20  ;;  %v3055_v28 = vpop.f32.mrf.mxu1  ;;  %v3054_v30 = vadd.f32 %v3053_v57, %v2953_v21  ;;  %v3088_v46 = vmax.f32 %v3052_v45, 0.0  ;;  %4198 = vmatpush3.bf16.msra.mxu0 %v4494_v7 }
 0x3c4   :  { %v2956_v22 = vpop.f32.mrf.mxu0  ;;  %4199 = vmatprep.subr.bf16.mxu0 %v4592_v0 }
 0x3c5   :  { %v3056_v55 = vadd.f32 %v3055_v28, %v2955_v40  ;;  %v2957_v43 = vadd.f32 %v2956_v22, %v2856_v41  ;;  %v3057_v3 = vpop.f32.mrf.mxu1  ;;  %3307 = vmatprep.mubr.bf16.mxu0 %v3103_v29  ;;  %v3089_v47 = vmax.f32 %v3054_v30, 0.0 }
 0x3c6   :  { %v2960_v27 = vpop.f32.mrf.mxu0  ;;  %3308 = vmatmul.mubr.bf16.gmra.mxu0 %v3102_v56 }
 0x3c7   :  { %v3090_v5 = vmax.f32 %v3056_v55, 0.0  ;;  %v3058_v42 = vadd.f32 %v3057_v3, %v2957_v43  ;;  %v3061_v58 = vpop.f32.mrf.mxu1  ;;  %v2961_v61 = vadd.f32 %v2960_v27, %v5228_v53  ;;  %4200 = vmatpush3.bf16.msra.mxu0 %v4495_v38 }
 0x3c8   :  { %v2962_v51 = vpop.f32.mrf.mxu0  ;;  %4201 = vmatprep.subr.bf16.mxu0 %v4592_v0 }
 0x3c9   :  { %v3104_v4 = vpack.c.bf16 %v3090_v5, %v3088_v46  ;;  %v3091_v54 = vmax.f32 %v3058_v42, 0.0  ;;  %v2963_v25 = vadd.f32 %v2962_v51, %v2862_v32  ;;  %v3063_v6 = vpop.f32.mrf.mxu1  ;;  %v3062_v18 = vadd.f32 %v3061_v58, %v2961_v61 }
 0x3ca   :  { %v2964_v50 = vpop.f32.mrf.mxu0 }
 0x3cb   :  { %v3105_v26 = vpack.c.bf16 %v3091_v54, %v3089_v47  ;;  %v3064_v16 = vadd.f32 %v3063_v6, %v2963_v25  ;;  %v3065_v1 = vpop.f32.mrf.mxu1  ;;  %v3092_v24 = vmax.f32 %v3062_v18, 0.0  ;;  %4202 = vmatpush3.bf16.msra.mxu0 %v4496_v23 }
 0x3cc   :  { %v2965_v33 = vpop.f32.mrf.mxu0 }
 0x3cd   :  { %v3093_v14 = vmax.f32 %v3064_v16, 0.0  ;;  %v3066_v48 = vpop.f32.mrf.mxu1  ;;  %3315 = vmatprep.mubr.bf16.mxu0 %v3105_v26  ;;  %v3106_v53 = vpack.c.bf16 %v3092_v24, %v3092_v24 }
 0x3ce   :  { %3316 = vmatmul.mubr.bf16.gmra.mxu0 %v3104_v4 }
 0x3cf   :  { %v3107_v2 = vpack.c.bf16 %v3093_v14, %v3093_v14 }
 0x3d1   :  { %3323 = vmatprep.mubr.bf16.mxu0 %v3107_v2 }
 0x3d6   :  { %3324 = vmatmul.mubr.bf16.gmra.mxu0 %v3106_v53 }
 0x3d7   :  { %4203 = vmatprep.mubr.msk.bf16.mxu0 %vm4593_vm0, %v4592_v0 }
 0x466   :  { %v4053_v60 = vpop.f32.mrf.mxu0 }
 0x468   :  { %v4054_v11 = vpop.f32.mrf.mxu0 }
 0x469   :  { %v4055_v8 = vadd.f32 %v4054_v11, %v4053_v60 }
 0x46a   :  { %v4056_v49 = vpop.f32.mrf.mxu0 }
 0x46b   :  { %v3278_v62 = vadd.f32 %v4055_v8, %v5312_v9 }
 0x46c   :  { %v4057_v59 = vpop.f32.mrf.mxu0 }
 0x46d   :  { %v4058_v19 = vadd.f32 %v4057_v59, %v4056_v49  ;;  %v3331_v39 = vmax.f32 %v3278_v62, 0.0 }
 0x46e   :  { %v4059_v10 = vpop.f32.mrf.mxu0 }
 0x46f   :  { %v3281_v63 = vadd.f32 %v4058_v19, %v5312_v9 }
 0x470   :  { %v4060_v17 = vpop.f32.mrf.mxu0 }
 0x471   :  { %v3332_v12 = vmax.f32 %v3281_v63, 0.0  ;;  %v4061_v13 = vadd.f32 %v4060_v17, %v4059_v10 }
 0x472   :  { %v4062_v20 = vpop.f32.mrf.mxu0 }
 0x473   :  { %v3344_v15 = vpack.c.bf16 %v3332_v12, %v3331_v39  ;;  %v3286_v56 = vadd.f32 %v4061_v13, %v5312_v9  ;;  %v5347_v13 = vld [vmem:[%s5400_s12] ss:$0 sm:$0xff] }
 0x474   :  { %v4063_v31 = vpop.f32.mrf.mxu0 }
 0x475   :  { %v4064_v34 = vadd.f32 %v4063_v31, %v4062_v20  ;;  %4168 = vmatmul.mubr.bf16.vlgmr.msra.gmra.mxu1 %v3344_v15  ;;  %v3333_v36 = vmax.f32 %v3286_v56, 0.0 }
 0x476   :  { %v4065_v21 = vpop.f32.mrf.mxu0  ;;  %4171 = vmatprep.mubr.msk.bf16.mxu1 %vm4593_vm0, %v4592_v0  ;;  %4235 = vmatpush3.bf16.msra.mxu1 %v4493_v44 }
 0x477   :  { %v3289_v57 = vadd.f32 %v4064_v34, %v5312_v9  ;;  %4232 = vmatprep.subr.bf16.mxu1 %v4592_v0 }
 0x478   :  { %v4066_v41 = vpop.f32.mrf.mxu0 }
 0x479   :  { %v3334_v52 = vmax.f32 %v3289_v57, 0.0  ;;  %v4067_v29 = vadd.f32 %v4066_v41, %v4065_v21 }
 0x47a   :  { %v4068_v45 = vpop.f32.mrf.mxu0  ;;  %4236 = vmatpush3.bf16.msra.mxu1 %v4494_v7 }
 0x47b   :  { %v3345_v40 = vpack.c.bf16 %v3334_v52, %v3333_v36  ;;  %4233 = vmatprep.subr.bf16.mxu1 %v4592_v0  ;;  %v3294_v22 = vadd.f32 %v4067_v29, %v5312_v9 }
 0x47c   :  { %v4069_v28 = vpop.f32.mrf.mxu0 }
 0x47d   :  { %v4070_v30 = vadd.f32 %v4069_v28, %v4068_v45  ;;  %4172 = vmatmul.mubr.bf16.gmra.mxu1 %v3345_v40  ;;  %v3335_v27 = vmax.f32 %v3294_v22, 0.0 }
 0x47e   :  { %v4071_v55 = vpop.f32.mrf.mxu0  ;;  %4175 = vmatprep.mubr.msk.bf16.mxu1 %vm4593_vm0, %v4592_v0  ;;  %4237 = vmatpush3.bf16.msra.mxu1 %v4495_v38 }
 0x47f   :  { %v3297_v43 = vadd.f32 %v4070_v30, %v5312_v9  ;;  %4234 = vmatprep.subr.bf16.mxu1 %v4592_v0 }
 0x480   :  { %v4072_v3 = vpop.f32.mrf.mxu0 }
 0x481   :  { %v3336_v32 = vmax.f32 %v3297_v43, 0.0  ;;  %v4073_v46 = vadd.f32 %v4072_v3, %v4071_v55 }
 0x482   :  { %v4074_v5 = vpop.f32.mrf.mxu0  ;;  %4238 = vmatpush3.bf16.msra.mxu1 %v4496_v23 }
 0x483   :  { %v3346_v42 = vpack.c.bf16 %v3336_v32, %v3335_v27  ;;  %v3302_v61 = vadd.f32 %v4073_v46, %v5312_v9 }
 0x484   :  { %v4075_v58 = vpop.f32.mrf.mxu0 }
 0x485   :  { %v4076_v51 = vadd.f32 %v4075_v58, %v4074_v5  ;;  %4176 = vmatmul.mubr.bf16.gmra.mxu1 %v3346_v42  ;;  %v3337_v25 = vmax.f32 %v3302_v61, 0.0 }
 0x486   :  { %v4077_v47 = vpop.f32.mrf.mxu0  ;;  %4179 = vmatprep.mubr.msk.bf16.mxu1 %vm4593_vm0, %v4592_v0 }
 0x487   :  { %v3305_v4 = vadd.f32 %v4076_v51, %v5312_v9 }
 0x488   :  { %v4078_v54 = vpop.f32.mrf.mxu0 }
 0x489   :  { %v3338_v6 = vmax.f32 %v3305_v4, 0.0  ;;  %v4079_v50 = vadd.f32 %v4078_v54, %v4077_v47 }
 0x48a   :  { %v4080_v26 = vpop.f32.mrf.mxu0 }
 0x48b   :  { %v3347_v16 = vpack.c.bf16 %v3338_v6, %v3337_v25  ;;  %v3310_v18 = vadd.f32 %v4079_v50, %v5312_v9 }
 0x48c   :  { %v4081_v1 = vpop.f32.mrf.mxu0 }
 0x48d   :  { %v4082_v33 = vadd.f32 %v4081_v1, %v4080_v26  ;;  %4180 = vmatmul.mubr.bf16.gmra.mxu1 %v3347_v16  ;;  %v3339_v24 = vmax.f32 %v3310_v18, 0.0 }
 0x48e   :  { %v4083_v14 = vpop.f32.mrf.mxu0  ;;  %4183 = vmatprep.mubr.msk.bf16.mxu1 %vm4593_vm0, %v4592_v0 }
 0x48f   :  { %v3313_v48 = vadd.f32 %v4082_v33, %v5312_v9 }
 0x490   :  { %v4084_v2 = vpop.f32.mrf.mxu0 }
 0x491   :  { %v3340_v53 = vmax.f32 %v3313_v48, 0.0  ;;  %v4085_v35 = vadd.f32 %v4084_v2, %v4083_v14 }
 0x492   :  { %v4086_v37 = vpop.f32.mrf.mxu0 }
 0x493   :  { %v3348_v44 = vpack.c.bf16 %v3340_v53, %v3339_v24  ;;  %v3318_v38 = vadd.f32 %v4085_v35, %v5312_v9 }
 0x494   :  { %v4087_v7 = vpop.f32.mrf.mxu0 }
 0x495   :  { %v4088_v23 = vadd.f32 %v4087_v7, %v4086_v37  ;;  %4184 = vmatmul.mubr.bf16.gmra.mxu1 %v3348_v44  ;;  %v3341_v49 = vmax.f32 %v3318_v38, 0.0 }
 0x496   :  { %v4089_v60 = vpop.f32.mrf.mxu0  ;;  %4187 = vmatprep.mubr.msk.bf16.mxu1 %vm4593_vm0, %v4592_v0 }
 0x497   :  { %v3321_v11 = vadd.f32 %v4088_v23, %v5312_v9 }
 0x498   :  { %v4090_v8 = vpop.f32.mrf.mxu0 }
 0x499   :  { %v3342_v59 = vmax.f32 %v3321_v11, 0.0  ;;  %v4091_v62 = vadd.f32 %v4090_v8, %v4089_v60 }
 0x49a   :  { %v4092_v19 = vpop.f32.mrf.mxu0 }
 0x49b   :  { %v3349_v10 = vpack.c.bf16 %v3342_v59, %v3341_v49  ;;  %v3326_v63 = vadd.f32 %v4091_v62, %v5312_v9 }
 0x49c   :  { %v4093_v17 = vpop.f32.mrf.mxu0 }
 0x49d   :  { %4188 = vmatmul.mubr.bf16.gmra.mxu1 %v3349_v10  ;;  %v3343_v39 = vmax.f32 %v3326_v63, 0.0 }
 0x49e   :  { %4191 = vmatprep.mubr.msk.bf16.mxu1 %vm4593_vm0, %v4592_v0 }
 0x49f   :  { %v3350_v12 = vpack.c.bf16 %v3343_v39, %v3343_v39 }
 0x4a5   :  { %4192 = vmatmul.mubr.bf16.gmra.mxu1 %v3350_v12 }
 0x4a6   :  { %4227 = vmatprep.mubr.msk.bf16.mxu1 %vm4593_vm0, %v4592_v0 }
 0x535   :  { %v3456_v20 = vpop.f32.mrf.mxu1 }
 0x536   :  { %v3457_v9 = vadd.f32 %v5347_v13, %v3456_v20 }
 0x537   :  { %v4169_v15 = vpop.f32.mrf.mxu1 }
 0x538   :  { %v3510_v21 = vmax.f32 %v3457_v9, 0.0 }
 0x539   :  { %v3459_v31 = vpop.f32.mrf.mxu1 }
 0x53a   :  { %v3460_v56 = vadd.f32 %v5347_v13, %v3459_v31 }
 0x53b   :  { %v4170_v34 = vpop.f32.mrf.mxu1 }
 0x53c   :  { %v3511_v57 = vmax.f32 %v3460_v56, 0.0 }
 0x53d   :  { %v3464_v41 = vpop.f32.mrf.mxu1 }
 0x53e   :  { %v3523_v36 = vpack.c.bf16 %v3511_v57, %v3510_v21  ;;  %v3465_v29 = vadd.f32 %v5347_v13, %v3464_v41 }
 0x53f   :  { %v4173_v52 = vpop.f32.mrf.mxu1 }
 0x540   :  { %4204 = vmatmul.mubr.msk.bf16.vlgmr.msra.gmra.mxu0 %vm3569_vm3, %v3523_v36  ;;  %v3512_v22 = vmax.f32 %v3465_v29, 0.0 }
 0x541   :  { %v3467_v45 = vpop.f32.mrf.mxu1  ;;  %4207 = vmatprep.mubr.msk.bf16.mxu0 %vm4593_vm0, %v4592_v0 }
 0x542   :  { %v3468_v40 = vadd.f32 %v5347_v13, %v3467_v45 }
 0x543   :  { %v4174_v28 = vpop.f32.mrf.mxu1 }
 0x544   :  { %v3513_v30 = vmax.f32 %v3468_v40, 0.0 }
 0x545   :  { %v3472_v55 = vpop.f32.mrf.mxu1 }
 0x546   :  { %v3524_v43 = vpack.c.bf16 %v3513_v30, %v3512_v22  ;;  %v3473_v27 = vadd.f32 %v5347_v13, %v3472_v55 }
 0x547   :  { %v4177_v3 = vpop.f32.mrf.mxu1 }
 0x548   :  { %4208 = vmatmul.mubr.msk.bf16.gmra.mxu0 %vm3569_vm3, %v3524_v43  ;;  %v3514_v42 = vmax.f32 %v3473_v27, 0.0 }
 0x549   :  { %v3475_v32 = vpop.f32.mrf.mxu1  ;;  %4211 = vmatprep.mubr.msk.bf16.mxu0 %vm4593_vm0, %v4592_v0 }
 0x54a   :  { %v3476_v46 = vadd.f32 %v5347_v13, %v3475_v32 }
 0x54b   :  { %v4178_v5 = vpop.f32.mrf.mxu1 }
 0x54c   :  { %v3515_v58 = vmax.f32 %v3476_v46, 0.0 }
 0x54d   :  { %v3480_v61 = vpop.f32.mrf.mxu1 }
 0x54e   :  { %v3525_v51 = vpack.c.bf16 %v3515_v58, %v3514_v42  ;;  %v3481_v4 = vadd.f32 %v5347_v13, %v3480_v61 }
 0x54f   :  { %v4181_v47 = vpop.f32.mrf.mxu1 }
 0x550   :  { %4212 = vmatmul.mubr.msk.bf16.gmra.mxu0 %vm3569_vm3, %v3525_v51  ;;  %v3516_v50 = vmax.f32 %v3481_v4, 0.0 }
 0x551   :  { %v3483_v54 = vpop.f32.mrf.mxu1  ;;  %4215 = vmatprep.mubr.msk.bf16.mxu0 %vm4593_vm0, %v4592_v0 }
 0x552   :  { %v3484_v25 = vadd.f32 %v5347_v13, %v3483_v54 }
 0x553   :  { %v4182_v6 = vpop.f32.mrf.mxu1 }
 0x554   :  { %v3517_v26 = vmax.f32 %v3484_v25, 0.0 }
 0x555   :  { %v3488_v16 = vpop.f32.mrf.mxu1 }
 0x556   :  { %v3526_v1 = vpack.c.bf16 %v3517_v26, %v3516_v50  ;;  %v3489_v33 = vadd.f32 %v5347_v13, %v3488_v16 }
 0x557   :  { %v4185_v18 = vpop.f32.mrf.mxu1 }
 0x558   :  { %4216 = vmatmul.mubr.msk.bf16.gmra.mxu0 %vm3569_vm3, %v3526_v1  ;;  %v3518_v24 = vmax.f32 %v3489_v33, 0.0 }
 0x559   :  { %v3491_v14 = vpop.f32.mrf.mxu1  ;;  %4219 = vmatprep.mubr.msk.bf16.mxu0 %vm4593_vm0, %v4592_v0 }
 0x55a   :  { %v3492_v48 = vadd.f32 %v5347_v13, %v3491_v14 }
 0x55b   :  { %v4186_v2 = vpop.f32.mrf.mxu1 }
 0x55c   :  { %v3519_v53 = vmax.f32 %v3492_v48, 0.0 }
 0x55d   :  { %v3496_v35 = vpop.f32.mrf.mxu1 }
 0x55e   :  { %v3527_v37 = vpack.c.bf16 %v3519_v53, %v3518_v24  ;;  %v3497_v7 = vadd.f32 %v5347_v13, %v3496_v35 }
 0x55f   :  { %v4189_v44 = vpop.f32.mrf.mxu1 }
 0x560   :  { %4220 = vmatmul.mubr.msk.bf16.gmra.mxu0 %vm3569_vm3, %v3527_v37  ;;  %v3520_v11 = vmax.f32 %v3497_v7, 0.0 }
 0x561   :  { %v3499_v38 = vpop.f32.mrf.mxu1  ;;  %4223 = vmatprep.mubr.msk.bf16.mxu0 %vm4593_vm0, %v4592_v0  ;;  %v4017_v0 = vld [vmem:[%s5402_s14] ss:$0 sm:$0xff]  ;;  %s4595_s14 = smov [#allocation8]  }
 0x562   :  { %v3500_v23 = vadd.f32 %v5347_v13, %v3499_v38  ;;  %s3697_s23 = sshll.u32 %s4595_s14, 4  ;;  %s3698_s23 = int_to_ptr.vmem [resolvable:$true] %s3697_s23 }
 0x563   :  { %v4190_v60 = vpop.f32.mrf.mxu1  ;;  %s4557_s8 = scalar_lea.vmem %s3698_s23, 1664  ;;  %p4562_p2 = scmp.lt.s32.totalorder %s3698_s23, %s3698_s23 }
 0x564   :  { %v3521_v8 = vmax.f32 %v3500_v23, 0.0  ;;  %p4558_p1 = scmp.ne.s32.totalorder %s3698_s23, %s4557_s8  ;;  %p4563_p3 = scmp.lt.s32.totalorder %s4557_s8, %s4557_s8 }
 0x565   :  { %v3504_v49 = vpop.f32.mrf.mxu1 }
 0x566   :  { %v3528_v59 = vpack.c.bf16 %v3521_v8, %v3520_v11  ;;  %v3505_v62 = vadd.f32 %v5347_v13, %v3504_v49  ;;  %p4564_p4 = por %p4563_p3, %p4562_p2 }
 0x567   :  { %v4193_v19 = vpop.f32.mrf.mxu1 }
 0x568   :  { %v3522_v10 = vmax.f32 %v3505_v62, 0.0  ;;  %4224 = vmatmul.mubr.msk.bf16.gmra.mxu0 %vm3569_vm3, %v3528_v59  ;;  %p4565_p5 = pnand %p4564_p4, %p4558_p1 }
 0x569   :  { %v3507_v63 = vpop.f32.mrf.mxu1 }
 0x56a   :  { %v3529_v17 = vpack.c.bf16 %v3522_v10, %v3522_v10 }
 0x56b   :  { %v4194_v39 = vpop.f32.mrf.mxu1 }
 0x56c   :  { %4228 = vmatmul.mubr.msk.bf16.vlgmr.msra.gmra.mxu1 %vm3569_vm3, %v3529_v17 }
 0x600   :  { %v3625_v12 = vpop.f32.mrf.mxu0 }
 0x601   :  { %v3626_v20 = vadd.f32 %v4017_v0, %v3625_v12 }
 0x602   :  { %v4205_v15 = vpop.f32.mrf.mxu0 }
 0x603   :  { %3679 = vst [vmem:[#allocation8] sm:$0xff] %v3626_v20 }
 0x604   :  { %v3628_v9 = vpop.f32.mrf.mxu0 }
 0x605   :  { %v3629_v31 = vadd.f32 %v4017_v0, %v3628_v9 }
 0x606   :  { %v4206_v13 = vpop.f32.mrf.mxu0 }
 0x607   :  { %3680 = vst [vmem:[#allocation8 + $0x8] sm:$0xff] %v3629_v31 }
 0x608   :  { %v3633_v56 = vpop.f32.mrf.mxu0 }
 0x609   :  { %v3634_v34 = vadd.f32 %v4017_v0, %v3633_v56 }
 0x60a   :  { %v4209_v21 = vpop.f32.mrf.mxu0 }
 0x60b   :  { %3681 = vst [vmem:[#allocation8 + $0x10] sm:$0xff] %v3634_v34 }
 0x60c   :  { %v3636_v57 = vpop.f32.mrf.mxu0 }
 0x60d   :  { %v3637_v41 = vadd.f32 %v4017_v0, %v3636_v57 }
 0x60e   :  { %v4210_v36 = vpop.f32.mrf.mxu0 }
 0x60f   :  { %3682 = vst [vmem:[#allocation8 + $0x18] sm:$0xff] %v3637_v41 }
 0x610   :  { %v3641_v52 = vpop.f32.mrf.mxu0 }
 0x611   :  { %v3642_v29 = vadd.f32 %v4017_v0, %v3641_v52 }
 0x612   :  { %v4213_v45 = vpop.f32.mrf.mxu0 }
 0x613   :  { %3683 = vst [vmem:[#allocation8 + $0x20] sm:$0xff] %v3642_v29 }
 0x614   :  { %v3644_v40 = vpop.f32.mrf.mxu0 }
 0x615   :  { %v3645_v28 = vadd.f32 %v4017_v0, %v3644_v40 }
 0x616   :  { %v4214_v22 = vpop.f32.mrf.mxu0 }
 0x617   :  { %3684 = vst [vmem:[#allocation8 + $0x28] sm:$0xff] %v3645_v28 }
 0x618   :  { %v3649_v30 = vpop.f32.mrf.mxu0 }
 0x619   :  { %v3650_v55 = vadd.f32 %v4017_v0, %v3649_v30 }
 0x61a   :  { %v4217_v43 = vpop.f32.mrf.mxu0 }
 0x61b   :  { %3685 = vst [vmem:[#allocation8 + $0x30] sm:$0xff] %v3650_v55 }
 0x61c   :  { %v3652_v3 = vpop.f32.mrf.mxu0 }
 0x61d   :  { %v3653_v27 = vadd.f32 %v4017_v0, %v3652_v3 }
 0x61e   :  { %v4218_v32 = vpop.f32.mrf.mxu0 }
 0x61f   :  { %3686 = vst [vmem:[#allocation8 + $0x38] sm:$0xff] %v3653_v27 }
 0x620   :  { %v3657_v46 = vpop.f32.mrf.mxu0 }
 0x621   :  { %v3658_v5 = vadd.f32 %v4017_v0, %v3657_v46 }
 0x622   :  { %v4221_v42 = vpop.f32.mrf.mxu0 }
 0x623   :  { %3687 = vst [vmem:[#allocation8 + $0x40] sm:$0xff] %v3658_v5 }
 0x624   :  { %v3660_v58 = vpop.f32.mrf.mxu0 }
 0x625   :  { %v3661_v61 = vadd.f32 %v4017_v0, %v3660_v58 }
 0x626   :  { %v4222_v51 = vpop.f32.mrf.mxu0 }
 0x627   :  { %3688 = vst [vmem:[#allocation8 + $0x48] sm:$0xff] %v3661_v61 }
 0x628   :  { %v3665_v47 = vpop.f32.mrf.mxu0 }
 0x629   :  { %v3666_v4 = vadd.f32 %v4017_v0, %v3665_v47 }
 0x62a   :  { %v4225_v54 = vpop.f32.mrf.mxu0 }
 0x62b   :  { %3689 = vst [vmem:[#allocation8 + $0x50] sm:$0xff] %v3666_v4 }
 0x62c   :  { %v3668_v25 = vpop.f32.mrf.mxu0  ;;  %v3673_v6 = vpop.f32.mrf.mxu1 }
 0x62d   :  { %v3669_v50 = vadd.f32 %v4017_v0, %v3668_v25  ;;  %v3674_v26 = vadd.f32 %v4017_v0, %v3673_v6 }
 0x62e   :  { %v4226_v16 = vpop.f32.mrf.mxu0  ;;  %v4229_v1 = vpop.f32.mrf.mxu1 }
 0x62f   :  { %3690 = vst [vmem:[#allocation8 + $0x58] sm:$0xff] %v3669_v50  ;;  %3691 = vst [vmem:[#allocation8 + $0x60] sm:$0xff] %v3674_v26 }
 0x630   :  { %v3676_v18 = vpop.f32.mrf.mxu1 }
 0x631   :  { %4568 = shalt.err (!%p4565_p5)
}
 0x632   :  { %3703 = dma.vmem_to_hbm [thread:$0]  %s3698_s23, 1664, %s5403_s15, [#allocation4], %s4584_s21, %s4584_s21, %s4585_s22   ;;  %v4230_v33 = vpop.f32.mrf.mxu1 }
 0x633   :  { %4581 = dma.done.wait [#allocation4], 1664  }
 0x634   :  { %4582 = vsyncadd [#allocation4], 4294965632 }
 0x635   :  { %3707 = vsyncpa [#allocation3], 1 }
 0x636   :  { %3708 = vsyncpa [#allocation6], 1 }
 0x637   :  { %3709 = vsyncpa [#allocation4], 1 }

</bundles_post_ra>
